<compile_context>
chip_gen: v7x
topology: tpu7x:2x2x1
jax: 0.10.0
libtpu: 0.0.40
codegen_flags: <defaults>
</compile_context>

<pallas_src>
import jax
import jax.numpy as jnp
from jax.experimental import pallas as pl
from jax.experimental.pallas import tpu as pltpu


def _round_up(n, m):
    return ((n + m - 1) // m) * m


def _encoder_kernel(x_ref, w1_ref, b1_ref, w2_ref, b2_ref, w3_ref, b3_ref,
                    o_ref):
    # Layer 1: Linear(D, D) + ReLU   (Dropout = identity in eval)
    x = x_ref[...].astype(jnp.bfloat16)
    h1 = jnp.dot(x, w1_ref[...], preferred_element_type=jnp.float32)
    h1 = jnp.maximum(h1 + b1_ref[...], 0.0)

    # Layer 2: Linear(D, H) + ReLU   (Dropout = identity in eval)
    h2 = jnp.dot(h1.astype(jnp.bfloat16), w2_ref[...],
                 preferred_element_type=jnp.float32)
    h2 = jnp.maximum(h2 + b2_ref[...], 0.0)

    # Layer 3: Linear(H, 1) + Sigmoid, as VPU multiply + lane reduction
    # (w3 stored as (1, H) f32; avoids an N=1 MXU matmul).
    logits = jnp.sum(h2 * w3_ref[...], axis=-1, keepdims=True) + b3_ref[...]
    o_ref[...] = jax.nn.sigmoid(logits)


@jax.jit
def encoder_forward(x, w1, b1, w2, b2, w3, b3):
    """x: (B, D) f32.  w1/b1/w2/b2/w3/b3 are the *prepared* params
    (padded / bf16 / (1,H)-layout) from prepare_params()."""
    B, D = x.shape
    D_pad = w1.shape[0]
    H = w2.shape[1]

    # Batch tile: multiple of 8 (sublane), capped at 128.
    TB = min(128, _round_up(max(B, 1), 8))
    B_pad = _round_up(B, TB)

    if D_pad != D:
        x = jnp.pad(x, ((0, 0), (0, D_pad - D)))
    if B_pad != B:
        x = jnp.pad(x, ((0, B_pad - B), (0, 0)))

    out = pl.pallas_call(
        _encoder_kernel,
        out_shape=jax.ShapeDtypeStruct((B_pad, 1), jnp.float32),
        grid=(B_pad // TB,),
        in_specs=[
            pl.BlockSpec((TB, D_pad), lambda i: (i, 0)),      # x tile
            pl.BlockSpec((D_pad, D_pad), lambda i: (0, 0)),   # w1 (resident)
            pl.BlockSpec((1, D_pad), lambda i: (0, 0)),       # b1
            pl.BlockSpec((D_pad, H), lambda i: (0, 0)),       # w2 (resident)
            pl.BlockSpec((1, H), lambda i: (0, 0)),           # b2
            pl.BlockSpec((1, H), lambda i: (0, 0)),           # w3 as (1, H)
            pl.BlockSpec((1, 1), lambda i: (0, 0)),           # b3
        ],
        out_specs=pl.BlockSpec((TB, 1), lambda i: (i, 0)),
        compiler_params=pltpu.CompilerParams(
            dimension_semantics=("parallel",)),
    )(x, w1, b1, w2, b2, w3, b3)

    return out[:B]


def init_params(key, D, H):
    """Deterministic params, PyTorch nn.Linear-style uniform(-1/sqrt(fan_in)),
    in the natural (in, out) layout (w3 is (H, 1))."""
    ks = jax.random.split(key, 6)

    def lin(kw, kb, fan_in, fan_out):
        bound = 1.0 / jnp.sqrt(jnp.float32(fan_in))
        w = jax.random.uniform(kw, (fan_in, fan_out), jnp.float32, -bound, bound)
        b = jax.random.uniform(kb, (1, fan_out), jnp.float32, -bound, bound)
        return w, b

    w1, b1 = lin(ks[0], ks[1], D, D)
    w2, b2 = lin(ks[2], ks[3], D, H)
    w3, b3 = lin(ks[4], ks[5], H, 1)
    return w1, b1, w2, b2, w3, b3


def prepare_params(w1, b1, w2, b2, w3, b3):
    """One-time prep: pad D up to a multiple of 128 (exact: padded rows/cols
    are zero), cast the matmul weights to bf16, and store w3 as (1, H) f32
    for the VPU reduce."""
    D = w1.shape[0]
    H = w2.shape[1]
    D_pad = _round_up(D, 128)

    w1p = jnp.zeros((D_pad, D_pad), jnp.bfloat16)
    w1p = w1p.at[:D, :D].set(w1.astype(jnp.bfloat16))
    b1p = jnp.zeros((1, D_pad), jnp.float32).at[:, :D].set(b1)

    w2p = jnp.zeros((D_pad, H), jnp.bfloat16)
    w2p = w2p.at[:D, :].set(w2.astype(jnp.bfloat16))
    b2p = b2.astype(jnp.float32)

    w3p = w3.reshape(1, H).astype(jnp.float32)   # (1, H) for mul + lane reduce
    b3p = b3.astype(jnp.float32)                 # (1, 1)
    return w1p, b1p, w2p, b2p, w3p, b3p


def reference_forward_f32(x, w1, b1, w2, b2, w3, b3):
    h1 = jnp.maximum(x @ w1 + b1, 0.0)
    h2 = jnp.maximum(h1 @ w2 + b2, 0.0)
    return jax.nn.sigmoid(h2 @ w3 + b3)


def reference_forward_bf16(x, w1, b1, w2, b2, w3, b3):
    """Same bf16-in / f32-accumulate recipe as the kernel (tight check)."""
    h1 = jnp.dot(x.astype(jnp.bfloat16), w1.astype(jnp.bfloat16),
                 preferred_element_type=jnp.float32)
    h1 = jnp.maximum(h1 + b1, 0.0)
    h2 = jnp.dot(h1.astype(jnp.bfloat16), w2.astype(jnp.bfloat16),
                 preferred_element_type=jnp.float32)
    h2 = jnp.maximum(h2 + b2, 0.0)
    return jax.nn.sigmoid(h2 @ w3 + b3)


if __name__ == "__main__":
    key = jax.random.PRNGKey(0)
    kx, kp = jax.random.split(key)

    B = 200      # batch (exercises the B % TB != 0 pad/slice path)
    D = 32       # X_tr.shape[1] (input feature dim; layers[0] == D)
    H = 4096     # layers[1] from the module

    x = jax.random.normal(kx, (B, D), jnp.float32)
    params = init_params(kp, D, H)
    prepped = prepare_params(*params)

    out = encoder_forward(x, *prepped)
    out = jax.block_until_ready(out)
    assert out.shape == (B, 1), out.shape

    ref32 = reference_forward_f32(x, *params)
    ref16 = reference_forward_bf16(x, *params)
    # Loose tolerance vs. pure-f32 reference (bf16 weight/activation drift),
    # tight tolerance vs. the bf16-matched reference.
    assert jnp.allclose(out, ref32, atol=2e-2, rtol=0.0), (
        float(jnp.max(jnp.abs(out - ref32))))
    assert jnp.allclose(out, ref16, atol=1e-3, rtol=0.0), (
        float(jnp.max(jnp.abs(out - ref16))))

    print("KERNEL_OK")
</pallas_src>

<mosaic_0001>
module attributes {stable_mosaic.version = 11 : i64} {
  func.func @_encoder_kernel(%arg0: i32, %arg1: memref<128x128xf32, #tpu.memory_space<vmem>>, %arg2: memref<128x128xbf16, #tpu.memory_space<vmem>>, %arg3: memref<1x128xf32, #tpu.memory_space<vmem>>, %arg4: memref<128x4096xbf16, #tpu.memory_space<vmem>>, %arg5: memref<1x4096xf32, #tpu.memory_space<vmem>>, %arg6: memref<1x4096xf32, #tpu.memory_space<vmem>>, %arg7: memref<1x1xf32, #tpu.memory_space<vmem>>, %arg8: memref<128x1xf32, #tpu.memory_space<vmem>>) attributes {dimension_semantics = [#tpu.dimension_semantics<parallel>], iteration_bounds = array<i64: 2>, scalar_prefetch = 0 : i64, scratch_operands = 0 : i64, tpu.core_type = #tpu.core_type<tc>, window_params = [{transform_indices = @transform_0, window_bounds = array<i64: 128, 128>}, {pipeline_mode = #tpu.pipeline_mode<synchronous>, transform_indices = @transform_1, window_bounds = array<i64: 128, 128>}, {pipeline_mode = #tpu.pipeline_mode<synchronous>, transform_indices = @transform_2, window_bounds = array<i64: 1, 128>}, {pipeline_mode = #tpu.pipeline_mode<synchronous>, transform_indices = @transform_3, window_bounds = array<i64: 128, 4096>}, {pipeline_mode = #tpu.pipeline_mode<synchronous>, transform_indices = @transform_4, window_bounds = array<i64: 1, 4096>}, {pipeline_mode = #tpu.pipeline_mode<synchronous>, transform_indices = @transform_5, window_bounds = array<i64: 1, 4096>}, {pipeline_mode = #tpu.pipeline_mode<synchronous>, transform_indices = @transform_6, window_bounds = array<i64: 1, 1>}, {transform_indices = @transform_7, window_bounds = array<i64: 128, 1>}]} {
    %c0 = arith.constant 0 : index
    %c0_0 = arith.constant 0 : index
    %0 = vector.load %arg1[%c0, %c0_0] : memref<128x128xf32, #tpu.memory_space<vmem>>, vector<128x128xf32>
    %1 = arith.truncf %0 : vector<128x128xf32> to vector<128x128xbf16>
    %c0_1 = arith.constant 0 : index
    %c0_2 = arith.constant 0 : index
    %2 = vector.load %arg2[%c0_1, %c0_2] : memref<128x128xbf16, #tpu.memory_space<vmem>>, vector<128x128xbf16>
    %cst = arith.constant dense<0.000000e+00> : vector<128x128xf32>
    %3 = tpu.matmul %1, %2, %cst {dimension_numbers = #tpu.dot_dimension_numbers<[1], [0], [0], [1], [0, 0, 1, 1], [], []>} : vector<128x128xbf16>, vector<128x128xbf16>, vector<128x128xf32> -> vector<128x128xf32>
    %c0_3 = arith.constant 0 : index
    %c0_4 = arith.constant 0 : index
    %4 = vector.load %arg3[%c0_3, %c0_4] : memref<1x128xf32, #tpu.memory_space<vmem>>, vector<1x128xf32>
    %5 = vector.broadcast %4 : vector<1x128xf32> to vector<128x128xf32>
    %6 = arith.addf %3, %5 : vector<128x128xf32>
    %cst_5 = arith.constant 0.000000e+00 : f32
    %7 = vector.broadcast %cst_5 : f32 to vector<128x128xf32>
    %8 = arith.maximumf %6, %7 : vector<128x128xf32>
    %9 = arith.truncf %8 : vector<128x128xf32> to vector<128x128xbf16>
    %c0_6 = arith.constant 0 : index
    %c0_7 = arith.constant 0 : index
    %10 = vector.load %arg4[%c0_6, %c0_7] : memref<128x4096xbf16, #tpu.memory_space<vmem>>, vector<128x4096xbf16>
    %cst_8 = arith.constant dense<0.000000e+00> : vector<128x4096xf32>
    %11 = tpu.matmul %9, %10, %cst_8 {dimension_numbers = #tpu.dot_dimension_numbers<[1], [0], [0], [1], [0, 0, 1, 1], [], []>} : vector<128x128xbf16>, vector<128x4096xbf16>, vector<128x4096xf32> -> vector<128x4096xf32>
    %c0_9 = arith.constant 0 : index
    %c0_10 = arith.constant 0 : index
    %12 = vector.load %arg5[%c0_9, %c0_10] : memref<1x4096xf32, #tpu.memory_space<vmem>>, vector<1x4096xf32>
    %13 = vector.broadcast %12 : vector<1x4096xf32> to vector<128x4096xf32>
    %14 = arith.addf %11, %13 : vector<128x4096xf32>
    %cst_11 = arith.constant 0.000000e+00 : f32
    %15 = vector.broadcast %cst_11 : f32 to vector<128x4096xf32>
    %16 = arith.maximumf %14, %15 : vector<128x4096xf32>
    %c0_12 = arith.constant 0 : index
    %c0_13 = arith.constant 0 : index
    %17 = vector.load %arg6[%c0_12, %c0_13] : memref<1x4096xf32, #tpu.memory_space<vmem>>, vector<1x4096xf32>
    %18 = vector.broadcast %17 : vector<1x4096xf32> to vector<128x4096xf32>
    %19 = arith.mulf %16, %18 : vector<128x4096xf32>
    %cst_14 = arith.constant dense<0.000000e+00> : vector<128xf32>
    %20 = vector.multi_reduction <add>, %19, %cst_14 [1] : vector<128x4096xf32> to vector<128xf32>
    %21 = vector.shape_cast %20 : vector<128xf32> to vector<128x1xf32>
    %c0_15 = arith.constant 0 : index
    %c0_16 = arith.constant 0 : index
    %22 = vector.load %arg7[%c0_15, %c0_16] : memref<1x1xf32, #tpu.memory_space<vmem>>, vector<1x1xf32>
    %23 = vector.broadcast %22 : vector<1x1xf32> to vector<128x1xf32>
    %24 = arith.addf %21, %23 : vector<128x1xf32>
    %25 = arith.negf %24 : vector<128x1xf32>
    %26 = math.exp %25 : vector<128x1xf32>
    %cst_17 = arith.constant 1.000000e+00 : f32
    %27 = vector.broadcast %cst_17 : f32 to vector<128x1xf32>
    %28 = arith.addf %27, %26 : vector<128x1xf32>
    %29 = arith.divf %27, %28 : vector<128x1xf32>
    %c0_18 = arith.constant 0 : index
    %c0_19 = arith.constant 0 : index
    %30 = vector.load %arg8[%c0_18, %c0_19] : memref<128x1xf32, #tpu.memory_space<vmem>>, vector<128x1xf32>
    tpu.vector_store %arg8[%c0_18, %c0_19], %29 {strides = array<i32>} : memref<128x1xf32, #tpu.memory_space<vmem>>, vector<128x1xf32>,
    return
  }
  func.func @transform_0(%arg0: i32) -> (i32, i32) {
    %c0_i32 = arith.constant 0 : i32
    %c0_i32_0 = arith.constant 0 : i32
    return %arg0, %c0_i32 : i32, i32
  }
  func.func @transform_1(%arg0: i32) -> (i32, i32) {
    %c0_i32 = arith.constant 0 : i32
    %c0_i32_0 = arith.constant 0 : i32
    %c0_i32_1 = arith.constant 0 : i32
    return %c0_i32, %c0_i32_0 : i32, i32
  }
  func.func @transform_2(%arg0: i32) -> (i32, i32) {
    %c0_i32 = arith.constant 0 : i32
    %c0_i32_0 = arith.constant 0 : i32
    %c0_i32_1 = arith.constant 0 : i32
    return %c0_i32, %c0_i32_0 : i32, i32
  }
  func.func @transform_3(%arg0: i32) -> (i32, i32) {
    %c0_i32 = arith.constant 0 : i32
    %c0_i32_0 = arith.constant 0 : i32
    %c0_i32_1 = arith.constant 0 : i32
    return %c0_i32, %c0_i32_0 : i32, i32
  }
  func.func @transform_4(%arg0: i32) -> (i32, i32) {
    %c0_i32 = arith.constant 0 : i32
    %c0_i32_0 = arith.constant 0 : i32
    %c0_i32_1 = arith.constant 0 : i32
    return %c0_i32, %c0_i32_0 : i32, i32
  }
  func.func @transform_5(%arg0: i32) -> (i32, i32) {
    %c0_i32 = arith.constant 0 : i32
    %c0_i32_0 = arith.constant 0 : i32
    %c0_i32_1 = arith.constant 0 : i32
    return %c0_i32, %c0_i32_0 : i32, i32
  }
  func.func @transform_6(%arg0: i32) -> (i32, i32) {
    %c0_i32 = arith.constant 0 : i32
    %c0_i32_0 = arith.constant 0 : i32
    %c0_i32_1 = arith.constant 0 : i32
    return %c0_i32, %c0_i32_0 : i32, i32
  }
  func.func @transform_7(%arg0: i32) -> (i32, i32) {
    %c0_i32 = arith.constant 0 : i32
    %c0_i32_0 = arith.constant 0 : i32
    return %arg0, %c0_i32 : i32, i32
  }
}

</mosaic_0001>

<bundles_post_ra>
// kernel: encoder_forward.1
= control target key start
LH: loop header
LB: loop body
LE: loop exit
PB: predicated region body
PF: predicated region fallthrough
CT: control target
= control target key end

     0   :  { %s9976_s0 = inlined_call_operand.vmem [shape: f32[256,128], index: 0, kind: input, shape index: {}]   ;;  %s9977_s1 = inlined_call_operand.vmem [shape: bf16[128,128], index: 1, kind: input, shape index: {}]   ;;  %s9978_s2 = inlined_call_operand.vmem [shape: f32[1,128], index: 2, kind: input, shape index: {}]   ;;  %s9979_s3 = inlined_call_operand.hbm [shape: bf16[128,4096], index: 3, kind: input, shape index: {}]   ;;  %s9980_s4 = inlined_call_operand.vmem [shape: f32[1,4096], index: 4, kind: input, shape index: {}]   ;;  %s9981_s5 = inlined_call_operand.vmem [shape: f32[1,4096], index: 5, kind: input, shape index: {}]   ;;  %s9982_s6 = inlined_call_operand.<no memory space> [shape: f32[1,1], index: 6, kind: input, shape index: {}]   ;;  %s9983_s7 = inlined_call_operand.vmem [shape: f32[256,1], index: 7, kind: output, shape index: {}]  }
   0x1   :  { %v12_v0 = vstv %s9982_s6 }
   0x2   :  { %13 = vst [vmem:[#allocation2] sm:$0x1] %v12_v0 }
   0x3   :  { %14 = vsyncpa [#allocation4], 0  ;;  %s6494_s26 = smov 0  }
   0x4 LB: > { %s5952_s27 = sadd.s32 4294967295, %s6445_s26   ;;  %p5954_p0 = scmp.ge.s32.totalorder %s6445_s26, 1  ;;  %s6445_s26 = sphi %s6494_s26, %s20_s26  }
   0x5   : > { %p203_p1 = scmp.lt.s32.totalorder %s6445_s26, 3  ;;  %s6447_s28 = smov [#allocation3]  }
   0x6   : > { %s221_s29 = sshll.u32 %s6447_s28, 4  ;;  %p6508_p3 = scmp.eq.s32.totalorder %s5952_s27, 0  ;;  %s222_s29 = int_to_ptr.vmem [resolvable:$true] %s221_s29 }
   0x7   : > { %p6502_p2 = pnand %p5954_p0, %p203_p1  ;;  %s6407_s11 = scalar_lea.hbm %s9979_s3, 32768 }
   0x8   : > { %s10116_s30 = scalar_select %p6508_p3, 1, 0 }
   0x9   : > { %s10115_s6 = scalar_select %p6502_p2, 1, 0 }
   0xa   : > { %p6315_p4 = pneg %p6502_p2  ;;  %p6408_p6 = scmp.ne.s32.totalorder %s9979_s3, %s6407_s11 }
   0xb   : > { %p6414_p10 = scmp.lt.u32.totalorder %s6407_s11, %s9979_s3 }
   0xc   : > { %p6516_p5 = pnand %p6508_p3, %p6315_p4 }
   0xe   : > { %p6409_p7 = pneg %p6516_p5 }
  0x10   : > { %p6410_p8 = pnand %p6409_p7, %p6408_p6 }
  0x12   : > { %p6411_p9 = pneg %p6410_p8 }
  0x14   : > { %p6416_p11 = pnand %p6414_p10, %p6411_p9 }
  0x16   : > { %6419 = shalt.err (!%p6416_p11)
}
  0x17   : > { %s6420_s16 = scalar_lea.vmem %s222_s29, 32768  ;;  %p6428_p1 = scmp.lt.s32.totalorder %s222_s29, %s222_s29 }
  0x18   : > { %p6421_p12 = scmp.ne.s32.totalorder %s222_s29, %s6420_s16  ;;  %p6429_p4 = scmp.lt.s32.totalorder %s6420_s16, %s6420_s16 }
  0x1a   : > { %p6423_p13 = pnand %p6421_p12, %p6409_p7  ;;  %p6430_p3 = por %p6429_p4, %p6428_p1 }
  0x1c   : > { %p6424_p0 = pneg %p6423_p13 }
  0x1e   : > { %p6431_p2 = pnand %p6430_p3, %p6424_p0 }
  0x20   : > { %6434 = shalt.err (!%p6431_p2)
}
  0x21   : > { %s6448_s17 = smov 2048   ;;  %s6449_s18 = smov 128  }
  0x22   : > { %6318 = dma.hbm_to_vmem [thread:$0]  (!%p6516_p5), %s9979_s3, 32768, %s222_s29, [#allocation4], %s6448_s17, %s6448_s17, %s6449_s18  }
  0x23   : > { %p10118_p6 = scmp.ne.s32.totalorder %s10115_s6, 0 }
  0x25   : > { %255 = sbr.rel (%p10118_p6) target bundleno = 1245 (0x4dd), region = 48 }
  0x2c   : > { %p10119_p8 = scmp.ne.s32.totalorder %s10116_s30, 0 }
  0x2e   : > { %6440 = dma.done.wait (%p10119_p8), [#allocation4], 32768  }
  0x2f   : > { %6442 = vsyncadd (%p10119_p8), [#allocation4], 4294934528  ;;  %s5959_s21 = sshll.u32 %s5952_s27, 4  ;;  %v6333_v1 = vld [vmem:[%s9977_s1] sm:$0xff]   ;;  %v6334_v2 = vld [vmem:[%s9977_s1 + $0x8] sm:$0xff]   ;;  %vm5867_vm0 = vcmask 7168  }
  0x30   : > { %p288_p2 = scmp.lt.s32.totalorder %s5959_s21, 31  ;;  %6263 = vmatprep.subr.bf16.mxu0 %v6333_v1  ;;  %v6335_v3 = vld [vmem:[%s9977_s1 + $0x10] sm:$0xff]   ;;  %v6336_v4 = vld [vmem:[%s9977_s1 + $0x18] sm:$0xff]   ;;  %v6337_v8 = vld [vmem:[%s9977_s1 + $0x20] sm:$0xff]  }
  0x31   : > { %6264 = vmatpush3.bf16.msra.mxu0 %v6333_v1  ;;  %v516_v9 = vld [vmem:[#allocation3] sm:$0xff]  ;;  %v6339_v23 = vld [vmem:[%s9977_s1 + $0x30] sm:$0xff]   ;;  %v6340_v28 = vld [vmem:[%s9977_s1 + $0x38] sm:$0xff]  }
  0x32   : > { %s10382_s21 = smov (!%p288_p2, %s5959_s21), 31  ;;  %6265 = vmatprep.subr.bf16.mxu0 %v6334_v2  ;;  %v532_v10 = vld [vmem:[#allocation3 + $0x80] sm:$0xff]  ;;  %v517_v29 = vld [vmem:[#allocation3 + $0x8] sm:$0xff] }
  0x33   : > { %s5960_s28 = sshll.u32 %s10382_s21, 3  ;;  %v5973_v11 = vcombine.high %v516_v9, %v532_v10  ;;  %v5972_v12 = vcombine.low %v516_v9, %v532_v10  ;;  %v548_v13 = vld [vmem:[#allocation3 + $0x100] sm:$0xff]  ;;  %v533_v30 = vld [vmem:[#allocation3 + $0x88] sm:$0xff] }
  0x34   : > { %s6561_s8 = scalar_lea.vmem %s9976_s0, %s5960_s28  ;;  %v564_v14 = vld [vmem:[#allocation3 + $0x180] sm:$0xff]  ;;  %v5975_v39 = vcombine.high %v517_v29, %v533_v30  ;;  %v549_v40 = vld [vmem:[#allocation3 + $0x108] sm:$0xff]  ;;  %v5974_v46 = vcombine.low %v517_v29, %v533_v30  ;;  %s9930_s23 = scalar_lea.vmem %s9983_s7, %s5960_s28 }
  0x35   : > { %6266 = vmatpush3.bf16.msra.mxu0 %v6334_v2  ;;  %v300_v5 = vld [vmem:[%s6561_s8] sm:$0xff]  ;;  %v301_v6 = vld [vmem:[%s6561_s8 + $0x8] sm:$0xff]  ;;  %2220 = vmatprep.subr.bf16.mxu1 %v5973_v11  ;;  %v6005_v16 = vcombine.high %v548_v13, %v564_v14  ;;  %v6004_v19 = vcombine.low %v548_v13, %v564_v14  ;;  %v302_v32 = vld [vmem:[%s6561_s8 + $0x10] sm:$0xff] }
  0x36   : > { %6267 = vmatprep.subr.bf16.mxu0 %v6335_v3  ;;  %v316_v7 = vpack.c.bf16 %v301_v6, %v300_v5  ;;  %v6338_v15 = vld [vmem:[%s9977_s1 + $0x28] sm:$0xff]   ;;  %2221 = vmatpush1.bf16.msra.mxu1 %v5972_v12  ;;  %v303_v34 = vld [vmem:[%s6561_s8 + $0x18] sm:$0xff]  ;;  %v304_v37 = vld [vmem:[%s6561_s8 + $0x20] sm:$0xff] }
  0x37   : > { %v580_v17 = vld [vmem:[#allocation3 + $0x200] sm:$0xff]  ;;  %2222 = vmatprep.subr.bf16.mxu1 %v6005_v16  ;;  %v565_v41 = vld [vmem:[#allocation3 + $0x188] sm:$0xff]  ;;  %v317_v43 = vpack.c.bf16 %v303_v34, %v302_v32  ;;  %v307_v52 = vld [vmem:[%s6561_s8 + $0x38] sm:$0xff] }
  0x38   : > { %6279 = vmatprep.mubr.bf16.mxu0 %v316_v7  ;;  %v596_v18 = vld [vmem:[#allocation3 + $0x280] sm:$0xff]  ;;  %v6007_v47 = vcombine.high %v549_v40, %v565_v41  ;;  %v581_v48 = vld [vmem:[#allocation3 + $0x208] sm:$0xff]  ;;  %v6006_v53 = vcombine.low %v549_v40, %v565_v41  ;;  %v311_v2 = vld [vmem:[%s6561_s8 + $0x58] sm:$0xff] }
  0x39   : > { %6268 = vmatpush3.bf16.msra.mxu0 %v6335_v3  ;;  %v6037_v20 = vcombine.high %v580_v17, %v596_v18  ;;  %v612_v21 = vld [vmem:[#allocation3 + $0x300] sm:$0xff]  ;;  %v6036_v24 = vcombine.low %v580_v17, %v596_v18  ;;  %v597_v49 = vld [vmem:[#allocation3 + $0x288] sm:$0xff]  ;;  %v315_v14 = vld [vmem:[%s6561_s8 + $0x78] sm:$0xff] }
  0x3a   : > { %6269 = vmatprep.subr.bf16.mxu0 %v6336_v4  ;;  %v628_v22 = vld [vmem:[#allocation3 + $0x380] sm:$0xff]  ;;  %2223 = vmatpush1.bf16.msra.mxu1 %v6004_v19  ;;  %v306_v51 = vld [vmem:[%s6561_s8 + $0x30] sm:$0xff]  ;;  %v6039_v56 = vcombine.high %v581_v48, %v597_v49  ;;  %v6038_v61 = vcombine.low %v581_v48, %v597_v49 }
  0x3b   : > { %2224 = vmatprep.subr.bf16.mxu1 %v6037_v20  ;;  %v6069_v25 = vcombine.high %v612_v21, %v628_v22  ;;  %v644_v26 = vld [vmem:[#allocation3 + $0x400] sm:$0xff]  ;;  %v6068_v31 = vcombine.low %v612_v21, %v628_v22  ;;  %v613_v57 = vld [vmem:[#allocation3 + $0x308] sm:$0xff]  ;;  %v319_v59 = vpack.c.bf16 %v307_v52, %v306_v51  ;;  %v534_v34 = vld [vmem:[#allocation3 + $0x90] sm:$0xff] }
  0x3c   : > { %v660_v27 = vld [vmem:[#allocation3 + $0x480] sm:$0xff]  ;;  %v629_v58 = vld [vmem:[#allocation3 + $0x388] sm:$0xff] }
  0x3d   : > { %6270 = vmatpush3.bf16.msra.mxu0 %v6336_v4  ;;  %v6101_v33 = vcombine.high %v644_v26, %v660_v27  ;;  %v676_v35 = vld [vmem:[#allocation3 + $0x500] sm:$0xff]  ;;  %v6100_v42 = vcombine.low %v644_v26, %v660_v27  ;;  %v6071_v62 = vcombine.high %v613_v57, %v629_v58  ;;  %v645_v63 = vld [vmem:[#allocation3 + $0x408] sm:$0xff]  ;;  %v6070_v3 = vcombine.low %v613_v57, %v629_v58  ;;  %v551_v58 = vld [vmem:[#allocation3 + $0x118] sm:$0xff] }
  0x3e   : > { %6271 = vmatprep.subr.bf16.mxu0 %v6337_v8  ;;  %2225 = vmatpush1.bf16.msra.mxu1 %v6036_v24  ;;  %v692_v36 = vld [vmem:[#allocation3 + $0x580] sm:$0xff]  ;;  %v661_v0 = vld [vmem:[#allocation3 + $0x488] sm:$0xff] }
  0x3f   : > { %2226 = vmatprep.subr.bf16.mxu1 %v6069_v25  ;;  %v305_v38 = vld [vmem:[%s6561_s8 + $0x28] sm:$0xff]  ;;  %v6133_v44 = vcombine.high %v676_v35, %v692_v36  ;;  %v6132_v50 = vcombine.low %v676_v35, %v692_v36  ;;  %v308_v54 = vld [vmem:[%s6561_s8 + $0x40] sm:$0xff]  ;;  %v310_v1 = vld [vmem:[%s6561_s8 + $0x50] sm:$0xff]  ;;  %v6103_v6 = vcombine.high %v645_v63, %v661_v0  ;;  %v6102_v11 = vcombine.low %v645_v63, %v661_v0 }
  0x40   : > { %v318_v45 = vpack.c.bf16 %v305_v38, %v304_v37  ;;  %v309_v55 = vld [vmem:[%s6561_s8 + $0x48] sm:$0xff]  ;;  %v312_v4 = vld [vmem:[%s6561_s8 + $0x60] sm:$0xff]  ;;  %v321_v9 = vpack.c.bf16 %v311_v2, %v310_v1  ;;  %v314_v13 = vld [vmem:[%s6561_s8 + $0x70] sm:$0xff]  ;;  %v9987_v35 = vmov 0  }
  0x41   : > { %6272 = vmatpush3.bf16.msra.mxu0 %v6337_v8  ;;  %v320_v60 = vpack.c.bf16 %v309_v55, %v308_v54  ;;  %v313_v5 = vld [vmem:[%s6561_s8 + $0x68] sm:$0xff]  ;;  %v323_v16 = vpack.c.bf16 %v315_v14, %v314_v13  ;;  %2252 = vmatprep.mubr.bf16.mxu1 %v9987_v35  ;;  %v519_v38 = vld [vmem:[#allocation3 + $0x18] sm:$0xff]  ;;  %v566_v54 = vld [vmem:[#allocation3 + $0x190] sm:$0xff] }
  0x42   : > { %6273 = vmatprep.subr.bf16.mxu0 %v6338_v15  ;;  %2227 = vmatpush1.bf16.msra.mxu1 %v6068_v31  ;;  %v677_v7 = vld [vmem:[#allocation3 + $0x508] sm:$0xff]  ;;  %v322_v10 = vpack.c.bf16 %v313_v5, %v312_v4  ;;  %v708_v17 = vld [vmem:[#allocation3 + $0x600] sm:$0xff]  ;;  %v582_v1 = vld [vmem:[#allocation3 + $0x210] sm:$0xff] }
  0x43   : > { %2228 = vmatprep.subr.bf16.mxu1 %v6101_v33  ;;  %v693_v8 = vld [vmem:[#allocation3 + $0x588] sm:$0xff]  ;;  %v724_v18 = vld [vmem:[#allocation3 + $0x680] sm:$0xff]  ;;  %v518_v33 = vld [vmem:[#allocation3 + $0x10] sm:$0xff] }
  0x44   : > { %v6135_v12 = vcombine.high %v677_v7, %v693_v8  ;;  %v709_v19 = vld [vmem:[#allocation3 + $0x608] sm:$0xff]  ;;  %v6165_v20 = vcombine.high %v708_v17, %v724_v18  ;;  %v6164_v22 = vcombine.low %v708_v17, %v724_v18  ;;  %v740_v25 = vld [vmem:[#allocation3 + $0x700] sm:$0xff]  ;;  %v5976_v36 = vcombine.low %v518_v33, %v534_v34  ;;  %v598_v2 = vld [vmem:[#allocation3 + $0x290] sm:$0xff] }
  0x45   : > { %6274 = vmatpush3.bf16.msra.mxu0 %v6338_v15  ;;  %v6134_v15 = vcombine.low %v677_v7, %v693_v8  ;;  %v725_v21 = vld [vmem:[#allocation3 + $0x688] sm:$0xff]  ;;  %v756_v26 = vld [vmem:[#allocation3 + $0x780] sm:$0xff]  ;;  %v5977_v37 = vcombine.high %v518_v33, %v534_v34  ;;  %v614_v18 = vld [vmem:[#allocation3 + $0x310] sm:$0xff] }
  0x46   : > { %6275 = vmatprep.subr.bf16.mxu0 %v6339_v23  ;;  %2229 = vmatpush1.bf16.msra.mxu1 %v6100_v42  ;;  %v6167_v24 = vcombine.high %v709_v19, %v725_v21  ;;  %v741_v27 = vld [vmem:[#allocation3 + $0x708] sm:$0xff]  ;;  %v6196_v30 = vcombine.low %v740_v25, %v756_v26  ;;  %v6599_v42 = vld [vmem:[%s9978_s2] ss:$0 sm:$0xff]  ;;  %v646_v33 = vld [vmem:[#allocation3 + $0x410] sm:$0xff] }
  0x47   : > { %2230 = vmatprep.subr.bf16.mxu1 %v6133_v44  ;;  %v757_v29 = vld [vmem:[#allocation3 + $0x788] sm:$0xff]  ;;  %v662_v34 = vld [vmem:[#allocation3 + $0x490] sm:$0xff] }
  0x48   : > { %v6198_v31 = vcombine.low %v741_v27, %v757_v29  ;;  %v6199_v32 = vcombine.high %v741_v27, %v757_v29 }
  0x49   : > { %6276 = vmatpush3.bf16.msra.mxu0 %v6339_v23  ;;  %v6166_v23 = vcombine.low %v709_v19, %v725_v21  ;;  %v630_v19 = vld [vmem:[#allocation3 + $0x390] sm:$0xff]  ;;  %v615_v21 = vld [vmem:[#allocation3 + $0x318] sm:$0xff] }
  0x4a   : > { %6277 = vmatprep.subr.bf16.mxu0 %v6340_v28  ;;  %2231 = vmatpush1.bf16.msra.mxu1 %v6132_v50  ;;  %v6073_v29 = vcombine.high %v614_v18, %v630_v19 }
  0x4b   : > { %2232 = vmatprep.subr.bf16.mxu1 %v6165_v20 }
  0x4d   : > { %6278 = vmatpush3.bf16.msra.mxu0 %v6340_v28  ;;  %v6197_v28 = vcombine.high %v740_v25, %v756_v26 }
  0x4e   : > { %2333 = vmatprep.subr.bf16.mxu0 %v5975_v39  ;;  %2233 = vmatpush1.bf16.msra.mxu1 %v6164_v22  ;;  %v535_v39 = vld [vmem:[#allocation3 + $0x98] sm:$0xff] }
  0x4f   : > { %2234 = vmatprep.subr.bf16.mxu1 %v6197_v28  ;;  %v5978_v40 = vcombine.low %v519_v38, %v535_v39  ;;  %v5979_v41 = vcombine.high %v519_v38, %v535_v39  ;;  %v631_v22 = vld [vmem:[#allocation3 + $0x398] sm:$0xff] }
  0x50   : > { %6280 = vmatmul.mubr.bf16.vlgmr.msra.gmra.mrb[0].mxu0 %v317_v43 }
  0x51   : > { %6283 = vmatprep.mubr.bf16.mxu0 %v318_v45  ;;  %2334 = vmatpush1.bf16.msra.mxu0 %v5974_v46 }
  0x52   : > { %2335 = vmatprep.subr.bf16.mxu0 %v6007_v47  ;;  %2235 = vmatpush1.bf16.msra.mxu1 %v6196_v30 }
  0x53   : > { %2446 = vmatprep.subr.bf16.mxu1 %v5977_v37 }
  0x55   : > { %2336 = vmatpush1.bf16.msra.mxu0 %v6006_v53  ;;  %v550_v53 = vld [vmem:[#allocation3 + $0x110] sm:$0xff] }
  0x56   : > { %2337 = vmatprep.subr.bf16.mxu0 %v6039_v56 }
  0x58   : > { %6284 = vmatmul.mubr.bf16.gmra.mrb[4].mxu0 %v319_v59  ;;  %v567_v59 = vld [vmem:[#allocation3 + $0x198] sm:$0xff] }
  0x59   : > { %6287 = vmatprep.mubr.bf16.mxu0 %v320_v60  ;;  %2338 = vmatpush1.bf16.msra.mxu0 %v6038_v61  ;;  %v6011_v5 = vcombine.high %v551_v58, %v567_v59  ;;  %v6010_v14 = vcombine.low %v551_v58, %v567_v59 }
  0x5a   : > { %2339 = vmatprep.subr.bf16.mxu0 %v6071_v62  ;;  %v6009_v62 = vcombine.high %v550_v53, %v566_v54 }
  0x5d   : > { %2340 = vmatpush1.bf16.msra.mxu0 %v6070_v3 }
  0x5e   : > { %2341 = vmatprep.subr.bf16.mxu0 %v6103_v6 }
  0x60   : > { %6288 = vmatmul.mubr.bf16.gmra.mrb[8].mxu0 %v321_v9  ;;  %v6008_v9 = vcombine.low %v550_v53, %v566_v54  ;;  %v679_v53 = vld [vmem:[#allocation3 + $0x518] sm:$0xff] }
  0x61   : > { %6291 = vmatprep.mubr.bf16.mxu0 %v322_v10  ;;  %2342 = vmatpush1.bf16.msra.mxu0 %v6102_v11  ;;  %v695_v54 = vld [vmem:[#allocation3 + $0x598] sm:$0xff] }
  0x62   : > { %2343 = vmatprep.subr.bf16.mxu0 %v6135_v12  ;;  %v6041_v12 = vcombine.high %v582_v1, %v598_v2 }
  0x65   : > { %2344 = vmatpush1.bf16.msra.mxu0 %v6134_v15  ;;  %v583_v15 = vld [vmem:[#allocation3 + $0x218] sm:$0xff] }
  0x66   : > { %2345 = vmatprep.subr.bf16.mxu0 %v6167_v24  ;;  %v6040_v24 = vcombine.low %v582_v1, %v598_v2 }
  0x68   : > { %6292 = vmatmul.mubr.bf16.gmra.mrb[12].mxu0 %v323_v16  ;;  %v599_v16 = vld [vmem:[#allocation3 + $0x298] sm:$0xff] }
  0x69   : > { %2346 = vmatpush1.bf16.msra.mxu0 %v6166_v23  ;;  %2365 = vmatprep.mubr.bf16.mxu0 %v9987_v35  ;;  %v6043_v26 = vcombine.high %v583_v15, %v599_v16  ;;  %v6042_v30 = vcombine.low %v583_v15, %v599_v16  ;;  %v711_v15 = vld [vmem:[#allocation3 + $0x618] sm:$0xff] }
  0x6a   : > { %2347 = vmatprep.subr.bf16.mxu0 %v6199_v32  ;;  %v727_v16 = vld [vmem:[#allocation3 + $0x698] sm:$0xff] }
  0x6d   : > { %2348 = vmatpush1.bf16.msra.mxu0 %v6198_v31 }
  0x6e   : > { %2559 = vmatprep.subr.bf16.mxu0 %v5979_v41 }
 0x123   : > { %v6281_v43 = vpop.f32.mrb[0].mxu0 }
 0x124   : > { %v438_v44 = vadd.f32 %v6281_v43, %v6599_v42  ;;  %v429_v45 = vpop.f32.mrb[1].mxu0  ;;  %v6072_v43 = vcombine.low %v614_v18, %v630_v19  ;;  %v742_v18 = vld [vmem:[#allocation3 + $0x710] sm:$0xff] }
 0x125   : > { %v430_v46 = vadd.f32 %v6599_v42, %v429_v45  ;;  %v6282_v47 = vpop.f32.mrb[2].mxu0  ;;  %v6105_v45 = vcombine.high %v646_v33, %v662_v34  ;;  %v758_v19 = vld [vmem:[#allocation3 + $0x790] sm:$0xff] }
 0x126   : > { %v441_v48 = vadd.f32 %v6282_v47, %v6599_v42  ;;  %v432_v49 = vpop.f32.mrb[3].mxu0  ;;  %v494_v51 = vmax.f32 %v438_v44, 0.0  ;;  %v647_v47 = vld [vmem:[#allocation3 + $0x418] sm:$0xff] }
 0x127   : > { %v433_v50 = vadd.f32 %v6599_v42, %v432_v49  ;;  %v492_v55 = vmax.f32 %v430_v46, 0.0  ;;  %v6074_v46 = vcombine.low %v615_v21, %v631_v22 }
 0x128   : > { %v495_v52 = vmax.f32 %v441_v48, 0.0  ;;  %v663_v48 = vld [vmem:[#allocation3 + $0x498] sm:$0xff] }
 0x129   : > { %v493_v56 = vmax.f32 %v433_v50, 0.0  ;;  %v678_v50 = vld [vmem:[#allocation3 + $0x510] sm:$0xff]  ;;  %v6107_v59 = vcombine.high %v647_v47, %v663_v48 }
 0x12a   : > { %v6605_v57 = vpack.c.bf16 %v495_v52, %v494_v51  ;;  %v694_v51 = vld [vmem:[#allocation3 + $0x590] sm:$0xff] }
 0x12b   : > { %v6607_v60 = vpack.c.bf16 %v493_v56, %v492_v55  ;;  %v6285_v61 = vpop.f32.mrb[4].mxu0  ;;  %v6104_v56 = vcombine.low %v646_v33, %v662_v34 }
 0x12c   : > { %10120 = vst [vmem:[#allocation6_spill] sm:$0xff] %v6605_v57  ;;  %v454_v63 = vadd.f32 %v6285_v61, %v6599_v42  ;;  %v445_v0 = vpop.f32.mrb[5].mxu0 }
 0x12d   : > { %10121 = vst [vmem:[#allocation7_spill] sm:$0xff] %v6607_v60  ;;  %2253 = vmatmul.mubr.bf16.vlgmr.msra.gmra.mrb[0].mxu1 %v6607_v60  ;;  %2366 = vmatmul.mubr.bf16.vlgmr.msra.gmra.mrb[16].mxu0 %v6607_v60  ;;  %v446_v3 = vadd.f32 %v6599_v42, %v445_v0  ;;  %v6286_v4 = vpop.f32.mrb[6].mxu0  ;;  %v6106_v0 = vcombine.low %v647_v47, %v663_v48  ;;  %v600_v47 = vld [vmem:[#allocation3 + $0x2a0] sm:$0xff] }
 0x12e   : > { %2447 = vmatpush1.bf16.msra.mxu1 %v5976_v36  ;;  %v498_v6 = vmax.f32 %v454_v63, 0.0  ;;  %v457_v7 = vadd.f32 %v6286_v4, %v6599_v42  ;;  %v448_v8 = vpop.f32.mrb[7].mxu0  ;;  %2262 = vmatprep.mubr.bf16.mxu1 %v9987_v35  ;;  %v6075_v36 = vcombine.high %v615_v21, %v631_v22  ;;  %v6137_v63 = vcombine.high %v678_v50, %v694_v51  ;;  %v726_v4 = vld [vmem:[#allocation3 + $0x690] sm:$0xff]  ;;  %v743_v22 = vld [vmem:[#allocation3 + $0x718] sm:$0xff] }
 0x12f   : > { %v496_v10 = vmax.f32 %v446_v3, 0.0  ;;  %v449_v11 = vadd.f32 %v6599_v42, %v448_v8  ;;  %2375 = vmatprep.mubr.bf16.mxu0 %v9987_v35  ;;  %2448 = vmatprep.subr.bf16.mxu1 %v6009_v62  ;;  %v710_v3 = vld [vmem:[#allocation3 + $0x610] sm:$0xff] }
 0x130   : > { %v499_v13 = vmax.f32 %v457_v7, 0.0  ;;  %2560 = vmatpush1.bf16.msra.mxu0 %v5978_v40 }
 0x131   : > { %v497_v17 = vmax.f32 %v449_v11, 0.0  ;;  %2561 = vmatprep.subr.bf16.mxu0 %v6011_v5  ;;  %v6139_v5 = vcombine.high %v679_v53, %v695_v54  ;;  %v6136_v11 = vcombine.low %v678_v50, %v694_v51 }
 0x132   : > { %v6617_v20 = vpack.c.bf16 %v499_v13, %v498_v6  ;;  %2449 = vmatpush1.bf16.msra.mxu1 %v6008_v9  ;;  %v6169_v13 = vcombine.high %v710_v3, %v726_v4 }
 0x133   : > { %v6619_v23 = vpack.c.bf16 %v497_v17, %v496_v10  ;;  %2450 = vmatprep.subr.bf16.mxu1 %v6041_v12  ;;  %v6289_v25 = vpop.f32.mrb[8].mxu0 }
 0x134   : > { %10122 = vst [vmem:[#allocation8_spill] sm:$0xff] %v6617_v20  ;;  %v470_v27 = vadd.f32 %v6289_v25, %v6599_v42  ;;  %v461_v28 = vpop.f32.mrb[9].mxu0  ;;  %2562 = vmatpush1.bf16.msra.mxu0 %v6010_v14  ;;  %v6138_v14 = vcombine.low %v679_v53, %v695_v54  ;;  %v585_v54 = vld [vmem:[#allocation3 + $0x228] sm:$0xff] }
 0x135   : > { %10123 = vst [vmem:[#allocation9_spill] sm:$0xff] %v6619_v23  ;;  %2263 = vmatmul.mubr.bf16.gmra.mrb[4].mxu1 %v6605_v57  ;;  %2376 = vmatmul.mubr.bf16.gmra.mrb[20].mxu0 %v6605_v57  ;;  %v462_v31 = vadd.f32 %v6599_v42, %v461_v28  ;;  %v6290_v32 = vpop.f32.mrb[10].mxu0  ;;  %v6170_v28 = vcombine.low %v711_v15, %v727_v16 }
 0x136   : > { %2272 = vmatprep.mubr.bf16.mxu1 %v9987_v35  ;;  %2385 = vmatprep.mubr.bf16.mxu0 %v9987_v35  ;;  %v502_v37 = vmax.f32 %v470_v27, 0.0  ;;  %v473_v38 = vadd.f32 %v6290_v32, %v6599_v42  ;;  %v464_v39 = vpop.f32.mrb[11].mxu0  ;;  %v6201_v27 = vcombine.high %v742_v18, %v758_v19  ;;  %v6200_v32 = vcombine.low %v742_v18, %v758_v19  ;;  %v712_v19 = vld [vmem:[#allocation3 + $0x620] sm:$0xff] }
 0x137   : > { %2451 = vmatpush1.bf16.msra.mxu1 %v6040_v24  ;;  %v500_v40 = vmax.f32 %v462_v31, 0.0  ;;  %v465_v41 = vadd.f32 %v6599_v42, %v464_v39  ;;  %2563 = vmatprep.subr.bf16.mxu0 %v6043_v26  ;;  %v759_v24 = vld [vmem:[#allocation3 + $0x798] sm:$0xff]  ;;  %v6171_v26 = vcombine.high %v711_v15, %v727_v16  ;;  %v536_v31 = vld [vmem:[#allocation3 + $0xa0] sm:$0xff] }
 0x138   : > { %v503_v44 = vmax.f32 %v473_v38, 0.0  ;;  %2452 = vmatprep.subr.bf16.mxu1 %v6073_v29  ;;  %2564 = vmatpush1.bf16.msra.mxu0 %v6042_v30  ;;  %v6203_v29 = vcombine.high %v743_v22, %v759_v24  ;;  %v520_v30 = vld [vmem:[#allocation3 + $0x20] sm:$0xff]  ;;  %v6202_v33 = vcombine.low %v743_v22, %v759_v24 }
 0x139   : > { %v501_v49 = vmax.f32 %v465_v41, 0.0  ;;  %2565 = vmatprep.subr.bf16.mxu0 %v6075_v36  ;;  %v5981_v34 = vcombine.high %v520_v30, %v536_v31  ;;  %v521_v36 = vld [vmem:[#allocation3 + $0x28] sm:$0xff]  ;;  %v552_v39 = vld [vmem:[#allocation3 + $0x120] sm:$0xff]  ;;  %v5980_v41 = vcombine.low %v520_v30, %v536_v31 }
 0x13a   : > { %v6629_v52 = vpack.c.bf16 %v503_v44, %v502_v37  ;;  %v537_v37 = vld [vmem:[#allocation3 + $0xa8] sm:$0xff]  ;;  %v728_v22 = vld [vmem:[#allocation3 + $0x6a0] sm:$0xff] }
 0x13b   : > { %v6631_v55 = vpack.c.bf16 %v501_v49, %v500_v40  ;;  %2453 = vmatpush1.bf16.msra.mxu1 %v6072_v43  ;;  %v6293_v58 = vpop.f32.mrb[12].mxu0  ;;  %v5983_v38 = vcombine.high %v521_v36, %v537_v37  ;;  %v568_v40 = vld [vmem:[#allocation3 + $0x1a0] sm:$0xff]  ;;  %v553_v43 = vld [vmem:[#allocation3 + $0x128] sm:$0xff]  ;;  %v5982_v48 = vcombine.low %v521_v36, %v537_v37 }
 0x13c   : > { %10124 = vst [vmem:[#allocation10_spill] sm:$0xff] %v6629_v52  ;;  %2454 = vmatprep.subr.bf16.mxu1 %v6105_v45  ;;  %v486_v61 = vadd.f32 %v6293_v58, %v6599_v42  ;;  %v477_v62 = vpop.f32.mrb[13].mxu0  ;;  %2566 = vmatpush1.bf16.msra.mxu0 %v6074_v46  ;;  %v569_v44 = vld [vmem:[#allocation3 + $0x1a8] sm:$0xff]  ;;  %v6013_v45 = vcombine.high %v552_v39, %v568_v40  ;;  %v584_v46 = vld [vmem:[#allocation3 + $0x220] sm:$0xff] }
 0x13d   : > { %10125 = vst [vmem:[#allocation11_spill] sm:$0xff] %v6631_v55  ;;  %2273 = vmatmul.mubr.bf16.gmra.mrb[8].mxu1 %v6619_v23  ;;  %2386 = vmatmul.mubr.bf16.gmra.mrb[24].mxu0 %v6619_v23  ;;  %v478_v1 = vadd.f32 %v6599_v42, %v477_v62  ;;  %v6294_v2 = vpop.f32.mrb[14].mxu0  ;;  %v6015_v49 = vcombine.high %v553_v43, %v569_v44  ;;  %v616_v58 = vld [vmem:[#allocation3 + $0x320] sm:$0xff]  ;;  %v633_v62 = vld [vmem:[#allocation3 + $0x3a8] sm:$0xff] }
 0x13e   : > { %2282 = vmatprep.mubr.bf16.mxu1 %v9987_v35  ;;  %2395 = vmatprep.mubr.bf16.mxu0 %v9987_v35  ;;  %v506_v6 = vmax.f32 %v486_v61, 0.0  ;;  %v489_v7 = vadd.f32 %v6294_v2, %v6599_v42  ;;  %v480_v8 = vpop.f32.mrb[15].mxu0  ;;  %v6012_v50 = vcombine.low %v552_v39, %v568_v40  ;;  %v6045_v51 = vcombine.high %v584_v46, %v600_v47  ;;  %v617_v61 = vld [vmem:[#allocation3 + $0x328] sm:$0xff]  ;;  %v744_v30 = vld [vmem:[#allocation3 + $0x720] sm:$0xff]  ;;  %v522_v40 = vld [vmem:[#allocation3 + $0x30] sm:$0xff] }
 0x13f   : > { %2455 = vmatpush1.bf16.msra.mxu1 %v6104_v56  ;;  %v504_v9 = vmax.f32 %v478_v1, 0.0  ;;  %v481_v10 = vadd.f32 %v6599_v42, %v480_v8  ;;  %2567 = vmatprep.subr.bf16.mxu0 %v6107_v59  ;;  %v6168_v42 = vcombine.low %v710_v3, %v726_v4  ;;  %v6014_v53 = vcombine.low %v553_v43, %v569_v44  ;;  %v601_v56 = vld [vmem:[#allocation3 + $0x2a8] sm:$0xff]  ;;  %v632_v59 = vld [vmem:[#allocation3 + $0x3a0] sm:$0xff] }
 0x140   : > { %v507_v12 = vmax.f32 %v489_v7, 0.0  ;;  %2456 = vmatprep.subr.bf16.mxu1 %v6137_v63  ;;  %2568 = vmatpush1.bf16.msra.mxu0 %v6106_v0  ;;  %v6044_v63 = vcombine.low %v584_v46, %v600_v47  ;;  %v6047_v0 = vcombine.high %v585_v54, %v601_v56  ;;  %v6077_v1 = vcombine.high %v616_v58, %v632_v59  ;;  %v648_v3 = vld [vmem:[#allocation3 + $0x420] sm:$0xff]  ;;  %v523_v46 = vld [vmem:[#allocation3 + $0x38] sm:$0xff] }
 0x141   : > { %v505_v17 = vmax.f32 %v481_v10, 0.0  ;;  %2569 = vmatprep.subr.bf16.mxu0 %v6139_v5  ;;  %v6046_v2 = vcombine.low %v585_v54, %v601_v56  ;;  %v664_v4 = vld [vmem:[#allocation3 + $0x4a0] sm:$0xff]  ;;  %v6079_v5 = vcombine.high %v617_v61, %v633_v62  ;;  %v6078_v8 = vcombine.low %v617_v61, %v633_v62  ;;  %v665_v10 = vld [vmem:[#allocation3 + $0x4a8] sm:$0xff]  ;;  %v539_v47 = vld [vmem:[#allocation3 + $0xb8] sm:$0xff] }
 0x142   : > { %v6641_v21 = vpack.c.bf16 %v507_v12, %v506_v6  ;;  %v6076_v6 = vcombine.low %v616_v58, %v632_v59  ;;  %v6109_v7 = vcombine.high %v648_v3, %v664_v4  ;;  %v696_v12 = vld [vmem:[#allocation3 + $0x5a0] sm:$0xff]  ;;  %v6108_v15 = vcombine.low %v648_v3, %v664_v4  ;;  %v571_v54 = vld [vmem:[#allocation3 + $0x1b8] sm:$0xff]  ;;  %v586_v58 = vld [vmem:[#allocation3 + $0x230] sm:$0xff] }
 0x143   : > { %v6643_v25 = vpack.c.bf16 %v505_v17, %v504_v9  ;;  %2457 = vmatpush1.bf16.msra.mxu1 %v6136_v11  ;;  %v649_v9 = vld [vmem:[#allocation3 + $0x428] sm:$0xff]  ;;  %v680_v11 = vld [vmem:[#allocation3 + $0x520] sm:$0xff]  ;;  %v602_v59 = vld [vmem:[#allocation3 + $0x2b0] sm:$0xff]  ;;  %v5986_v61 = vcombine.low %v523_v46, %v539_v47 }
 0x144   : > { %10126 = vst [vmem:[#allocation12_spill] sm:$0xff] %v6641_v21  ;;  %2458 = vmatprep.subr.bf16.mxu1 %v6169_v13  ;;  %2570 = vmatpush1.bf16.msra.mxu0 %v6138_v14  ;;  %v681_v13 = vld [vmem:[#allocation3 + $0x528] sm:$0xff]  ;;  %v6111_v16 = vcombine.high %v649_v9, %v665_v10  ;;  %v6141_v17 = vcombine.high %v680_v11, %v696_v12  ;;  %v760_v31 = vld [vmem:[#allocation3 + $0x7a0] sm:$0xff]  ;;  %v603_v3 = vld [vmem:[#allocation3 + $0x2b8] sm:$0xff] }
 0x145   : > { %10127 = vst [vmem:[#allocation13_spill] sm:$0xff] %v6643_v25  ;;  %2283 = vmatmul.mubr.bf16.gmra.mrb[12].mxu1 %v6617_v20  ;;  %2396 = vmatmul.mubr.bf16.gmra.mrb[28].mxu0 %v6617_v20  ;;  %v697_v14 = vld [vmem:[#allocation3 + $0x5a8] sm:$0xff]  ;;  %v6110_v18 = vcombine.low %v649_v9, %v665_v10  ;;  %v6205_v37 = vcombine.high %v744_v30, %v760_v31  ;;  %v618_v4 = vld [vmem:[#allocation3 + $0x330] sm:$0xff] }
 0x146   : > { %2292 = vmatprep.mubr.bf16.mxu1 %v9987_v35  ;;  %2405 = vmatprep.mubr.bf16.mxu0 %v9987_v35  ;;  %v6143_v24 = vcombine.high %v681_v13, %v697_v14  ;;  %v6204_v43 = vcombine.low %v744_v30, %v760_v31  ;;  %v714_v31 = vld [vmem:[#allocation3 + $0x630] sm:$0xff] }
 0x147   : > { %2459 = vmatpush1.bf16.msra.mxu1 %v6168_v42  ;;  %2571 = vmatprep.subr.bf16.mxu0 %v6171_v26  ;;  %v6140_v42 = vcombine.low %v680_v11, %v696_v12  ;;  %v6173_v26 = vcombine.high %v712_v19, %v728_v22  ;;  %v650_v12 = vld [vmem:[#allocation3 + $0x430] sm:$0xff] }
 0x148   : > { %2460 = vmatprep.subr.bf16.mxu1 %v6201_v27  ;;  %2572 = vmatpush1.bf16.msra.mxu0 %v6170_v28  ;;  %v6142_v27 = vcombine.low %v681_v13, %v697_v14  ;;  %v713_v28 = vld [vmem:[#allocation3 + $0x628] sm:$0xff]  ;;  %v666_v13 = vld [vmem:[#allocation3 + $0x4b0] sm:$0xff] }
 0x149   : > { %2573 = vmatprep.subr.bf16.mxu0 %v6203_v29  ;;  %v729_v29 = vld [vmem:[#allocation3 + $0x6a8] sm:$0xff] }
 0x14a   : > { %v6175_v36 = vcombine.high %v713_v28, %v729_v29 }
 0x14b   : > { %2461 = vmatpush1.bf16.msra.mxu1 %v6200_v32  ;;  %v745_v32 = vld [vmem:[#allocation3 + $0x728] sm:$0xff] }
 0x14c   : > { %2574 = vmatpush1.bf16.msra.mxu0 %v6202_v33  ;;  %2672 = vmatprep.subr.bf16.mxu1 %v5981_v34  ;;  %v761_v33 = vld [vmem:[#allocation3 + $0x7a8] sm:$0xff]  ;;  %v6172_v34 = vcombine.low %v712_v19, %v728_v22  ;;  %v667_v19 = vld [vmem:[#allocation3 + $0x4b8] sm:$0xff]  ;;  %v682_v22 = vld [vmem:[#allocation3 + $0x530] sm:$0xff] }
 0x14d   : > { %2293 = vmatmul.mubr.bf16.gmra.mrb[16].mxu1 %v6631_v55  ;;  %2406 = vmatmul.mubr.bf16.gmra.mrb[32].mxu0 %v6631_v55  ;;  %v6207_v39 = vcombine.high %v745_v32, %v761_v33  ;;  %v6206_v44 = vcombine.low %v745_v32, %v761_v33  ;;  %v730_v32 = vld [vmem:[#allocation3 + $0x6b0] sm:$0xff] }
 0x14e   : > { %2302 = vmatprep.mubr.bf16.mxu1 %v9987_v35  ;;  %2415 = vmatprep.mubr.bf16.mxu0 %v9987_v35 }
 0x14f   : > { %2785 = vmatprep.subr.bf16.mxu0 %v5983_v38  ;;  %v6174_v38 = vcombine.low %v713_v28, %v729_v29 }
 0x155   : > { %2303 = vmatmul.mubr.bf16.gmra.mrb[20].mxu1 %v6629_v52  ;;  %2416 = vmatmul.mubr.bf16.gmra.mrb[36].mxu0 %v6629_v52 }
 0x156   : > { %2312 = vmatprep.mubr.bf16.mxu1 %v9987_v35  ;;  %2425 = vmatprep.mubr.bf16.mxu0 %v9987_v35 }
 0x15d   : > { %2313 = vmatmul.mubr.bf16.gmra.mrb[24].mxu1 %v6643_v25  ;;  %2426 = vmatmul.mubr.bf16.gmra.mrb[40].mxu0 %v6643_v25 }
 0x15e   : > { %2322 = vmatprep.mubr.bf16.mxu1 %v9987_v35  ;;  %2435 = vmatprep.mubr.bf16.mxu0 %v9987_v35 }
 0x165   : > { %2323 = vmatmul.mubr.bf16.gmra.mrb[28].mxu1 %v6641_v21  ;;  %2436 = vmatmul.mubr.bf16.gmra.mrb[44].mxu0 %v6641_v21 }
 0x166   : > { %2478 = vmatprep.mubr.bf16.mxu1 %v9987_v35  ;;  %2591 = vmatprep.mubr.bf16.mxu0 %v9987_v35 }
 0x16d   : > { %2479 = vmatmul.mubr.bf16.vlgmr.msra.gmra.mrb[32].mxu1 %v6607_v60  ;;  %2592 = vmatmul.mubr.bf16.vlgmr.msra.gmra.mrb[48].mxu0 %v6607_v60 }
 0x16e   : > { %2673 = vmatpush1.bf16.msra.mxu1 %v5980_v41  ;;  %2488 = vmatprep.mubr.bf16.mxu1 %v9987_v35  ;;  %v538_v41 = vld [vmem:[#allocation3 + $0xb0] sm:$0xff] }
 0x16f   : > { %2601 = vmatprep.mubr.bf16.mxu0 %v9987_v35  ;;  %2674 = vmatprep.subr.bf16.mxu1 %v6013_v45  ;;  %v5985_v45 = vcombine.high %v522_v40, %v538_v41 }
 0x170   : > { %2786 = vmatpush1.bf16.msra.mxu0 %v5982_v48  ;;  %v5987_v48 = vcombine.high %v523_v46, %v539_v47 }
 0x171   : > { %2787 = vmatprep.subr.bf16.mxu0 %v6015_v49  ;;  %v554_v49 = vld [vmem:[#allocation3 + $0x130] sm:$0xff] }
 0x172   : > { %2675 = vmatpush1.bf16.msra.mxu1 %v6012_v50  ;;  %v570_v50 = vld [vmem:[#allocation3 + $0x1b0] sm:$0xff] }
 0x173   : > { %2676 = vmatprep.subr.bf16.mxu1 %v6045_v51  ;;  %v5984_v51 = vcombine.low %v522_v40, %v538_v41  ;;  %v6017_v56 = vcombine.high %v554_v49, %v570_v50  ;;  %v746_v40 = vld [vmem:[#allocation3 + $0x730] sm:$0xff] }
 0x174   : > { %2788 = vmatpush1.bf16.msra.mxu0 %v6014_v53  ;;  %v555_v53 = vld [vmem:[#allocation3 + $0x138] sm:$0xff]  ;;  %v762_v41 = vld [vmem:[#allocation3 + $0x7b0] sm:$0xff] }
 0x175   : > { %2489 = vmatmul.mubr.bf16.gmra.mrb[36].mxu1 %v6605_v57  ;;  %2602 = vmatmul.mubr.bf16.gmra.mrb[52].mxu0 %v6605_v57  ;;  %v6019_v62 = vcombine.high %v555_v53, %v571_v54  ;;  %v6209_v47 = vcombine.high %v746_v40, %v762_v41 }
 0x176   : > { %2498 = vmatprep.mubr.bf16.mxu1 %v9987_v35  ;;  %2611 = vmatprep.mubr.bf16.mxu0 %v9987_v35 }
 0x177   : > { %2677 = vmatpush1.bf16.msra.mxu1 %v6044_v63  ;;  %2789 = vmatprep.subr.bf16.mxu0 %v6047_v0  ;;  %v6016_v63 = vcombine.low %v554_v49, %v570_v50  ;;  %v6049_v0 = vcombine.high %v586_v58, %v602_v59  ;;  %v6711_v50 = vld [vmem:[#allocation3 + $0x40] sm:$0xff] }
 0x178   : > { %2678 = vmatprep.subr.bf16.mxu1 %v6077_v1  ;;  %2790 = vmatpush1.bf16.msra.mxu0 %v6046_v2  ;;  %v6018_v1 = vcombine.low %v555_v53, %v571_v54  ;;  %v587_v2 = vld [vmem:[#allocation3 + $0x238] sm:$0xff]  ;;  %v6208_v53 = vcombine.low %v746_v40, %v762_v41  ;;  %v6903_v40 = vld [vmem:[#allocation3 + $0x50] sm:$0xff] }
 0x179   : > { %2791 = vmatprep.subr.bf16.mxu0 %v6079_v5  ;;  %v634_v5 = vld [vmem:[#allocation3 + $0x3b0] sm:$0xff]  ;;  %v6051_v9 = vcombine.high %v587_v2, %v603_v3  ;;  %v6050_v11 = vcombine.low %v587_v2, %v603_v3  ;;  %v6750_v3 = vld [vmem:[#allocation3 + $0x240] sm:$0xff] }
 0x17a   : > { %v6081_v10 = vcombine.high %v618_v4, %v634_v5  ;;  %v6957_v41 = vld [vmem:[#allocation3 + $0x350] sm:$0xff] }
 0x17b   : > { %2679 = vmatpush1.bf16.msra.mxu1 %v6076_v6  ;;  %v619_v6 = vld [vmem:[#allocation3 + $0x338] sm:$0xff]  ;;  %10138 = vst [vmem:[#allocation24_spill] sm:$0xff] %v6957_v41 }
 0x17c   : > { %2680 = vmatprep.subr.bf16.mxu1 %v6109_v7  ;;  %2792 = vmatpush1.bf16.msra.mxu0 %v6078_v8  ;;  %v635_v7 = vld [vmem:[#allocation3 + $0x3b8] sm:$0xff]  ;;  %v6048_v8 = vcombine.low %v586_v58, %v602_v59  ;;  %v6719_v58 = vld [vmem:[#allocation3 + $0x48] sm:$0xff] }
 0x17d   : > { %2499 = vmatmul.mubr.bf16.gmra.mrb[40].mxu1 %v6619_v23  ;;  %2612 = vmatmul.mubr.bf16.gmra.mrb[56].mxu0 %v6619_v23  ;;  %v6083_v14 = vcombine.high %v619_v6, %v635_v7  ;;  %v6721_v59 = vld [vmem:[#allocation3 + $0xc8] sm:$0xff]  ;;  %v7072_v41 = vld [vmem:[#allocation3 + $0x658] sm:$0xff] }
 0x17e   : > { %2508 = vmatprep.mubr.bf16.mxu1 %v9987_v35  ;;  %2621 = vmatprep.mubr.bf16.mxu0 %v9987_v35  ;;  %10160 = vst [vmem:[#allocation40_spill] sm:$0xff] %v7072_v41 }
 0x17f   : > { %2681 = vmatpush1.bf16.msra.mxu1 %v6108_v15  ;;  %2793 = vmatprep.subr.bf16.mxu0 %v6111_v16  ;;  %v6080_v15 = vcombine.low %v618_v4, %v634_v5  ;;  %v6113_v16 = vcombine.high %v650_v12, %v666_v13  ;;  %v6752_v4 = vld [vmem:[#allocation3 + $0x2c0] sm:$0xff] }
 0x180   : > { %2682 = vmatprep.subr.bf16.mxu1 %v6141_v17  ;;  %2794 = vmatpush1.bf16.msra.mxu0 %v6110_v18  ;;  %v6082_v17 = vcombine.low %v619_v6, %v635_v7  ;;  %v651_v18 = vld [vmem:[#allocation3 + $0x438] sm:$0xff] }
 0x181   : > { %2795 = vmatprep.subr.bf16.mxu0 %v6143_v24  ;;  %v698_v24 = vld [vmem:[#allocation3 + $0x5b0] sm:$0xff]  ;;  %v6115_v28 = vcombine.high %v651_v18, %v667_v19  ;;  %v6114_v30 = vcombine.low %v651_v18, %v667_v19  ;;  %v6757_v5 = vld [vmem:[%s9980_s4] sm:$0xff]  ;;  %v6793_v19 = vld [vmem:[#allocation3 + $0x1c8] sm:$0xff] }
 0x182   : > { %v6145_v29 = vcombine.high %v682_v22, %v698_v24 }
 0x183   : > { %2683 = vmatpush1.bf16.msra.mxu1 %v6140_v42  ;;  %v683_v42 = vld [vmem:[#allocation3 + $0x538] sm:$0xff] }
 0x184   : > { %2684 = vmatprep.subr.bf16.mxu1 %v6173_v26  ;;  %2796 = vmatpush1.bf16.msra.mxu0 %v6142_v27  ;;  %v699_v26 = vld [vmem:[#allocation3 + $0x5b8] sm:$0xff]  ;;  %v6112_v27 = vcombine.low %v650_v12, %v666_v13  ;;  %v6777_v12 = vld [vmem:[#allocation3 + $0x340] sm:$0xff] }
 0x185   : > { %2509 = vmatmul.mubr.bf16.gmra.mrb[44].mxu1 %v6617_v20  ;;  %2622 = vmatmul.mubr.bf16.gmra.mrb[60].mxu0 %v6617_v20  ;;  %v6147_v33 = vcombine.high %v683_v42, %v699_v26  ;;  %v6779_v13 = vld [vmem:[#allocation3 + $0x3c0] sm:$0xff] }
 0x186   : > { %2518 = vmatprep.mubr.bf16.mxu1 %v9987_v35  ;;  %2631 = vmatprep.mubr.bf16.mxu0 %v9987_v35 }
 0x187   : > { %2685 = vmatpush1.bf16.msra.mxu1 %v6172_v34  ;;  %2797 = vmatprep.subr.bf16.mxu0 %v6175_v36  ;;  %v6144_v34 = vcombine.low %v682_v22, %v698_v24  ;;  %v6177_v36 = vcombine.high %v714_v31, %v730_v32  ;;  %v6795_v22 = vld [vmem:[#allocation3 + $0x248] sm:$0xff] }
 0x188   : > { %2686 = vmatprep.subr.bf16.mxu1 %v6205_v37  ;;  %2798 = vmatpush1.bf16.msra.mxu0 %v6174_v38  ;;  %v6146_v37 = vcombine.low %v683_v42, %v699_v26  ;;  %v715_v38 = vld [vmem:[#allocation3 + $0x638] sm:$0xff]  ;;  %v6797_v24 = vld [vmem:[#allocation3 + $0x2c8] sm:$0xff] }
 0x189   : > { %2799 = vmatprep.subr.bf16.mxu0 %v6207_v39  ;;  %v731_v39 = vld [vmem:[#allocation3 + $0x6b8] sm:$0xff] }
 0x18a   : > { %v6179_v46 = vcombine.high %v715_v38, %v731_v39 }
 0x18b   : > { %2687 = vmatpush1.bf16.msra.mxu1 %v6204_v43  ;;  %v747_v43 = vld [vmem:[#allocation3 + $0x738] sm:$0xff] }
 0x18c   : > { %2800 = vmatpush1.bf16.msra.mxu0 %v6206_v44  ;;  %2898 = vmatprep.subr.bf16.mxu1 %v5985_v45  ;;  %v763_v44 = vld [vmem:[#allocation3 + $0x7b8] sm:$0xff]  ;;  %v6176_v45 = vcombine.low %v714_v31, %v730_v32  ;;  %v6819_v31 = vld [vmem:[#allocation3 + $0x348] sm:$0xff] }
 0x18d   : > { %2519 = vmatmul.mubr.bf16.gmra.mrb[48].mxu1 %v6631_v55  ;;  %2632 = vmatmul.mubr.bf16.gmra.mrb[64].mxu0 %v6631_v55  ;;  %v6211_v49 = vcombine.high %v747_v43, %v763_v44  ;;  %v6210_v54 = vcombine.low %v747_v43, %v763_v44  ;;  %v6849_v44 = vld [vmem:[#allocation3 + $0x540] sm:$0xff] }
 0x18e   : > { %2528 = vmatprep.mubr.bf16.mxu1 %v9987_v35  ;;  %2641 = vmatprep.mubr.bf16.mxu0 %v9987_v35 }
 0x18f   : > { %3011 = vmatprep.subr.bf16.mxu0 %v5987_v48  ;;  %v6178_v48 = vcombine.low %v715_v38, %v731_v39  ;;  %v6837_v38 = vld [vmem:[#allocation3 + $0x448] sm:$0xff] }
 0x190   : > { %v6839_v39 = vld [vmem:[#allocation3 + $0x4c8] sm:$0xff] }
 0x195   : > { %2529 = vmatmul.mubr.bf16.gmra.mrb[52].mxu1 %v6629_v52  ;;  %2642 = vmatmul.mubr.bf16.gmra.mrb[68].mxu0 %v6629_v52 }
 0x196   : > { %2538 = vmatprep.mubr.bf16.mxu1 %v9987_v35  ;;  %2651 = vmatprep.mubr.bf16.mxu0 %v9987_v35 }
 0x19d   : > { %2539 = vmatmul.mubr.bf16.gmra.mrb[56].mxu1 %v6643_v25  ;;  %2652 = vmatmul.mubr.bf16.gmra.mrb[72].mxu0 %v6643_v25 }
 0x19e   : > { %2548 = vmatprep.mubr.bf16.mxu1 %v9987_v35  ;;  %2661 = vmatprep.mubr.bf16.mxu0 %v9987_v35 }
 0x1a5   : > { %2549 = vmatmul.mubr.bf16.gmra.mrb[60].mxu1 %v6641_v21  ;;  %2662 = vmatmul.mubr.bf16.gmra.mrb[76].mxu0 %v6641_v21 }
 0x1a6   : > { %2704 = vmatprep.mubr.bf16.mxu1 %v9987_v35  ;;  %2817 = vmatprep.mubr.bf16.mxu0 %v9987_v35 }
 0x1ad   : > { %2705 = vmatmul.mubr.bf16.vlgmr.msra.gmra.mrb[64].mxu1 %v6607_v60  ;;  %2818 = vmatmul.mubr.bf16.vlgmr.msra.gmra.mrb[80].mxu0 %v6607_v60 }
 0x1ae   : > { %2899 = vmatpush1.bf16.msra.mxu1 %v5984_v51  ;;  %2714 = vmatprep.mubr.bf16.mxu1 %v9987_v35  ;;  %v6713_v51 = vld [vmem:[#allocation3 + $0xc0] sm:$0xff] }
 0x1af   : > { %2827 = vmatprep.mubr.bf16.mxu0 %v9987_v35  ;;  %2900 = vmatprep.subr.bf16.mxu1 %v6017_v56  ;;  %v5989_v56 = vcombine.high %v6711_v50, %v6713_v51 }
 0x1b0   : > { %3012 = vmatpush1.bf16.msra.mxu0 %v5986_v61  ;;  %v5991_v61 = vcombine.high %v6719_v58, %v6721_v59 }
 0x1b1   : > { %3013 = vmatprep.subr.bf16.mxu0 %v6019_v62  ;;  %v780_v62 = vlaneseq }
 0x1b2   : > { %2901 = vmatpush1.bf16.msra.mxu1 %v6016_v63 }
 0x1b3   : > { %2902 = vmatprep.subr.bf16.mxu1 %v6049_v0  ;;  %v6737_v63 = vshrl.u32 %v780_v62, 7  ;;  %v6743_v0 = vld [vmem:[#allocation3 + $0x140] sm:$0xff]  ;;  %v6912_v62 = vld [vmem:[#allocation3 + $0x150] sm:$0xff] }
 0x1b4   : > { %3014 = vmatpush1.bf16.msra.mxu0 %v6018_v1  ;;  %v6745_v1 = vld [vmem:[#allocation3 + $0x1c0] sm:$0xff]  ;;  %10132 = vst [vmem:[#allocation18_spill] sm:$0xff] %v6912_v62  ;;  %v6981_v62 = vld [vmem:[#allocation3 + $0x1d8] sm:$0xff] }
 0x1b5   : > { %2715 = vmatmul.mubr.bf16.gmra.mrb[68].mxu1 %v6605_v57  ;;  %2828 = vmatmul.mubr.bf16.gmra.mrb[84].mxu0 %v6605_v57  ;;  %v6748_v2 = vsub.s32 0, %v6737_v63  ;;  %v6760_v6 = vsub.s32 2, %v6737_v63  ;;  %v6763_v7 = vsub.s32 1, %v6737_v63 }
 0x1b6   : > { %2724 = vmatprep.mubr.bf16.mxu1 %v9987_v35  ;;  %2837 = vmatprep.mubr.bf16.mxu0 %v9987_v35 }
 0x1b7   : > { %2903 = vmatpush1.bf16.msra.mxu1 %v6048_v8  ;;  %3015 = vmatprep.subr.bf16.mxu0 %v6051_v9  ;;  %10128 = vst [vmem:[#allocation14_spill] sm:$0xff] %v6748_v2  ;;  %10129 = vst [vmem:[#allocation15_spill] sm:$0xff] %v6760_v6  ;;  %v6766_v8 = vsub.s32 3, %v6737_v63  ;;  %v6771_v9 = vld [vmem:[%s9981_s5] sm:$0xff]  ;;  %v6791_v18 = vrot.slane %v6757_v5, %v6748_v2  ;;  %v6805_v26 = vrot.slane %v6757_v5, %v6760_v6 }
 0x1b8   : > { %2904 = vmatprep.subr.bf16.mxu1 %v6081_v10  ;;  %3016 = vmatpush1.bf16.msra.mxu0 %v6050_v11  ;;  %10130 = vst [vmem:[#allocation16_spill] sm:$0xff] %v6763_v7  ;;  %v5988_v10 = vcombine.low %v6711_v50, %v6713_v51  ;;  %v6020_v11 = vcombine.low %v6743_v0, %v6745_v1  ;;  %v6862_v50 = vld [vmem:[#allocation3 + $0x640] sm:$0xff] }
 0x1b9   : > { %3017 = vmatprep.subr.bf16.mxu0 %v6083_v14  ;;  %10131 = vst [vmem:[#allocation17_spill] sm:$0xff] %v6766_v8  ;;  %v6781_v14 = vld [vmem:[#allocation3 + $0x148] sm:$0xff]  ;;  %v6801_v42 = vrot.slane %v6771_v9, %v6748_v2  ;;  %v6823_v32 = vrot.slane %v6771_v9, %v6760_v6  ;;  %v6864_v51 = vld [vmem:[#allocation3 + $0x6c0] sm:$0xff] }
 0x1ba   : > { %v6023_v43 = vcombine.high %v6781_v14, %v6793_v19 }
 0x1bb   : > { %2905 = vmatpush1.bf16.msra.mxu1 %v6080_v15  ;;  %v6021_v15 = vcombine.high %v6743_v0, %v6745_v1  ;;  %v6945_v1 = vld [vmem:[#allocation3 + $0x250] sm:$0xff]  ;;  %v6959_v0 = vld [vmem:[#allocation3 + $0x58] sm:$0xff] }
 0x1bc   : > { %2906 = vmatprep.subr.bf16.mxu1 %v6113_v16  ;;  %3018 = vmatpush1.bf16.msra.mxu0 %v6082_v17  ;;  %v6053_v17 = vcombine.high %v6750_v3, %v6752_v4 }
 0x1bd   : > { %2725 = vmatmul.mubr.bf16.gmra.mrb[72].mxu1 %v6619_v23  ;;  %2838 = vmatmul.mubr.bf16.gmra.mrb[88].mxu0 %v6619_v23 }
 0x1be   : > { %2734 = vmatprep.mubr.bf16.mxu1 %v9987_v35  ;;  %2847 = vmatprep.mubr.bf16.mxu0 %v9987_v35 }
 0x1bf   : > { %2907 = vmatpush1.bf16.msra.mxu1 %v6112_v27  ;;  %3019 = vmatprep.subr.bf16.mxu0 %v6115_v28  ;;  %v6809_v27 = vrot.slane %v6757_v5, %v6763_v7  ;;  %v6813_v28 = vrot.slane %v6757_v5, %v6766_v8 }
 0x1c0   : > { %2908 = vmatprep.subr.bf16.mxu1 %v6145_v29  ;;  %3020 = vmatpush1.bf16.msra.mxu0 %v6114_v30  ;;  %v6815_v29 = vld [vmem:[#allocation3 + $0x440] sm:$0xff] }
 0x1c1   : > { %3021 = vmatprep.subr.bf16.mxu0 %v6147_v33  ;;  %v6817_v30 = vld [vmem:[#allocation3 + $0x4c0] sm:$0xff]  ;;  %v6827_v33 = vrot.slane %v6771_v9, %v6763_v7 }
 0x1c3   : > { %2909 = vmatpush1.bf16.msra.mxu1 %v6144_v34  ;;  %v6831_v34 = vrot.slane %v6771_v9, %v6766_v8  ;;  %v7000_v8 = vld [vmem:[#allocation3 + $0x258] sm:$0xff] }
 0x1c4   : > { %2910 = vmatprep.subr.bf16.mxu1 %v6177_v36  ;;  %3022 = vmatpush1.bf16.msra.mxu0 %v6146_v37  ;;  %v5990_v36 = vcombine.low %v6719_v58, %v6721_v59  ;;  %v6835_v37 = vld [vmem:[#allocation3 + $0x3c8] sm:$0xff]  ;;  %v6905_v58 = vld [vmem:[#allocation3 + $0xd0] sm:$0xff] }
 0x1c5   : > { %2735 = vmatmul.mubr.bf16.gmra.mrb[76].mxu1 %v6617_v20  ;;  %2848 = vmatmul.mubr.bf16.gmra.mrb[92].mxu0 %v6617_v20  ;;  %v6875_v59 = vld [vmem:[#allocation3 + $0x648] sm:$0xff] }
 0x1c6   : > { %2744 = vmatprep.mubr.bf16.mxu1 %v9987_v35  ;;  %2857 = vmatprep.mubr.bf16.mxu0 %v9987_v35 }
 0x1c7   : > { %2911 = vmatpush1.bf16.msra.mxu1 %v6176_v45  ;;  %3023 = vmatprep.subr.bf16.mxu0 %v6179_v46  ;;  %v6851_v45 = vld [vmem:[#allocation3 + $0x5c0] sm:$0xff]  ;;  %v6853_v46 = vld [vmem:[#allocation3 + $0x548] sm:$0xff] }
 0x1c8   : > { %2912 = vmatprep.subr.bf16.mxu1 %v6209_v47  ;;  %3024 = vmatpush1.bf16.msra.mxu0 %v6178_v48  ;;  %v6022_v47 = vcombine.low %v6781_v14, %v6793_v19  ;;  %v6887_v19 = vld [vmem:[#allocation3 + $0x740] sm:$0xff]  ;;  %v6920_v14 = vsub.s32 6, %v6737_v63  ;;  %v6923_v48 = vsub.s32 5, %v6737_v63 }
 0x1c9   : > { %3025 = vmatprep.subr.bf16.mxu0 %v6211_v49  ;;  %v6055_v49 = vcombine.high %v6795_v22, %v6797_v24 }
 0x1ca   : > { %10135 = vst [vmem:[#allocation21_spill] sm:$0xff] %v6920_v14  ;;  %10136 = vst [vmem:[#allocation22_spill] sm:$0xff] %v6923_v48  ;;  %v6975_v16 = vrot.slane %v6757_v5, %v6923_v48 }
 0x1cb   : > { %2913 = vmatpush1.bf16.msra.mxu1 %v6208_v53  ;;  %v6866_v53 = vld [vmem:[#allocation3 + $0x5c8] sm:$0xff] }
 0x1cc   : > { %3026 = vmatpush1.bf16.msra.mxu0 %v6210_v54  ;;  %3124 = vmatprep.subr.bf16.mxu1 %v5989_v56  ;;  %v6889_v54 = vld [vmem:[#allocation3 + $0x7c0] sm:$0xff]  ;;  %v6891_v56 = vld [vmem:[#allocation3 + $0x748] sm:$0xff]  ;;  %10142 = vst [vmem:[#allocation27_spill] sm:$0xff] %v6975_v16 }
 0x1cd   : > { %2745 = vmatmul.mubr.bf16.gmra.mrb[80].mxu1 %v6631_v55  ;;  %2858 = vmatmul.mubr.bf16.gmra.mrb[96].mxu0 %v6631_v55 }
 0x1ce   : > { %2754 = vmatprep.mubr.bf16.mxu1 %v9987_v35  ;;  %2867 = vmatprep.mubr.bf16.mxu0 %v9987_v35 }
 0x1cf   : > { %3237 = vmatprep.subr.bf16.mxu0 %v5991_v61  ;;  %v6877_v61 = vld [vmem:[#allocation3 + $0x6c8] sm:$0xff] }
 0x1d5   : > { %2755 = vmatmul.mubr.bf16.gmra.mrb[84].mxu1 %v6629_v52  ;;  %2868 = vmatmul.mubr.bf16.gmra.mrb[100].mxu0 %v6629_v52 }
 0x1d6   : > { %2764 = vmatprep.mubr.bf16.mxu1 %v9987_v35  ;;  %2877 = vmatprep.mubr.bf16.mxu0 %v9987_v35 }
 0x1dd   : > { %2765 = vmatmul.mubr.bf16.gmra.mrb[88].mxu1 %v6643_v25  ;;  %2878 = vmatmul.mubr.bf16.gmra.mrb[104].mxu0 %v6643_v25  ;;  %v7002_v25 = vld [vmem:[#allocation3 + $0x2d8] sm:$0xff] }
 0x1de   : > { %2774 = vmatprep.mubr.bf16.mxu1 %v9987_v35  ;;  %2887 = vmatprep.mubr.bf16.mxu0 %v9987_v35 }
 0x1e5   : > { %2775 = vmatmul.mubr.bf16.gmra.mrb[92].mxu1 %v6641_v21  ;;  %2888 = vmatmul.mubr.bf16.gmra.mrb[108].mxu0 %v6641_v21  ;;  %v6998_v21 = vld [vmem:[#allocation3 + $0x450] sm:$0xff] }
 0x1e6   : > { %2930 = vmatprep.mubr.bf16.mxu1 %v9987_v35  ;;  %3043 = vmatprep.mubr.bf16.mxu0 %v9987_v35 }
 0x1ed   : > { %2931 = vmatmul.mubr.bf16.vlgmr.msra.gmra.mrb[96].mxu1 %v6607_v60  ;;  %3044 = vmatmul.mubr.bf16.vlgmr.msra.gmra.mrb[112].mxu0 %v6607_v60  ;;  %v10144_v60 = vcombine.low %v6750_v3, %v6752_v4  ;;  %v10149_v3 = vcombine.low %v6795_v22, %v6797_v24  ;;  %v10153_v22 = vcombine.high %v6819_v31, %v6835_v37  ;;  %v7053_v4 = vld [vmem:[#allocation3 + $0x558] sm:$0xff] }
 0x1ee   : > { %3125 = vmatpush1.bf16.msra.mxu1 %v5988_v10  ;;  %2940 = vmatprep.mubr.bf16.mxu1 %v9987_v35  ;;  %v6917_v10 = vsub.s32 4, %v6737_v63  ;;  %10156 = vst [vmem:[#allocation37_spill] sm:$0xff] %v7053_v4 }
 0x1ef   : > { %3053 = vmatprep.mubr.bf16.mxu0 %v9987_v35  ;;  %3126 = vmatprep.subr.bf16.mxu1 %v6021_v15  ;;  %v6901_v15 = vld [vmem:[#allocation3 + $0x7c8] sm:$0xff]  ;;  %v6947_v35 = vld [vmem:[#allocation3 + $0x2d0] sm:$0xff] }
 0x1f0   : > { %3238 = vmatpush1.bf16.msra.mxu0 %v5990_v36  ;;  %v6914_v36 = vld [vmem:[#allocation3 + $0x1d0] sm:$0xff]  ;;  %10134 = vst [vmem:[#allocation20_spill] sm:$0xff] %v6917_v10 }
 0x1f1   : > { %3239 = vmatprep.subr.bf16.mxu0 %v6023_v43  ;;  %10133 = vst [vmem:[#allocation19_spill] sm:$0xff] %v6914_v36  ;;  %v6935_v43 = vsub.s32 7, %v6737_v63  ;;  %v6977_v63 = vld [vmem:[#allocation3 + $0x3d0] sm:$0xff]  ;;  %v6979_v36 = vld [vmem:[#allocation3 + $0x158] sm:$0xff] }
 0x1f2   : > { %3127 = vmatpush1.bf16.msra.mxu1 %v6020_v11  ;;  %v10139_v11 = vmov 0   ;;  %10143 = vst [vmem:[#allocation28_spill] sm:$0xff] %v6977_v63  ;;  %v7070_v63 = vld [vmem:[#allocation3 + $0x6d0] sm:$0xff] }
 0x1f3   : > { %3128 = vmatprep.subr.bf16.mxu1 %v6053_v17  ;;  %10137 = vst [vmem:[#allocation23_spill] sm:$0xff] %v6935_v43  ;;  %v6961_v17 = vld [vmem:[#allocation3 + $0xd8] sm:$0xff]  ;;  %v6996_v16 = vrot.slane %v6757_v5, %v6935_v43  ;;  %10159 = vst [vmem:[#allocation39_spill] sm:$0xff] %v7070_v63  ;;  %v10172_v63 = vcombine.high %v6849_v44, %v6851_v45 }
 0x1f4   : > { %3240 = vmatpush1.bf16.msra.mxu0 %v6022_v47  ;;  %v6971_v47 = vrot.slane %v6757_v5, %v6920_v14 }
 0x1f5   : > { %2941 = vmatmul.mubr.bf16.gmra.mrb[100].mxu1 %v6605_v57  ;;  %3054 = vmatmul.mubr.bf16.gmra.mrb[116].mxu0 %v6605_v57  ;;  %v6967_v57 = vrot.slane %v6757_v5, %v6917_v10  ;;  %10147 = vst [vmem:[#allocation31_spill] sm:$0xff] %v6996_v16  ;;  %v7014_v5 = vrot.slane %v6771_v9, %v6923_v48  ;;  %v7039_v48 = vld [vmem:[#allocation3 + $0x458] sm:$0xff]  ;;  %v7068_v16 = vld [vmem:[#allocation3 + $0x650] sm:$0xff] }
 0x1f6   : > { %2950 = vmatprep.mubr.bf16.mxu1 %v10139_v11  ;;  %3063 = vmatprep.mubr.bf16.mxu0 %v10139_v11  ;;  %10141 = vst [vmem:[#allocation26_spill] sm:$0xff] %v6971_v47  ;;  %v6992_v47 = vrot.slane %v6771_v9, %v6920_v14  ;;  %v7020_v14 = vld [vmem:[#allocation3 + $0x4d0] sm:$0xff]  ;;  %10154 = vst [vmem:[#allocation35_spill] sm:$0xff] %v7039_v48  ;;  %v10171_v48 = vcombine.high %v6837_v38, %v6839_v39 }
 0x1f7   : > { %10140 = vst [vmem:[#allocation25_spill] sm:$0xff] %v6967_v57  ;;  %3129 = vmatpush1.bf16.msra.mxu1 %v10144_v60  ;;  %3241 = vmatprep.subr.bf16.mxu0 %v6055_v49  ;;  %v6988_v57 = vrot.slane %v6771_v9, %v6917_v10  ;;  %v10148_v60 = vcombine.high %v6777_v12, %v6779_v13  ;;  %10150 = vst [vmem:[#allocation32_spill] sm:$0xff] %v7014_v5  ;;  %v7022_v10 = vld [vmem:[#allocation3 + $0x358] sm:$0xff]  ;;  %v7049_v5 = vld [vmem:[#allocation3 + $0x5d0] sm:$0xff] }
 0x1f8   : > { %10146 = vst [vmem:[#allocation30_spill] sm:$0xff] %v6992_v47  ;;  %3242 = vmatpush1.bf16.msra.mxu0 %v10149_v3  ;;  %v7018_v49 = vrot.slane %v6771_v9, %v6935_v43  ;;  %10152 = vst [vmem:[#allocation34_spill] sm:$0xff] %v7020_v14  ;;  %v7037_v43 = vld [vmem:[#allocation3 + $0x550] sm:$0xff]  ;;  %v7055_v47 = vld [vmem:[#allocation3 + $0x5d8] sm:$0xff] }
 0x1f9   : > { %10145 = vst [vmem:[#allocation29_spill] sm:$0xff] %v6988_v57  ;;  %3130 = vmatprep.subr.bf16.mxu1 %v10148_v60  ;;  %v7024_v60 = vld [vmem:[#allocation3 + $0x3d8] sm:$0xff]  ;;  %3243 = vmatprep.subr.bf16.mxu0 %v10153_v22  ;;  %10157 = vst [vmem:[#allocation38_spill] sm:$0xff] %v7055_v47  ;;  %v10158_v57 = vcombine.low %v6777_v12, %v6779_v13  ;;  %v10162_v12 = vcombine.low %v6819_v31, %v6835_v37  ;;  %v7086_v9 = vld [vmem:[#allocation3 + $0x750] sm:$0xff] }
 0x1fa   : > { %10151 = vst [vmem:[#allocation33_spill] sm:$0xff] %v7018_v49  ;;  %v7041_v49 = vld [vmem:[#allocation3 + $0x4d8] sm:$0xff]  ;;  %10163 = vst [vmem:[#allocation41_spill] sm:$0xff] %v7086_v9  ;;  %v7088_v3 = vld [vmem:[#allocation3 + $0x7d0] sm:$0xff] }
 0x1fb   : > { %10155 = vst [vmem:[#allocation36_spill] sm:$0xff] %v7041_v49  ;;  %3131 = vmatpush1.bf16.msra.mxu1 %v10158_v57  ;;  %v10161_v57 = vcombine.high %v6815_v29, %v6817_v30  ;;  %10164 = vst [vmem:[#allocation42_spill] sm:$0xff] %v7088_v3  ;;  %v7090_v14 = vld [vmem:[#allocation3 + $0x6d8] sm:$0xff]  ;;  %v7112_v37 = vld [vmem:[#allocation3 + $0x60] sm:$0xff]  ;;  %v10170_v49 = vcombine.low %v6815_v29, %v6817_v30  ;;  %v10173_v29 = vcombine.low %v6837_v38, %v6839_v39 }
 0x1fc   : > { %3244 = vmatpush1.bf16.msra.mxu0 %v10162_v12  ;;  %10165 = vst [vmem:[#allocation43_spill] sm:$0xff] %v7090_v14  ;;  %v7100_v12 = vld [vmem:[#allocation3 + $0x758] sm:$0xff]  ;;  %10168 = vst [vmem:[#allocation46_spill] sm:$0xff] %v7112_v37 }
 0x1fd   : > { %3132 = vmatprep.subr.bf16.mxu1 %v10161_v57  ;;  %2951 = vmatmul.mubr.bf16.gmra.mrb[104].mxu1 %v6619_v23  ;;  %10166 = vst [vmem:[#allocation44_spill] sm:$0xff] %v7100_v12  ;;  %v7102_v22 = vld [vmem:[#allocation3 + $0x7d8] sm:$0xff]  ;;  %v7114_v57 = vld [vmem:[#allocation3 + $0xe0] sm:$0xff] }
 0x1fe   : > { %3064 = vmatmul.mubr.bf16.gmra.mrb[120].mxu0 %v6619_v23  ;;  %10167 = vst [vmem:[#allocation45_spill] sm:$0xff] %v7102_v22  ;;  %2960 = vmatprep.mubr.bf16.mxu1 %v10139_v11  ;;  %10169 = vst [vmem:[#allocation47_spill] sm:$0xff] %v7114_v57 }
 0x1ff   : > { %3073 = vmatprep.mubr.bf16.mxu0 %v10139_v11  ;;  %3133 = vmatpush1.bf16.msra.mxu1 %v10170_v49 }
 0x200   : > { %3245 = vmatprep.subr.bf16.mxu0 %v10171_v48  ;;  %v2254_v47 = vpop.f32.mrb[0].mxu1  ;;  %v2367_v4 = vpop.f32.mrb[16].mxu0  ;;  %3134 = vmatprep.subr.bf16.mxu1 %v10172_v63  ;;  %v10174_v63 = vcombine.high %v6853_v46, %v6866_v53  ;;  %v7151_v48 = vld [vmem:[#allocation3 + $0x1e0] sm:$0xff] }
 0x201   : > { %3246 = vmatpush1.bf16.msra.mxu0 %v10173_v29  ;;  %v2255_v31 = vadd.f32 %v2254_v47, %v6791_v18  ;;  %v2368_v13 = vadd.f32 %v2367_v4, %v6805_v26  ;;  %v2256_v24 = vpop.f32.mrb[1].mxu1  ;;  %v2369_v14 = vpop.f32.mrb[17].mxu0  ;;  %v7149_v29 = vld [vmem:[#allocation3 + $0x160] sm:$0xff]  ;;  %10176 = vst [vmem:[#allocation49_spill] sm:$0xff] %v7151_v48 }
 0x202   : > { %3247 = vmatprep.subr.bf16.mxu0 %v10174_v63  ;;  %10175 = vst [vmem:[#allocation48_spill] sm:$0xff] %v7149_v29  ;;  %v2257_v47 = vadd.f32 %v2256_v24, %v6809_v27  ;;  %v2370_v4 = vadd.f32 %v2369_v14, %v6813_v28  ;;  %v2258_v49 = vpop.f32.mrb[2].mxu1  ;;  %v2371_v30 = vpop.f32.mrb[18].mxu0  ;;  %v10177_v24 = vcombine.low %v6849_v44, %v6851_v45 }
 0x203   : > { %v4028_v38 = vmax.f32 %v2255_v31, 0.0  ;;  %v4030_v12 = vmax.f32 %v2368_v13, 0.0  ;;  %v2259_v39 = vadd.f32 %v2258_v49, %v6791_v18  ;;  %v2372_v57 = vadd.f32 %v2371_v30, %v6805_v26  ;;  %v2260_v37 = vpop.f32.mrb[3].mxu1  ;;  %v2373_v41 = vpop.f32.mrb[19].mxu0  ;;  %v7175_v30 = vld [vmem:[%s9980_s4 + $0x8] sm:$0xff] }
 0x204   : > { %3135 = vmatpush1.bf16.msra.mxu1 %v10177_v24  ;;  %v4029_v14 = vmax.f32 %v2257_v47, 0.0  ;;  %v4031_v3 = vmax.f32 %v2370_v4, 0.0  ;;  %v2261_v9 = vadd.f32 %v2260_v37, %v6809_v27  ;;  %v2374_v22 = vadd.f32 %v2373_v41, %v6813_v28 }
 0x205   : > { %v10178_v31 = vcombine.high %v6862_v50, %v6864_v51  ;;  %v10179_v13 = vcombine.low %v6853_v46, %v6866_v53  ;;  %v4708_v44 = vmul.f32 %v6801_v42, %v4028_v38  ;;  %v4710_v45 = vmul.f32 %v6823_v32, %v4030_v12  ;;  %2961 = vmatmul.mubr.bf16.gmra.mrb[108].mxu1 %v6617_v20  ;;  %v7188_v12 = vld [vmem:[%s9981_s5 + $0x8] sm:$0xff] }
 0x206   : > { %v4060_v37 = vmax.f32 %v2259_v39, 0.0  ;;  %v4062_v49 = vmax.f32 %v2372_v57, 0.0  ;;  %3074 = vmatmul.mubr.bf16.gmra.mrb[124].mxu0 %v6617_v20  ;;  %v4709_v41 = vmul.f32 %v6827_v33, %v4029_v14  ;;  %v4711_v46 = vmul.f32 %v6831_v34, %v4031_v3  ;;  %2970 = vmatprep.mubr.bf16.mxu1 %v10139_v11 }
 0x207   : > { %3136 = vmatprep.subr.bf16.mxu1 %v10178_v31  ;;  %3248 = vmatpush1.bf16.msra.mxu0 %v10179_v13  ;;  %v4061_v53 = vmax.f32 %v2261_v9, 0.0  ;;  %v4063_v47 = vmax.f32 %v2374_v22, 0.0  ;;  %v10180_v39 = vcombine.low %v6862_v50, %v6864_v51  ;;  %v10181_v3 = vcombine.high %v6875_v59, %v6877_v61 }
 0x208   : > { %3083 = vmatprep.mubr.bf16.mxu0 %v10139_v11  ;;  %v4740_v57 = vmul.f32 %v6801_v42, %v4060_v37  ;;  %v4742_v38 = vmul.f32 %v6823_v32, %v4062_v49  ;;  %v7200_v9 = vrot.slane %v7175_v30, %v6748_v2  ;;  %v5220_v22 = vadd.f32 %v4709_v41, %v4708_v44  ;;  %v2264_v14 = vpop.f32.mrb[4].mxu1  ;;  %v2377_v31 = vpop.f32.mrb[20].mxu0 }
 0x209   : > { %3137 = vmatpush1.bf16.msra.mxu1 %v10180_v39  ;;  %3249 = vmatprep.subr.bf16.mxu0 %v10181_v3  ;;  %v4741_v4 = vmul.f32 %v6827_v33, %v4061_v53  ;;  %v4743_v24 = vmul.f32 %v6831_v34, %v4063_v47  ;;  %v10183_v13 = vcombine.high %v6887_v19, %v6889_v54  ;;  %v2266_v49 = vpop.f32.mrb[5].mxu1  ;;  %v2379_v44 = vpop.f32.mrb[21].mxu0 }
 0x20a   : > { %10182 = vst [vmem:[#allocation50_spill] sm:$0xff] %v7200_v9  ;;  %v10184_v50 = vcombine.low %v6875_v59, %v6877_v61  ;;  %v2265_v51 = vadd.f32 %v2264_v14, %v6791_v18  ;;  %v2378_v37 = vadd.f32 %v2377_v31, %v6805_v26  ;;  %v10185_v41 = vcombine.high %v6891_v56, %v6901_v15  ;;  %v2268_v14 = vpop.f32.mrb[6].mxu1  ;;  %v2381_v31 = vpop.f32.mrb[22].mxu0 }
 0x20b   : > { %3138 = vmatprep.subr.bf16.mxu1 %v10183_v13  ;;  %v7217_v53 = vrot.slane %v7188_v12, %v6748_v2  ;;  %v7221_v47 = vrot.slane %v7175_v30, %v6760_v6  ;;  %v5221_v59 = vadd.f32 %v5220_v22, %v4710_v45  ;;  %v5253_v61 = vadd.f32 %v4741_v4, %v4740_v57  ;;  %v2270_v2 = vpop.f32.mrb[7].mxu1 }
 0x20c   : > { %3250 = vmatpush1.bf16.msra.mxu0 %v10184_v50  ;;  %v2267_v39 = vadd.f32 %v2266_v49, %v6809_v27  ;;  %v2380_v3 = vadd.f32 %v2379_v44, %v6813_v28  ;;  %v4092_v13 = vmax.f32 %v2265_v51, 0.0  ;;  %v4094_v50 = vmax.f32 %v2378_v37, 0.0 }
 0x20d   : > { %3251 = vmatprep.subr.bf16.mxu0 %v10185_v41  ;;  %10186 = vst [vmem:[#allocation51_spill] sm:$0xff] %v7217_v53  ;;  %10187 = vst [vmem:[#allocation52_spill] sm:$0xff] %v7221_v47  ;;  %v2269_v41 = vadd.f32 %v2268_v14, %v6791_v18  ;;  %v2382_v63 = vadd.f32 %v2381_v31, %v6805_v26  ;;  %v2383_v53 = vpop.f32.mrb[23].mxu0  ;;  %v10188_v9 = vcombine.low %v6887_v19, %v6889_v54  ;;  %v7242_v19 = vld [vmem:[#allocation3 + $0x260] sm:$0xff] }
 0x20e   : > { %v7230_v45 = vadd.f32 %v5221_v59, %v4711_v46  ;;  %v5254_v57 = vadd.f32 %v5253_v61, %v4742_v38  ;;  %v4093_v22 = vmax.f32 %v2267_v39, 0.0  ;;  %v4095_v4 = vmax.f32 %v2380_v3, 0.0  ;;  %2971 = vmatmul.mubr.bf16.gmra.mrb[112].mxu1 %v6631_v55  ;;  %3084 = vmatmul.mubr.bf16.gmra.mrb[128].mxu0 %v6631_v55  ;;  %10191 = vst [vmem:[#allocation53_spill] sm:$0xff] %v7242_v19  ;;  %v7244_v46 = vld [vmem:[#allocation3 + $0x2e0] sm:$0xff]  ;;  %v10197_v19 = vld [vmem:[#allocation13_spill] sm:$0xff] }
 0x20f   : > { %3139 = vmatpush1.bf16.msra.mxu1 %v10188_v9  ;;  %v10189_v49 = vcombine.low %v6891_v56, %v6901_v15  ;;  %v10190_v51 = vcombine.high %v6903_v40, %v6905_v58  ;;  %v4772_v37 = vmul.f32 %v6801_v42, %v4092_v13  ;;  %v4774_v44 = vmul.f32 %v6823_v32, %v4094_v50 }
 0x210   : > { %v4124_v14 = vmax.f32 %v2269_v41, 0.0  ;;  %v4126_v54 = vmax.f32 %v2382_v63, 0.0  ;;  %10192 = vst [vmem:[#allocation54_spill] sm:$0xff] %v7244_v46  ;;  %v7246_v56 = vadd.f32 %v5254_v57, %v4743_v24  ;;  %v4773_v15 = vmul.f32 %v6827_v33, %v4093_v22  ;;  %2980 = vmatprep.mubr.bf16.mxu1 %v10139_v11  ;;  %3093 = vmatprep.mubr.bf16.mxu0 %v10139_v11  ;;  %v2274_v31 = vpop.f32.mrb[8].mxu1  ;;  %v2387_v13 = vpop.f32.mrb[24].mxu0 }
 0x211   : > { %3252 = vmatpush1.bf16.msra.mxu0 %v10189_v49  ;;  %3350 = vmatprep.subr.bf16.mxu1 %v10190_v51  ;;  %v4775_v38 = vmul.f32 %v6831_v34, %v4095_v4  ;;  %v2271_v9 = vadd.f32 %v2270_v2, %v6809_v27  ;;  %v2384_v61 = vadd.f32 %v2383_v53, %v6813_v28  ;;  %v2276_v22 = vpop.f32.mrb[9].mxu1  ;;  %v2389_v4 = vpop.f32.mrb[25].mxu0 }
 0x212   : > { %v4804_v63 = vmul.f32 %v6801_v42, %v4124_v14  ;;  %v4806_v59 = vmul.f32 %v6823_v32, %v4126_v54  ;;  %v10193_v24 = vcombine.high %v6959_v0, %v6961_v17  ;;  %v5286_v39 = vadd.f32 %v4773_v15, %v4772_v37  ;;  %v2278_v15 = vpop.f32.mrb[10].mxu1 }
 0x213   : > { %v4125_v3 = vmax.f32 %v2271_v9, 0.0  ;;  %v4127_v41 = vmax.f32 %v2384_v61, 0.0  ;;  %v2275_v57 = vadd.f32 %v2274_v31, %v6791_v18  ;;  %v2388_v53 = vadd.f32 %v2387_v13, %v6805_v26  ;;  %v2391_v9 = vpop.f32.mrb[26].mxu0  ;;  %v2280_v2 = vpop.f32.mrb[11].mxu1 }
 0x214   : > { %3463 = vmatprep.subr.bf16.mxu0 %v10193_v24  ;;  %v7267_v49 = vrot.slane %v7188_v12, %v6760_v6  ;;  %v5287_v51 = vadd.f32 %v5286_v39, %v4774_v44  ;;  %v2277_v14 = vadd.f32 %v2276_v22, %v6809_v27  ;;  %v2390_v54 = vadd.f32 %v2389_v4, %v6813_v28  ;;  %v2393_v50 = vpop.f32.mrb[27].mxu0 }
 0x215   : > { %v4805_v37 = vmul.f32 %v6827_v33, %v4125_v3  ;;  %v4807_v61 = vmul.f32 %v6831_v34, %v4127_v41  ;;  %v4156_v24 = vmax.f32 %v2275_v57, 0.0  ;;  %v4158_v31 = vmax.f32 %v2388_v53, 0.0 }
 0x216   : > { %10194 = vst [vmem:[#allocation55_spill] sm:$0xff] %v7267_v49  ;;  %v2279_v13 = vadd.f32 %v2278_v15, %v6791_v18  ;;  %v7274_v47 = vadd.f32 %v5287_v51, %v4775_v38  ;;  %v4157_v44 = vmax.f32 %v2277_v14, 0.0  ;;  %v4159_v39 = vmax.f32 %v2390_v54, 0.0  ;;  %2981 = vmatmul.mubr.bf16.gmra.mrb[116].mxu1 %v6629_v52  ;;  %3094 = vmatmul.mubr.bf16.gmra.mrb[132].mxu0 %v6629_v52 }
 0x217   : > { %v5319_v6 = vadd.f32 %v4805_v37, %v4804_v63  ;;  %v4836_v3 = vmul.f32 %v6801_v42, %v4156_v24  ;;  %v4838_v22 = vmul.f32 %v6823_v32, %v4158_v31  ;;  %v2392_v49 = vadd.f32 %v2391_v9, %v6805_v26  ;;  %2990 = vmatprep.mubr.bf16.mxu1 %v10139_v11 }
 0x218   : > { %v4188_v4 = vmax.f32 %v2279_v13, 0.0  ;;  %v4837_v57 = vmul.f32 %v6827_v33, %v4157_v44  ;;  %v4839_v38 = vmul.f32 %v6831_v34, %v4159_v39  ;;  %v2281_v63 = vadd.f32 %v2280_v2, %v6809_v27  ;;  %3103 = vmatprep.mubr.bf16.mxu0 %v10139_v11  ;;  %v2284_v15 = vpop.f32.mrb[12].mxu1  ;;  %v2397_v9 = vpop.f32.mrb[28].mxu0 }
 0x219   : > { %v5320_v41 = vadd.f32 %v5319_v6, %v4806_v59  ;;  %v4190_v51 = vmax.f32 %v2392_v49, 0.0  ;;  %v2394_v37 = vadd.f32 %v2393_v50, %v6813_v28  ;;  %v7290_v14 = vrot.slane %v7175_v30, %v6763_v7  ;;  %v2286_v13 = vpop.f32.mrb[13].mxu1  ;;  %v2399_v44 = vpop.f32.mrb[29].mxu0 }
 0x21a   : > { %v4868_v53 = vmul.f32 %v6801_v42, %v4188_v4  ;;  %v5352_v59 = vadd.f32 %v4837_v57, %v4836_v3  ;;  %v4189_v54 = vmax.f32 %v2281_v63, 0.0  ;;  %v7296_v2 = vrot.slane %v7188_v12, %v6763_v7  ;;  %v2401_v57 = vpop.f32.mrb[30].mxu0 }
 0x21b   : > { %10195 = vst [vmem:[#allocation56_spill] sm:$0xff] %v7290_v14  ;;  %v7292_v6 = vadd.f32 %v5320_v41, %v4807_v61  ;;  %v4870_v49 = vmul.f32 %v6823_v32, %v4190_v51  ;;  %v4191_v24 = vmax.f32 %v2394_v37, 0.0  ;;  %v2285_v50 = vadd.f32 %v2284_v15, %v6791_v18  ;;  %v2288_v41 = vpop.f32.mrb[14].mxu1 }
 0x21c   : > { %10196 = vst [vmem:[#allocation57_spill] sm:$0xff] %v7296_v2  ;;  %v2398_v31 = vadd.f32 %v2397_v9, %v6805_v26  ;;  %v5353_v39 = vadd.f32 %v5352_v59, %v4838_v22  ;;  %v4869_v61 = vmul.f32 %v6827_v33, %v4189_v54  ;;  %v2287_v3 = vadd.f32 %v2286_v13, %v6809_v27  ;;  %v2290_v15 = vpop.f32.mrb[15].mxu1  ;;  %v2403_v2 = vpop.f32.mrb[31].mxu0 }
 0x21d   : > { %v2400_v4 = vadd.f32 %v2399_v44, %v6813_v28  ;;  %v4871_v63 = vmul.f32 %v6831_v34, %v4191_v24  ;;  %v4220_v7 = vmax.f32 %v2285_v50, 0.0  ;;  %v2289_v37 = vadd.f32 %v2288_v41, %v6791_v18 }
 0x21e   : > { %v4222_v51 = vmax.f32 %v2398_v31, 0.0  ;;  %v7306_v9 = vadd.f32 %v5353_v39, %v4839_v38  ;;  %v5385_v14 = vadd.f32 %v4869_v61, %v4868_v53  ;;  %v4221_v22 = vmax.f32 %v2287_v3, 0.0  ;;  %2991 = vmatmul.mubr.bf16.gmra.mrb[120].mxu1 %v10197_v19  ;;  %3104 = vmatmul.mubr.bf16.gmra.mrb[136].mxu0 %v10197_v19  ;;  %v10198_v61 = vld [vmem:[#allocation17_spill] sm:$0xff] }
 0x21f   : > { %v4223_v59 = vmax.f32 %v2400_v4, 0.0  ;;  %v4900_v54 = vmul.f32 %v6801_v42, %v4220_v7  ;;  %v4252_v44 = vmax.f32 %v2289_v37, 0.0  ;;  %v2402_v46 = vadd.f32 %v2401_v57, %v6805_v26  ;;  %3000 = vmatprep.mubr.bf16.mxu1 %v10139_v11  ;;  %3113 = vmatprep.mubr.bf16.mxu0 %v10139_v11 }
 0x220   : > { %v4902_v13 = vmul.f32 %v6823_v32, %v4222_v51  ;;  %v5386_v24 = vadd.f32 %v5385_v14, %v4870_v49  ;;  %v4901_v50 = vmul.f32 %v6827_v33, %v4221_v22  ;;  %v2291_v53 = vadd.f32 %v2290_v15, %v6809_v27  ;;  %v2294_v41 = vpop.f32.mrb[16].mxu1  ;;  %v2407_v57 = vpop.f32.mrb[32].mxu0 }
 0x221   : > { %v4903_v38 = vmul.f32 %v6831_v34, %v4223_v59  ;;  %v4932_v7 = vmul.f32 %v6801_v42, %v4252_v44  ;;  %v4254_v31 = vmax.f32 %v2402_v46, 0.0  ;;  %v2404_v39 = vadd.f32 %v2403_v2, %v6813_v28  ;;  %v2296_v22 = vpop.f32.mrb[17].mxu1 }
 0x222   : > { %v7322_v3 = vrot.slane %v7175_v30, %v10198_v61  ;;  %v7324_v14 = vadd.f32 %v5386_v24, %v4871_v63  ;;  %v5418_v49 = vadd.f32 %v4901_v50, %v4900_v54  ;;  %v4253_v4 = vmax.f32 %v2291_v53, 0.0  ;;  %v2409_v30 = vpop.f32.mrb[33].mxu0  ;;  %v2298_v24 = vpop.f32.mrb[18].mxu1 }
 0x223   : > { %v7328_v51 = vrot.slane %v7188_v12, %v10198_v61  ;;  %v4934_v46 = vmul.f32 %v6823_v32, %v4254_v31  ;;  %v4255_v37 = vmax.f32 %v2404_v39, 0.0  ;;  %v2295_v2 = vadd.f32 %v2294_v41, %v6791_v18  ;;  %v2411_v50 = vpop.f32.mrb[34].mxu0  ;;  %v2300_v41 = vpop.f32.mrb[19].mxu1 }
 0x224   : > { %10199 = vst [vmem:[#allocation58_spill] sm:$0xff] %v7322_v3  ;;  %v2408_v15 = vadd.f32 %v2407_v57, %v6805_v26  ;;  %v5419_v59 = vadd.f32 %v5418_v49, %v4902_v13  ;;  %v4933_v63 = vmul.f32 %v6827_v33, %v4253_v4  ;;  %v2297_v54 = vadd.f32 %v2296_v22, %v6809_v27  ;;  %v2413_v61 = vpop.f32.mrb[35].mxu0  ;;  %v7340_v4 = vld [vmem:[#allocation3 + $0x360] sm:$0xff] }
 0x225   : > { %10200 = vst [vmem:[#allocation59_spill] sm:$0xff] %v7328_v51  ;;  %v2410_v44 = vadd.f32 %v2409_v30, %v6813_v28  ;;  %v4935_v12 = vmul.f32 %v6831_v34, %v4255_v37  ;;  %v4284_v53 = vmax.f32 %v2295_v2, 0.0  ;;  %v2299_v39 = vadd.f32 %v2298_v24, %v6791_v18  ;;  %10201 = vst [vmem:[#allocation60_spill] sm:$0xff] %v7340_v4  ;;  %v7342_v22 = vld [vmem:[#allocation3 + $0x3e0] sm:$0xff] }
 0x226   : > { %v4286_v31 = vmax.f32 %v2408_v15, 0.0  ;;  %v7338_v57 = vadd.f32 %v5419_v59, %v4903_v38  ;;  %v5451_v51 = vadd.f32 %v4933_v63, %v4932_v7  ;;  %v4285_v13 = vmax.f32 %v2297_v54, 0.0  ;;  %10202 = vst [vmem:[#allocation61_spill] sm:$0xff] %v7342_v22  ;;  %v10203_v15 = vld [vmem:[#allocation12_spill] sm:$0xff] }
 0x227   : > { %v4287_v49 = vmax.f32 %v2410_v44, 0.0  ;;  %v4964_v30 = vmul.f32 %v6801_v42, %v4284_v53  ;;  %v4316_v37 = vmax.f32 %v2299_v39, 0.0  ;;  %v2412_v2 = vadd.f32 %v2411_v50, %v6805_v26  ;;  %3001 = vmatmul.mubr.bf16.gmra.mrb[124].mxu1 %v10203_v15  ;;  %3114 = vmatmul.mubr.bf16.gmra.mrb[140].mxu0 %v10203_v15 }
 0x228   : > { %v4966_v3 = vmul.f32 %v6823_v32, %v4286_v31  ;;  %v5452_v38 = vadd.f32 %v5451_v51, %v4934_v46  ;;  %v4965_v7 = vmul.f32 %v6827_v33, %v4285_v13  ;;  %v2301_v63 = vadd.f32 %v2300_v41, %v6809_v27  ;;  %3156 = vmatprep.mubr.bf16.mxu1 %v10139_v11  ;;  %v2304_v31 = vpop.f32.mrb[20].mxu1  ;;  %v2417_v39 = vpop.f32.mrb[36].mxu0 }
 0x229   : > { %v4967_v59 = vmul.f32 %v6831_v34, %v4287_v49  ;;  %v4996_v54 = vmul.f32 %v6801_v42, %v4316_v37  ;;  %v4318_v44 = vmax.f32 %v2412_v2, 0.0  ;;  %v2414_v24 = vadd.f32 %v2413_v61, %v6813_v28  ;;  %3269 = vmatprep.mubr.bf16.mxu0 %v10139_v11  ;;  %v2306_v2 = vpop.f32.mrb[21].mxu1  ;;  %v2419_v48 = vpop.f32.mrb[37].mxu0 }
 0x22a   : > { %v7358_v53 = vadd.f32 %v5452_v38, %v4935_v12  ;;  %v5484_v51 = vadd.f32 %v4965_v7, %v4964_v30  ;;  %v4317_v46 = vmax.f32 %v2301_v63, 0.0  ;;  %v2305_v37 = vadd.f32 %v2304_v31, %v6791_v18  ;;  %v2308_v7 = vpop.f32.mrb[22].mxu1  ;;  %v2421_v63 = vpop.f32.mrb[38].mxu0 }
 0x22b   : > { %v4998_v13 = vmul.f32 %v6823_v32, %v4318_v44  ;;  %v4319_v49 = vmax.f32 %v2414_v24, 0.0  ;;  %v2418_v61 = vadd.f32 %v2417_v39, %v6805_v26  ;;  %v2307_v30 = vadd.f32 %v2306_v2, %v6809_v27  ;;  %v2310_v31 = vpop.f32.mrb[23].mxu1  ;;  %v2423_v22 = vpop.f32.mrb[39].mxu0  ;;  %v7374_v2 = vld [vmem:[#allocation3 + $0xe8] sm:$0xff] }
 0x22c   : > { %v5485_v29 = vadd.f32 %v5484_v51, %v4966_v3  ;;  %v4997_v12 = vmul.f32 %v6827_v33, %v4317_v46  ;;  %v2420_v38 = vadd.f32 %v2419_v48, %v6813_v28  ;;  %v4348_v41 = vmax.f32 %v2305_v37, 0.0  ;;  %v7372_v46 = vld [vmem:[#allocation3 + $0x68] sm:$0xff] }
 0x22d   : > { %v4999_v50 = vmul.f32 %v6831_v34, %v4319_v49  ;;  %v4350_v44 = vmax.f32 %v2418_v61, 0.0  ;;  %v2309_v24 = vadd.f32 %v2308_v7, %v6791_v18  ;;  %v4349_v3 = vmax.f32 %v2307_v30, 0.0  ;;  %v10204_v61 = vld [vmem:[#allocation7_spill] sm:$0xff] }
 0x22e   : > { %v7370_v39 = vadd.f32 %v5485_v29, %v4967_v59  ;;  %v5517_v4 = vadd.f32 %v4997_v12, %v4996_v54  ;;  %v4351_v51 = vmax.f32 %v2420_v38, 0.0  ;;  %v5028_v48 = vmul.f32 %v6801_v42, %v4348_v41 }
 0x22f   : > { %v5030_v15 = vmul.f32 %v6823_v32, %v4350_v44  ;;  %v4380_v49 = vmax.f32 %v2309_v24, 0.0  ;;  %v2422_v37 = vadd.f32 %v2421_v63, %v6805_v26  ;;  %3157 = vmatmul.mubr.bf16.vlgmr.msra.gmra.mrb[128].mxu1 %v10204_v61  ;;  %3270 = vmatmul.mubr.bf16.vlgmr.msra.gmra.mrb[144].mxu0 %v10204_v61  ;;  %v5029_v59 = vmul.f32 %v6827_v33, %v4349_v3 }
 0x230   : > { %v5518_v29 = vadd.f32 %v5517_v4, %v4998_v13  ;;  %v5031_v54 = vmul.f32 %v6831_v34, %v4351_v51  ;;  %v2311_v12 = vadd.f32 %v2310_v31, %v6809_v27  ;;  %v10205_v30 = vcombine.low %v6903_v40, %v6905_v58  ;;  %3166 = vmatprep.mubr.bf16.mxu1 %v10139_v11  ;;  %v2314_v24 = vpop.f32.mrb[24].mxu1  ;;  %v2427_v31 = vpop.f32.mrb[40].mxu0  ;;  %v10206_v40 = vld [vmem:[#allocation18_spill] sm:$0xff]  ;;  %v10207_v58 = vld [vmem:[#allocation19_spill] sm:$0xff] }
 0x231   : > { %v5060_v41 = vmul.f32 %v6801_v42, %v4380_v49  ;;  %v4382_v38 = vmax.f32 %v2422_v37, 0.0  ;;  %v2424_v7 = vadd.f32 %v2423_v22, %v6813_v28  ;;  %3279 = vmatprep.mubr.bf16.mxu0 %v10139_v11  ;;  %v5550_v63 = vadd.f32 %v5029_v59, %v5028_v48  ;;  %v2429_v59 = vpop.f32.mrb[41].mxu0 }
 0x232   : > { %3351 = vmatpush1.bf16.msra.mxu1 %v10205_v30  ;;  %v7393_v13 = vadd.f32 %v5518_v29, %v4999_v50  ;;  %v4381_v44 = vmax.f32 %v2311_v12, 0.0  ;;  %v10208_v3 = vcombine.high %v10206_v40, %v10207_v58  ;;  %v10209_v22 = vcombine.low %v6959_v0, %v6961_v17  ;;  %v2316_v29 = vpop.f32.mrb[25].mxu1 }
 0x233   : > { %v5062_v49 = vmul.f32 %v6823_v32, %v4382_v38  ;;  %v4383_v37 = vmax.f32 %v2424_v7, 0.0  ;;  %v2315_v50 = vadd.f32 %v2314_v24, %v6791_v18  ;;  %v2428_v48 = vadd.f32 %v2427_v31, %v6805_v26  ;;  %v2431_v38 = vpop.f32.mrb[42].mxu0 }
 0x234   : > { %3352 = vmatprep.subr.bf16.mxu1 %v10208_v3  ;;  %3464 = vmatpush1.bf16.msra.mxu0 %v10209_v22  ;;  %v10210_v12 = vcombine.high %v6979_v36, %v6981_v62  ;;  %v5551_v30 = vadd.f32 %v5550_v63, %v5030_v15  ;;  %v5061_v0 = vmul.f32 %v6827_v33, %v4381_v44  ;;  %v2318_v22 = vpop.f32.mrb[26].mxu1  ;;  %v2433_v15 = vpop.f32.mrb[43].mxu0 }
 0x235   : > { %v2317_v17 = vadd.f32 %v2316_v29, %v6809_v27  ;;  %v2430_v3 = vadd.f32 %v2429_v59, %v6813_v28  ;;  %v10211_v7 = vcombine.low %v10206_v40, %v10207_v58  ;;  %v5063_v24 = vmul.f32 %v6831_v34, %v4383_v37  ;;  %v7425_v58 = vld [vmem:[#allocation3 + $0x460] sm:$0xff] }
 0x236   : > { %3465 = vmatprep.subr.bf16.mxu0 %v10210_v12  ;;  %v4412_v31 = vmax.f32 %v2315_v50, 0.0  ;;  %v4414_v4 = vmax.f32 %v2428_v48, 0.0  ;;  %v2319_v51 = vadd.f32 %v2318_v22, %v6791_v18  ;;  %v2320_v12 = vpop.f32.mrb[27].mxu1  ;;  %v10212_v63 = vcombine.high %v6945_v1, %v6947_v35  ;;  %v7427_v37 = vld [vmem:[#allocation3 + $0x4e0] sm:$0xff] }
 0x237   : > { %3353 = vmatpush1.bf16.msra.mxu1 %v10211_v7  ;;  %v7420_v44 = vadd.f32 %v5551_v30, %v5031_v54  ;;  %v5583_v29 = vadd.f32 %v5061_v0, %v5060_v41  ;;  %v4413_v59 = vmax.f32 %v2317_v17, 0.0  ;;  %v4415_v61 = vmax.f32 %v2430_v3, 0.0  ;;  %v10214_v54 = vld [vmem:[#allocation6_spill] sm:$0xff] }
 0x238   : > { %3354 = vmatprep.subr.bf16.mxu1 %v10212_v63  ;;  %v10213_v40 = vcombine.low %v6979_v36, %v6981_v62  ;;  %v5092_v50 = vmul.f32 %v6801_v42, %v4412_v31  ;;  %v5094_v48 = vmul.f32 %v6823_v32, %v4414_v4  ;;  %v4444_v22 = vmax.f32 %v2319_v51, 0.0  ;;  %3167 = vmatmul.mubr.bf16.gmra.mrb[132].mxu1 %v10214_v54  ;;  %v2324_v31 = vpop.f32.mrb[28].mxu1  ;;  %v10216_v63 = vld [vmem:[#allocation24_spill] sm:$0xff] }
 0x239   : > { %v2432_v7 = vadd.f32 %v2431_v38, %v6805_v26  ;;  %3280 = vmatmul.mubr.bf16.gmra.mrb[148].mxu0 %v10214_v54  ;;  %v5584_v41 = vadd.f32 %v5583_v29, %v5062_v49  ;;  %v5093_v30 = vmul.f32 %v6827_v33, %v4413_v59  ;;  %v5095_v62 = vmul.f32 %v6831_v34, %v4415_v61  ;;  %v10217_v29 = vld [vmem:[#allocation28_spill] sm:$0xff] }
 0x23a   : > { %3466 = vmatpush1.bf16.msra.mxu0 %v10213_v40  ;;  %v2321_v36 = vadd.f32 %v2320_v12, %v6809_v27  ;;  %3176 = vmatprep.mubr.bf16.mxu1 %v10139_v11  ;;  %v5124_v0 = vmul.f32 %v6801_v42, %v4444_v22  ;;  %v2434_v4 = vadd.f32 %v2433_v15, %v6813_v28  ;;  %v2437_v12 = vpop.f32.mrb[44].mxu0  ;;  %v2326_v22 = vpop.f32.mrb[29].mxu1 }
 0x23b   : > { %v4446_v17 = vmax.f32 %v2432_v7, 0.0  ;;  %3289 = vmatprep.mubr.bf16.mxu0 %v10139_v11  ;;  %v10215_v51 = vcombine.low %v6945_v1, %v6947_v35  ;;  %v7446_v3 = vadd.f32 %v5584_v41, %v5063_v24  ;;  %v5616_v61 = vadd.f32 %v5093_v30, %v5092_v50  ;;  %v2439_v7 = vpop.f32.mrb[45].mxu0  ;;  %v10223_v35 = vld [vmem:[#allocation34_spill] sm:$0xff] }
 0x23c   : > { %v4445_v38 = vmax.f32 %v2321_v36, 0.0  ;;  %v10218_v59 = vcombine.high %v10216_v63, %v10217_v29  ;;  %v10219_v15 = vcombine.high %v7000_v8, %v7002_v25  ;;  %v4447_v40 = vmax.f32 %v2434_v4, 0.0 }
 0x23d   : > { %3355 = vmatpush1.bf16.msra.mxu1 %v10215_v51  ;;  %v5126_v1 = vmul.f32 %v6823_v32, %v4446_v17  ;;  %v2325_v24 = vadd.f32 %v2324_v31, %v6791_v18  ;;  %v2438_v50 = vadd.f32 %v2437_v12, %v6805_v26  ;;  %v10220_v41 = vcombine.low %v7000_v8, %v7002_v25  ;;  %v2441_v17 = vpop.f32.mrb[46].mxu0 }
 0x23e   : > { %3356 = vmatprep.subr.bf16.mxu1 %v10218_v59  ;;  %3467 = vmatprep.subr.bf16.mxu0 %v10219_v15  ;;  %v5617_v30 = vadd.f32 %v5616_v61, %v5094_v48  ;;  %v5125_v36 = vmul.f32 %v6827_v33, %v4445_v38  ;;  %v2327_v51 = vadd.f32 %v2326_v22, %v6809_v27  ;;  %v2328_v15 = vpop.f32.mrb[30].mxu1  ;;  %v2443_v48 = vpop.f32.mrb[47].mxu0 }
 0x23f   : > { %3468 = vmatpush1.bf16.msra.mxu0 %v10220_v41  ;;  %v2440_v59 = vadd.f32 %v2439_v7, %v6813_v28  ;;  %v10221_v4 = vcombine.high %v7022_v10, %v7024_v60  ;;  %v5127_v31 = vmul.f32 %v6831_v34, %v4447_v40  ;;  %v4476_v12 = vmax.f32 %v2325_v24, 0.0  ;;  %v2330_v8 = vpop.f32.mrb[31].mxu1  ;;  %v7478_v40 = vld [vmem:[#allocation3 + $0x168] sm:$0xff] }
 0x240   : > { %v4478_v49 = vmax.f32 %v2438_v50, 0.0  ;;  %v2329_v25 = vadd.f32 %v2328_v15, %v6791_v18  ;;  %v10222_v61 = vcombine.low %v10216_v63, %v10217_v29  ;;  %v7473_v38 = vadd.f32 %v5617_v30, %v5095_v62  ;;  %v7480_v24 = vld [vmem:[#allocation3 + $0x1e8] sm:$0xff]  ;;  %3177 = vmatmul.mubr.bf16.gmra.mrb[136].mxu1 %v6619_v23 }
 0x241   : > { %3469 = vmatprep.subr.bf16.mxu0 %v10221_v4  ;;  %v5649_v22 = vadd.f32 %v5125_v36, %v5124_v0  ;;  %v4477_v7 = vmax.f32 %v2327_v51, 0.0  ;;  %v4479_v41 = vmax.f32 %v2440_v59, 0.0  ;;  %v10224_v4 = vcombine.high %v6998_v21, %v10223_v35  ;;  %3290 = vmatmul.mubr.bf16.gmra.mrb[152].mxu0 %v6619_v23 }
 0x242   : > { %3357 = vmatpush1.bf16.msra.mxu1 %v10222_v61  ;;  %v5156_v18 = vmul.f32 %v6801_v42, %v4476_v12  ;;  %v5158_v50 = vmul.f32 %v6823_v32, %v4478_v49  ;;  %v4508_v15 = vmax.f32 %v2329_v25, 0.0  ;;  %v2442_v63 = vadd.f32 %v2441_v17, %v6805_v26  ;;  %3186 = vmatprep.mubr.bf16.mxu1 %v10139_v11  ;;  %v2480_v12 = vpop.f32.mrb[32].mxu1  ;;  %v2593_v25 = vpop.f32.mrb[48].mxu0  ;;  %v10229_v61 = vld [vmem:[#allocation26_spill] sm:$0xff] }
 0x243   : > { %3358 = vmatprep.subr.bf16.mxu1 %v10224_v4  ;;  %v5650_v62 = vadd.f32 %v5649_v22, %v5126_v1  ;;  %v5157_v0 = vmul.f32 %v6827_v33, %v4477_v7  ;;  %v5159_v29 = vmul.f32 %v6831_v34, %v4479_v41  ;;  %v2331_v30 = vadd.f32 %v2330_v8, %v6809_v27  ;;  %v2482_v7 = vpop.f32.mrb[33].mxu1  ;;  %v2595_v41 = vpop.f32.mrb[49].mxu0  ;;  %v10230_v4 = vld [vmem:[#allocation35_spill] sm:$0xff] }
 0x244   : > { %v5188_v36 = vmul.f32 %v6801_v42, %v4508_v15  ;;  %v4510_v51 = vmax.f32 %v2442_v63, 0.0  ;;  %v2444_v49 = vadd.f32 %v2443_v48, %v6813_v28  ;;  %3299 = vmatprep.mubr.bf16.mxu0 %v10139_v11  ;;  %v10225_v26 = vcombine.low %v6998_v21, %v10223_v35 }
 0x245   : > { %v7499_v59 = vadd.f32 %v5650_v62, %v5127_v31  ;;  %v5682_v17 = vadd.f32 %v5157_v0, %v5156_v18  ;;  %v4509_v27 = vmax.f32 %v2331_v30, 0.0  ;;  %v10226_v42 = vcombine.high %v7037_v43, %v7049_v5  ;;  %v10228_v31 = vld [vmem:[#allocation25_spill] sm:$0xff]  ;;  %v10231_v18 = vld [vmem:[#allocation36_spill] sm:$0xff]  ;;  %v10234_v0 = vld [vmem:[#allocation31_spill] sm:$0xff] }
 0x246   : > { %3359 = vmatpush1.bf16.msra.mxu1 %v10225_v26  ;;  %v10227_v28 = vcombine.low %v7022_v10, %v7024_v60  ;;  %v5190_v35 = vmul.f32 %v6823_v32, %v4510_v51  ;;  %v4511_v8 = vmax.f32 %v2444_v49, 0.0  ;;  %v2481_v48 = vadd.f32 %v2480_v12, %v10228_v31  ;;  %v10233_v60 = vld [vmem:[#allocation27_spill] sm:$0xff]  ;;  %v2484_v26 = vpop.f32.mrb[34].mxu1  ;;  %v2597_v32 = vpop.f32.mrb[50].mxu0 }
 0x247   : > { %3360 = vmatprep.subr.bf16.mxu1 %v10226_v42  ;;  %v2594_v22 = vadd.f32 %v2593_v25, %v10229_v61  ;;  %v10232_v15 = vcombine.high %v10230_v4, %v10231_v18  ;;  %v5683_v63 = vadd.f32 %v5682_v17, %v5158_v50  ;;  %v5189_v10 = vmul.f32 %v6827_v33, %v4509_v27  ;;  %v2486_v42 = vpop.f32.mrb[35].mxu1 }
 0x248   : > { %3470 = vmatpush1.bf16.msra.mxu0 %v10227_v28  ;;  %v2483_v62 = vadd.f32 %v2482_v7, %v10233_v60  ;;  %v2596_v30 = vadd.f32 %v2595_v41, %v10234_v0  ;;  %v5191_v51 = vmul.f32 %v6831_v34, %v4511_v8  ;;  %v4032_v49 = vmax.f32 %v2481_v48, 0.0  ;;  %v2599_v28 = vpop.f32.mrb[51].mxu0  ;;  %v10236_v7 = vld [vmem:[#allocation39_spill] sm:$0xff]  ;;  %v10239_v8 = vld [vmem:[#allocation29_spill] sm:$0xff]  ;;  %3187 = vmatmul.mubr.bf16.gmra.mrb[140].mxu1 %v6617_v20 }
 0x249   : > { %3471 = vmatprep.subr.bf16.mxu0 %v10232_v15  ;;  %v4034_v12 = vmax.f32 %v2594_v22, 0.0  ;;  %v2485_v25 = vadd.f32 %v2484_v26, %v10228_v31  ;;  %v10235_v15 = vcombine.low %v7037_v43, %v7049_v5  ;;  %v7523_v50 = vadd.f32 %v5683_v63, %v5159_v29  ;;  %v10240_v22 = vld [vmem:[#allocation30_spill] sm:$0xff]  ;;  %3300 = vmatmul.mubr.bf16.gmra.mrb[156].mxu0 %v6617_v20  ;;  %v10243_v63 = vld [vmem:[#allocation32_spill] sm:$0xff] }
 0x24a   : > { %v5715_v33 = vadd.f32 %v5189_v10, %v5188_v36  ;;  %v4033_v17 = vmax.f32 %v2483_v62, 0.0  ;;  %v4035_v27 = vmax.f32 %v2596_v30, 0.0  ;;  %v10237_v41 = vcombine.high %v7068_v16, %v10236_v7  ;;  %v7536_v5 = vld [vmem:[#allocation3 + $0x560] sm:$0xff]  ;;  %3196 = vmatprep.mubr.bf16.mxu1 %v10139_v11  ;;  %3309 = vmatprep.mubr.bf16.mxu0 %v10139_v11 }
 0x24b   : > { %3361 = vmatpush1.bf16.msra.mxu1 %v10235_v15  ;;  %v10238_v34 = vcombine.low %v10230_v4, %v10231_v18  ;;  %v4712_v48 = vmul.f32 %v10239_v8, %v4032_v49  ;;  %v4714_v26 = vmul.f32 %v10240_v22, %v4034_v12  ;;  %v4064_v1 = vmax.f32 %v2485_v25, 0.0  ;;  %10241 = vst [vmem:[#allocation18_spill] sm:$0xff] %v7536_v5  ;;  %v7538_v29 = vld [vmem:[#allocation3 + $0x5e0] sm:$0xff]  ;;  %v10244_v4 = vld [vmem:[#allocation33_spill] sm:$0xff] }
 0x24c   : > { %3362 = vmatprep.subr.bf16.mxu1 %v10237_v41  ;;  %v2598_v43 = vadd.f32 %v2597_v32, %v10229_v61  ;;  %10242 = vst [vmem:[#allocation19_spill] sm:$0xff] %v7538_v29  ;;  %v5716_v36 = vadd.f32 %v5715_v33, %v5190_v35  ;;  %v4713_v10 = vmul.f32 %v10243_v63, %v4033_v17  ;;  %v2490_v33 = vpop.f32.mrb[36].mxu1  ;;  %v10247_v17 = vld [vmem:[#allocation37_spill] sm:$0xff]  ;;  %v10258_v5 = vld [vmem:[#allocation46_spill] sm:$0xff] }
 0x24d   : > { %3472 = vmatpush1.bf16.msra.mxu0 %v10238_v34  ;;  %v4715_v18 = vmul.f32 %v10244_v4, %v4035_v27  ;;  %v2487_v62 = vadd.f32 %v2486_v42, %v10233_v60  ;;  %v5223_v30 = vadd.f32 %v7230_v45, %v4712_v48  ;;  %v4744_v32 = vmul.f32 %v10239_v8, %v4064_v1  ;;  %v2603_v42 = vpop.f32.mrb[52].mxu0  ;;  %v10248_v27 = vld [vmem:[#allocation38_spill] sm:$0xff]  ;;  %v10250_v45 = vld [vmem:[#allocation41_spill] sm:$0xff] }
 0x24e   : > { %v4066_v49 = vmax.f32 %v2598_v43, 0.0  ;;  %v2600_v12 = vadd.f32 %v2599_v28, %v10234_v0  ;;  %v10245_v35 = vcombine.low %v7068_v16, %v10236_v7  ;;  %v7551_v25 = vadd.f32 %v5716_v36, %v5191_v51  ;;  %v10251_v1 = vld [vmem:[#allocation42_spill] sm:$0xff]  ;;  %v2492_v36 = vpop.f32.mrb[37].mxu1 }
 0x24f   : > { %v4065_v15 = vmax.f32 %v2487_v62, 0.0  ;;  %v10249_v41 = vcombine.high %v10247_v17, %v10248_v27  ;;  %v10252_v34 = vcombine.high %v10250_v45, %v10251_v1  ;;  %v5224_v7 = vadd.f32 %v5223_v30, %v4713_v10  ;;  %v2605_v62 = vpop.f32.mrb[53].mxu0  ;;  %v2494_v10 = vpop.f32.mrb[38].mxu1 }
 0x250   : > { %3363 = vmatpush1.bf16.msra.mxu1 %v10245_v35  ;;  %10246 = vst [vmem:[#allocation6_spill] sm:$0xff] %v7551_v25  ;;  %v5256_v51 = vadd.f32 %v7246_v56, %v4744_v32  ;;  %v4746_v48 = vmul.f32 %v10240_v22, %v4066_v49  ;;  %v4067_v43 = vmax.f32 %v2600_v12, 0.0  ;;  %v10253_v35 = vcombine.low %v10247_v17, %v10248_v27  ;;  %v2607_v30 = vpop.f32.mrb[54].mxu0  ;;  %v10254_v56 = vld [vmem:[#allocation40_spill] sm:$0xff]  ;;  %v10255_v32 = vld [vmem:[#allocation43_spill] sm:$0xff] }
 0x251   : > { %3473 = vmatprep.subr.bf16.mxu0 %v10249_v41  ;;  %3364 = vmatprep.subr.bf16.mxu1 %v10252_v34  ;;  %v4745_v41 = vmul.f32 %v10243_v63, %v4065_v15  ;;  %v2491_v34 = vadd.f32 %v2490_v33, %v10228_v31  ;;  %v2604_v28 = vadd.f32 %v2603_v42, %v10229_v61  ;;  %v2496_v15 = vpop.f32.mrb[39].mxu1  ;;  %v10259_v25 = vld [vmem:[#allocation47_spill] sm:$0xff] }
 0x252   : > { %3474 = vmatpush1.bf16.msra.mxu0 %v10253_v35  ;;  %v2493_v16 = vadd.f32 %v2492_v36, %v10233_v60  ;;  %v10256_v49 = vcombine.high %v10254_v56, %v10255_v32  ;;  %v5225_v12 = vadd.f32 %v5224_v7, %v4714_v26  ;;  %v4747_v21 = vmul.f32 %v10244_v4, %v4067_v43  ;;  %v2609_v35 = vpop.f32.mrb[55].mxu0 }
 0x253   : > { %v2606_v17 = vadd.f32 %v2605_v62, %v10234_v0  ;;  %v2495_v27 = vadd.f32 %v2494_v10, %v10228_v31  ;;  %v10257_v33 = vcombine.low %v10250_v45, %v10251_v1  ;;  %v5257_v42 = vadd.f32 %v5256_v51, %v4745_v41  ;;  %3197 = vmatmul.mubr.bf16.gmra.mrb[144].mxu1 %v6631_v55  ;;  %v7589_v45 = vld [vmem:[#allocation3 + $0x268] sm:$0xff] }
 0x254   : > { %3475 = vmatprep.subr.bf16.mxu0 %v10256_v49  ;;  %v4096_v36 = vmax.f32 %v2491_v34, 0.0  ;;  %v4098_v20 = vmax.f32 %v2604_v28, 0.0  ;;  %v4097_v29 = vmax.f32 %v2493_v16, 0.0  ;;  %v10260_v49 = vcombine.high %v10258_v5, %v10259_v25  ;;  %3310 = vmatmul.mubr.bf16.gmra.mrb[160].mxu0 %v6631_v55  ;;  %v7591_v1 = vld [vmem:[#allocation3 + $0x2e8] sm:$0xff] }
 0x255   : > { %3365 = vmatpush1.bf16.msra.mxu1 %v10257_v33  ;;  %v7584_v26 = vadd.f32 %v5225_v12, %v4715_v18  ;;  %v4099_v7 = vmax.f32 %v2606_v17, 0.0  ;;  %v4128_v43 = vmax.f32 %v2495_v27, 0.0  ;;  %v2608_v62 = vadd.f32 %v2607_v30, %v10229_v61  ;;  %3206 = vmatprep.mubr.bf16.mxu1 %v10139_v11  ;;  %v2500_v17 = vpop.f32.mrb[40].mxu1  ;;  %v2613_v27 = vpop.f32.mrb[56].mxu0  ;;  %v10262_v33 = vld [vmem:[#allocation44_spill] sm:$0xff] }
 0x256   : > { %3576 = vmatprep.subr.bf16.mxu1 %v10260_v49  ;;  %v5258_v28 = vadd.f32 %v5257_v42, %v4746_v48  ;;  %v4776_v16 = vmul.f32 %v10239_v8, %v4096_v36  ;;  %v4778_v51 = vmul.f32 %v10240_v22, %v4098_v20  ;;  %v4777_v18 = vmul.f32 %v10243_v63, %v4097_v29  ;;  %v10263_v42 = vld [vmem:[#allocation45_spill] sm:$0xff] }
 0x257   : > { %v4779_v41 = vmul.f32 %v10244_v4, %v4099_v7  ;;  %v4808_v34 = vmul.f32 %v10239_v8, %v4128_v43  ;;  %v4130_v10 = vmax.f32 %v2608_v62, 0.0  ;;  %v2497_v30 = vadd.f32 %v2496_v15, %v10233_v60  ;;  %3319 = vmatprep.mubr.bf16.mxu0 %v10139_v11  ;;  %v2502_v7 = vpop.f32.mrb[41].mxu1 }
 0x258   : > { %v10261_v48 = vcombine.low %v10254_v56, %v10255_v32  ;;  %v7604_v12 = vadd.f32 %v5258_v28, %v4747_v21  ;;  %v5289_v20 = vadd.f32 %v7274_v47, %v4776_v16  ;;  %v2610_v29 = vadd.f32 %v2609_v35, %v10234_v0  ;;  %v2615_v47 = vpop.f32.mrb[57].mxu0  ;;  %v2504_v16 = vpop.f32.mrb[42].mxu1 }
 0x259   : > { %v10264_v36 = vcombine.high %v10262_v33, %v10263_v42  ;;  %v5322_v49 = vadd.f32 %v7292_v6, %v4808_v34  ;;  %v4810_v56 = vmul.f32 %v10240_v22, %v4130_v10  ;;  %v4129_v32 = vmax.f32 %v2497_v30, 0.0  ;;  %v2506_v10 = vpop.f32.mrb[43].mxu1 }
 0x25a   : > { %3476 = vmatpush1.bf16.msra.mxu0 %v10261_v48  ;;  %v2501_v21 = vadd.f32 %v2500_v17, %v10228_v31  ;;  %v5290_v43 = vadd.f32 %v5289_v20, %v4777_v18  ;;  %v4131_v35 = vmax.f32 %v2610_v29, 0.0  ;;  %v2614_v62 = vadd.f32 %v2613_v27, %v10229_v61  ;;  %v2617_v48 = vpop.f32.mrb[58].mxu0 }
 0x25b   : > { %3477 = vmatprep.subr.bf16.mxu0 %v10264_v36  ;;  %v2503_v28 = vadd.f32 %v2502_v7, %v10233_v60  ;;  %v4809_v36 = vmul.f32 %v10243_v63, %v4129_v32  ;;  %v2616_v6 = vadd.f32 %v2615_v47, %v10234_v0  ;;  %v2505_v34 = vadd.f32 %v2504_v16, %v10228_v31  ;;  %v2619_v30 = vpop.f32.mrb[59].mxu0 }
 0x25c   : > { %v4160_v15 = vmax.f32 %v2501_v21, 0.0  ;;  %v10265_v17 = vcombine.low %v10262_v33, %v10263_v42  ;;  %v5291_v18 = vadd.f32 %v5290_v43, %v4778_v51  ;;  %v4811_v20 = vmul.f32 %v10244_v4, %v4131_v35  ;;  %3207 = vmatmul.mubr.bf16.gmra.mrb[148].mxu1 %v6629_v52  ;;  %3320 = vmatmul.mubr.bf16.gmra.mrb[164].mxu0 %v6629_v52 }
 0x25d   : > { %v4162_v29 = vmax.f32 %v2614_v62, 0.0  ;;  %v4161_v27 = vmax.f32 %v2503_v28, 0.0  ;;  %v10266_v7 = vcombine.high %v7372_v46, %v7374_v2  ;;  %v5323_v32 = vadd.f32 %v5322_v49, %v4809_v36  ;;  %3216 = vmatprep.mubr.bf16.mxu1 %v10139_v11  ;;  %3329 = vmatprep.mubr.bf16.mxu0 %v10139_v11 }
 0x25e   : > { %3478 = vmatpush1.bf16.msra.mxu0 %v10265_v17  ;;  %v4840_v21 = vmul.f32 %v10239_v8, %v4160_v15  ;;  %v4163_v47 = vmax.f32 %v2616_v6, 0.0  ;;  %v4192_v16 = vmax.f32 %v2505_v34, 0.0  ;;  %v7631_v33 = vadd.f32 %v5291_v18, %v4779_v41  ;;  %v2510_v6 = vpop.f32.mrb[44].mxu1  ;;  %v2623_v34 = vpop.f32.mrb[60].mxu0 }
 0x25f   : > { %3689 = vmatprep.subr.bf16.mxu0 %v10266_v7  ;;  %v4842_v51 = vmul.f32 %v10240_v22, %v4162_v29  ;;  %v4841_v42 = vmul.f32 %v10243_v63, %v4161_v27  ;;  %v2618_v43 = vadd.f32 %v2617_v48, %v10229_v61  ;;  %v5324_v35 = vadd.f32 %v5323_v32, %v4810_v56  ;;  %v2512_v29 = vpop.f32.mrb[45].mxu1  ;;  %v2625_v27 = vpop.f32.mrb[61].mxu0 }
 0x260   : > { %v5355_v49 = vadd.f32 %v7306_v9, %v4840_v21  ;;  %v4843_v15 = vmul.f32 %v10244_v4, %v4163_v47  ;;  %v4872_v62 = vmul.f32 %v10239_v8, %v4192_v16  ;;  %v2507_v41 = vadd.f32 %v2506_v10, %v10233_v60  ;;  %v2514_v21 = vpop.f32.mrb[46].mxu1  ;;  %v2627_v47 = vpop.f32.mrb[62].mxu0 }
 0x261   : > { %v4194_v28 = vmax.f32 %v2618_v43, 0.0  ;;  %v2620_v36 = vadd.f32 %v2619_v30, %v10234_v0  ;;  %v7645_v17 = vadd.f32 %v5324_v35, %v4811_v20  ;;  %v2511_v18 = vadd.f32 %v2510_v6, %v10228_v31  ;;  %v2516_v35 = vpop.f32.mrb[47].mxu1 }
 0x262   : > { %v5356_v56 = vadd.f32 %v5355_v49, %v4841_v42  ;;  %v5388_v9 = vadd.f32 %v7324_v14, %v4872_v62  ;;  %v4193_v32 = vmax.f32 %v2507_v41, 0.0  ;;  %v2624_v30 = vadd.f32 %v2623_v34, %v10229_v61  ;;  %v2629_v14 = vpop.f32.mrb[63].mxu0 }
 0x263   : > { %v4874_v7 = vmul.f32 %v10240_v22, %v4194_v28  ;;  %v4195_v10 = vmax.f32 %v2620_v36, 0.0  ;;  %v4224_v43 = vmax.f32 %v2511_v18, 0.0  ;;  %v2513_v20 = vadd.f32 %v2512_v29, %v10233_v60 }
 0x264   : > { %v5357_v16 = vadd.f32 %v5356_v56, %v4842_v51  ;;  %v2626_v42 = vadd.f32 %v2625_v27, %v10234_v0  ;;  %v4873_v49 = vmul.f32 %v10243_v63, %v4193_v32  ;;  %v4226_v6 = vmax.f32 %v2624_v30, 0.0  ;;  %3217 = vmatmul.mubr.bf16.gmra.mrb[152].mxu1 %v10197_v19  ;;  %3330 = vmatmul.mubr.bf16.gmra.mrb[168].mxu0 %v10197_v19 }
 0x265   : > { %v4875_v62 = vmul.f32 %v10244_v4, %v4195_v10  ;;  %v2515_v28 = vadd.f32 %v2514_v21, %v10228_v31  ;;  %v4904_v36 = vmul.f32 %v10239_v8, %v4224_v43  ;;  %v4225_v34 = vmax.f32 %v2513_v20, 0.0  ;;  %3226 = vmatprep.mubr.bf16.mxu1 %v10139_v11  ;;  %3339 = vmatprep.mubr.bf16.mxu0 %v10139_v11  ;;  %v2520_v20 = vpop.f32.mrb[48].mxu1 }
 0x266   : > { %v7656_v41 = vadd.f32 %v5357_v16, %v4843_v15  ;;  %v4227_v51 = vmax.f32 %v2626_v42, 0.0  ;;  %v5389_v56 = vadd.f32 %v5388_v9, %v4873_v49  ;;  %v4906_v18 = vmul.f32 %v10240_v22, %v4226_v6 }
 0x267   : > { %v4256_v29 = vmax.f32 %v2515_v28, 0.0  ;;  %v2628_v27 = vadd.f32 %v2627_v47, %v10229_v61  ;;  %v5421_v15 = vadd.f32 %v7338_v57, %v4904_v36  ;;  %v4905_v32 = vmul.f32 %v10243_v63, %v4225_v34  ;;  %v2633_v47 = vpop.f32.mrb[64].mxu0  ;;  %v2522_v28 = vpop.f32.mrb[49].mxu1 }
 0x268   : > { %v4907_v10 = vmul.f32 %v10244_v4, %v4227_v51  ;;  %v2517_v30 = vadd.f32 %v2516_v35, %v10233_v60  ;;  %v5390_v21 = vadd.f32 %v5389_v56, %v4874_v7  ;;  %v2630_v43 = vadd.f32 %v2629_v14, %v10234_v0  ;;  %v2635_v36 = vpop.f32.mrb[65].mxu0  ;;  %v2524_v56 = vpop.f32.mrb[50].mxu1 }
 0x269   : > { %v4936_v9 = vmul.f32 %v10239_v8, %v4256_v29  ;;  %v4258_v16 = vmax.f32 %v2628_v27, 0.0  ;;  %v5422_v42 = vadd.f32 %v5421_v15, %v4905_v32  ;;  %v2521_v6 = vadd.f32 %v2520_v20, %v10228_v31  ;;  %v2637_v29 = vpop.f32.mrb[66].mxu0 }
 0x26a   : > { %v4257_v49 = vmax.f32 %v2517_v30, 0.0  ;;  %v2634_v57 = vadd.f32 %v2633_v47, %v10229_v61  ;;  %v7673_v34 = vadd.f32 %v5390_v21, %v4875_v62  ;;  %v4259_v51 = vmax.f32 %v2630_v43, 0.0  ;;  %v2526_v30 = vpop.f32.mrb[51].mxu1  ;;  %v2639_v20 = vpop.f32.mrb[67].mxu0  ;;  %v10267_v43 = vld [vmem:[#allocation12_spill] sm:$0xff] }
 0x26b   : > { %v5454_v35 = vadd.f32 %v7358_v53, %v4936_v9  ;;  %v4938_v7 = vmul.f32 %v10240_v22, %v4258_v16  ;;  %v5423_v14 = vadd.f32 %v5422_v42, %v4906_v18  ;;  %v4288_v15 = vmax.f32 %v2521_v6, 0.0 }
 0x26c   : > { %v4937_v27 = vmul.f32 %v10243_v63, %v4257_v49  ;;  %v4290_v32 = vmax.f32 %v2634_v57, 0.0  ;;  %v4939_v47 = vmul.f32 %v10244_v4, %v4259_v51  ;;  %v2523_v48 = vadd.f32 %v2522_v28, %v10233_v60  ;;  %3227 = vmatmul.mubr.bf16.gmra.mrb[156].mxu1 %v10267_v43  ;;  %3340 = vmatmul.mubr.bf16.gmra.mrb[172].mxu0 %v10267_v43 }
 0x26d   : > { %v2636_v62 = vadd.f32 %v2635_v36, %v10234_v0  ;;  %v2525_v53 = vadd.f32 %v2524_v56, %v10228_v31  ;;  %v7682_v21 = vadd.f32 %v5423_v14, %v4907_v10  ;;  %v4968_v16 = vmul.f32 %v10239_v8, %v4288_v15  ;;  %3382 = vmatprep.mubr.bf16.mxu1 %v10139_v11  ;;  %v2530_v14 = vpop.f32.mrb[52].mxu1 }
 0x26e   : > { %v5455_v9 = vadd.f32 %v5454_v35, %v4937_v27  ;;  %v4970_v18 = vmul.f32 %v10240_v22, %v4290_v32  ;;  %v4289_v42 = vmax.f32 %v2523_v48, 0.0  ;;  %v2638_v57 = vadd.f32 %v2637_v29, %v10229_v61  ;;  %3495 = vmatprep.mubr.bf16.mxu0 %v10139_v11  ;;  %v2643_v27 = vpop.f32.mrb[68].mxu0 }
 0x26f   : > { %v4291_v49 = vmax.f32 %v2636_v62, 0.0  ;;  %v4320_v6 = vmax.f32 %v2525_v53, 0.0  ;;  %v5487_v10 = vadd.f32 %v7370_v39, %v4968_v16  ;;  %v2527_v36 = vadd.f32 %v2526_v30, %v10233_v60  ;;  %v2532_v30 = vpop.f32.mrb[53].mxu1  ;;  %v2645_v62 = vpop.f32.mrb[69].mxu0 }
 0x270   : > { %v5456_v28 = vadd.f32 %v5455_v9, %v4938_v7  ;;  %v2640_v35 = vadd.f32 %v2639_v20, %v10234_v0  ;;  %v4969_v51 = vmul.f32 %v10243_v63, %v4289_v42  ;;  %v4322_v29 = vmax.f32 %v2638_v57, 0.0  ;;  %v2534_v42 = vpop.f32.mrb[54].mxu1 }
 0x271   : > { %v4971_v48 = vmul.f32 %v10244_v4, %v4291_v49  ;;  %v5000_v56 = vmul.f32 %v10239_v8, %v4320_v6  ;;  %v4321_v7 = vmax.f32 %v2527_v36, 0.0  ;;  %v2531_v39 = vadd.f32 %v2530_v14, %v10228_v31  ;;  %v2647_v49 = vpop.f32.mrb[70].mxu0  ;;  %v2536_v36 = vpop.f32.mrb[55].mxu1 }
 0x272   : > { %v7697_v15 = vadd.f32 %v5456_v28, %v4939_v47  ;;  %v4323_v32 = vmax.f32 %v2640_v35, 0.0  ;;  %v5488_v20 = vadd.f32 %v5487_v10, %v4969_v51  ;;  %v5002_v9 = vmul.f32 %v10240_v22, %v4322_v29  ;;  %v2649_v35 = vpop.f32.mrb[71].mxu0 }
 0x273   : > { %v5520_v53 = vadd.f32 %v7393_v13, %v5000_v56  ;;  %v2644_v16 = vadd.f32 %v2643_v27, %v10229_v61  ;;  %v5001_v6 = vmul.f32 %v10243_v63, %v4321_v7  ;;  %v4352_v57 = vmax.f32 %v2531_v39, 0.0  ;;  %v10269_v7 = vld [vmem:[#allocation7_spill] sm:$0xff] }
 0x274   : > { %10268 = vst [vmem:[#allocation24_spill] sm:$0xff] %v7697_v15  ;;  %v5003_v47 = vmul.f32 %v10244_v4, %v4323_v32  ;;  %v2533_v28 = vadd.f32 %v2532_v30, %v10233_v60  ;;  %v5489_v14 = vadd.f32 %v5488_v20, %v4970_v18  ;;  %v2646_v10 = vadd.f32 %v2645_v62, %v10234_v0 }
 0x275   : > { %v4354_v43 = vmax.f32 %v2644_v16, 0.0  ;;  %v2535_v13 = vadd.f32 %v2534_v42, %v10228_v31  ;;  %v5521_v51 = vadd.f32 %v5520_v53, %v5001_v6  ;;  %v5032_v56 = vmul.f32 %v10239_v8, %v4352_v57  ;;  %3383 = vmatmul.mubr.bf16.vlgmr.msra.gmra.mrb[160].mxu1 %v10269_v7  ;;  %3496 = vmatmul.mubr.bf16.vlgmr.msra.gmra.mrb[176].mxu0 %v10269_v7  ;;  %v10272_v6 = vld [vmem:[#allocation49_spill] sm:$0xff] }
 0x276   : > { %v4353_v29 = vmax.f32 %v2533_v28, 0.0  ;;  %v2648_v27 = vadd.f32 %v2647_v49, %v10229_v61  ;;  %v7711_v32 = vadd.f32 %v5489_v14, %v4971_v48  ;;  %v4355_v30 = vmax.f32 %v2646_v10, 0.0  ;;  %3392 = vmatprep.mubr.bf16.mxu1 %v10139_v11  ;;  %3505 = vmatprep.mubr.bf16.mxu0 %v10139_v11 }
 0x277   : > { %v5034_v39 = vmul.f32 %v10240_v22, %v4354_v43  ;;  %v4384_v15 = vmax.f32 %v2535_v13, 0.0  ;;  %v10270_v18 = vcombine.low %v10258_v5, %v10259_v25  ;;  %v5522_v62 = vadd.f32 %v5521_v51, %v5002_v9  ;;  %v2540_v5 = vpop.f32.mrb[56].mxu1  ;;  %v2653_v25 = vpop.f32.mrb[72].mxu0  ;;  %v10271_v9 = vld [vmem:[#allocation48_spill] sm:$0xff] }
 0x278   : > { %v5553_v20 = vadd.f32 %v7420_v44, %v5032_v56  ;;  %v5033_v53 = vmul.f32 %v10243_v63, %v4353_v29  ;;  %v4386_v16 = vmax.f32 %v2648_v27, 0.0  ;;  %v5035_v43 = vmul.f32 %v10244_v4, %v4355_v30  ;;  %v2542_v13 = vpop.f32.mrb[57].mxu1  ;;  %v2655_v51 = vpop.f32.mrb[73].mxu0 }
 0x279   : > { %3577 = vmatpush1.bf16.msra.mxu1 %v10270_v18  ;;  %v5064_v48 = vmul.f32 %v10239_v8, %v4384_v15  ;;  %v2537_v42 = vadd.f32 %v2536_v36, %v10233_v60  ;;  %v2650_v49 = vadd.f32 %v2649_v35, %v10234_v0  ;;  %v10273_v44 = vcombine.high %v10271_v9, %v10272_v6  ;;  %v2544_v27 = vpop.f32.mrb[58].mxu1 }
 0x27a   : > { %v7729_v57 = vadd.f32 %v5522_v62, %v5003_v47  ;;  %v5554_v28 = vadd.f32 %v5553_v20, %v5033_v53  ;;  %v5066_v14 = vmul.f32 %v10240_v22, %v4386_v16  ;;  %v2541_v10 = vadd.f32 %v2540_v5, %v10228_v31  ;;  %v2657_v47 = vpop.f32.mrb[74].mxu0  ;;  %v10277_v16 = vld [vmem:[#allocation53_spill] sm:$0xff] }
 0x27b   : > { %3578 = vmatprep.subr.bf16.mxu1 %v10273_v44  ;;  %v10274_v15 = vcombine.low %v7372_v46, %v7374_v2  ;;  %v5586_v36 = vadd.f32 %v7446_v3, %v5064_v48  ;;  %v4385_v35 = vmax.f32 %v2537_v42, 0.0  ;;  %v4387_v56 = vmax.f32 %v2650_v49, 0.0  ;;  %v2546_v3 = vpop.f32.mrb[59].mxu1  ;;  %v2659_v53 = vpop.f32.mrb[75].mxu0  ;;  %v10278_v48 = vld [vmem:[#allocation54_spill] sm:$0xff] }
 0x27c   : > { %v2654_v29 = vadd.f32 %v2653_v25, %v10229_v61  ;;  %v10275_v30 = vcombine.low %v10271_v9, %v10272_v6  ;;  %v10276_v18 = vcombine.high %v7478_v40, %v7480_v24  ;;  %v5555_v62 = vadd.f32 %v5554_v28, %v5034_v39 }
 0x27d   : > { %3690 = vmatpush1.bf16.msra.mxu0 %v10274_v15  ;;  %v4416_v20 = vmax.f32 %v2541_v10, 0.0  ;;  %v2543_v46 = vadd.f32 %v2542_v13, %v10233_v60  ;;  %v2656_v2 = vadd.f32 %v2655_v51, %v10234_v0  ;;  %v10279_v42 = vcombine.high %v10277_v16, %v10278_v48  ;;  %3393 = vmatmul.mubr.bf16.gmra.mrb[164].mxu1 %v10214_v54 }
 0x27e   : > { %3579 = vmatpush1.bf16.msra.mxu1 %v10275_v30  ;;  %3691 = vmatprep.subr.bf16.mxu0 %v10276_v18  ;;  %v5065_v49 = vmul.f32 %v10243_v63, %v4385_v35  ;;  %v5067_v5 = vmul.f32 %v10244_v4, %v4387_v56  ;;  %v4418_v25 = vmax.f32 %v2654_v29, 0.0  ;;  %v2545_v9 = vadd.f32 %v2544_v27, %v10228_v31  ;;  %v2550_v30 = vpop.f32.mrb[60].mxu1  ;;  %v2663_v18 = vpop.f32.mrb[76].mxu0 }
 0x27f   : > { %3580 = vmatprep.subr.bf16.mxu1 %v10279_v42  ;;  %v7752_v6 = vadd.f32 %v5555_v62, %v5035_v43  ;;  %v5096_v39 = vmul.f32 %v10239_v8, %v4416_v20  ;;  %v4417_v44 = vmax.f32 %v2543_v46, 0.0  ;;  %v4419_v28 = vmax.f32 %v2656_v2, 0.0  ;;  %3506 = vmatmul.mubr.bf16.gmra.mrb[180].mxu0 %v10214_v54  ;;  %v2665_v42 = vpop.f32.mrb[77].mxu0 }
 0x280   : > { %v10280_v10 = vcombine.low %v7478_v40, %v7480_v24  ;;  %v5587_v13 = vadd.f32 %v5586_v36, %v5065_v49  ;;  %v5098_v51 = vmul.f32 %v10240_v22, %v4418_v25  ;;  %v4448_v15 = vmax.f32 %v2545_v9, 0.0  ;;  %3402 = vmatprep.mubr.bf16.mxu1 %v10139_v11  ;;  %3515 = vmatprep.mubr.bf16.mxu0 %v10139_v11  ;;  %v10283_v49 = vld [vmem:[#allocation60_spill] sm:$0xff] }
 0x281   : > { %v2658_v35 = vadd.f32 %v2657_v47, %v10229_v61  ;;  %v5619_v43 = vadd.f32 %v7473_v38, %v5096_v39  ;;  %v5097_v56 = vmul.f32 %v10243_v63, %v4417_v44  ;;  %v5099_v29 = vmul.f32 %v10244_v4, %v4419_v28 }
 0x282   : > { %3692 = vmatpush1.bf16.msra.mxu0 %v10280_v10  ;;  %v2547_v27 = vadd.f32 %v2546_v3, %v10233_v60  ;;  %v5588_v40 = vadd.f32 %v5587_v13, %v5066_v14  ;;  %v5128_v24 = vmul.f32 %v10239_v8, %v4448_v15  ;;  %v2660_v47 = vadd.f32 %v2659_v53, %v10234_v0  ;;  %v2552_v3 = vpop.f32.mrb[61].mxu1  ;;  %v10284_v53 = vld [vmem:[#allocation61_spill] sm:$0xff]  ;;  %v2667_v10 = vpop.f32.mrb[78].mxu0 }
 0x283   : > { %v4450_v36 = vmax.f32 %v2658_v35, 0.0  ;;  %v10281_v62 = vcombine.low %v10277_v16, %v10278_v48  ;;  %v10282_v38 = vcombine.high %v7589_v45, %v7591_v1  ;;  %v5620_v20 = vadd.f32 %v5619_v43, %v5097_v56  ;;  %v2554_v28 = vpop.f32.mrb[62].mxu1 }
 0x284   : > { %v4449_v46 = vmax.f32 %v2547_v27, 0.0  ;;  %v2551_v2 = vadd.f32 %v2550_v30, %v10228_v31  ;;  %v2664_v14 = vadd.f32 %v2663_v18, %v10229_v61  ;;  %v10285_v25 = vcombine.high %v10283_v49, %v10284_v53  ;;  %v2556_v56 = vpop.f32.mrb[63].mxu1  ;;  %v2669_v27 = vpop.f32.mrb[79].mxu0 }
 0x285   : > { %3581 = vmatpush1.bf16.msra.mxu1 %v10281_v62  ;;  %3693 = vmatprep.subr.bf16.mxu0 %v10282_v38  ;;  %v10286_v16 = vcombine.low %v7589_v45, %v7591_v1  ;;  %v7784_v48 = vadd.f32 %v5588_v40, %v5067_v5  ;;  %v5652_v9 = vadd.f32 %v7499_v59, %v5128_v24  ;;  %v4451_v44 = vmax.f32 %v2660_v47, 0.0 }
 0x286   : > { %3582 = vmatprep.subr.bf16.mxu1 %v10285_v25  ;;  %v5130_v39 = vmul.f32 %v10240_v22, %v4450_v36  ;;  %v5621_v13 = vadd.f32 %v5620_v20, %v5098_v51  ;;  %v5129_v15 = vmul.f32 %v10243_v63, %v4449_v46  ;;  %v4480_v35 = vmax.f32 %v2551_v2, 0.0  ;;  %3403 = vmatmul.mubr.bf16.gmra.mrb[168].mxu1 %v6619_v23 }
 0x287   : > { %3694 = vmatpush1.bf16.msra.mxu0 %v10286_v16  ;;  %v4482_v43 = vmax.f32 %v2664_v14, 0.0  ;;  %v5131_v30 = vmul.f32 %v10244_v4, %v4451_v44  ;;  %v2553_v45 = vadd.f32 %v2552_v3, %v10233_v60  ;;  %v2666_v1 = vadd.f32 %v2665_v42, %v10234_v0  ;;  %3412 = vmatprep.mubr.bf16.mxu1 %v10139_v11  ;;  %v2706_v42 = vpop.f32.mrb[64].mxu1 }
 0x288   : > { %v2555_v59 = vadd.f32 %v2554_v28, %v10228_v31  ;;  %v10287_v5 = vcombine.low %v10283_v49, %v10284_v53  ;;  %v7796_v40 = vadd.f32 %v5621_v13, %v5099_v29  ;;  %v5653_v51 = vadd.f32 %v5652_v9, %v5129_v15  ;;  %3516 = vmatmul.mubr.bf16.gmra.mrb[184].mxu0 %v6619_v23  ;;  %v2819_v49 = vpop.f32.mrb[80].mxu0  ;;  %v2708_v9 = vpop.f32.mrb[65].mxu1  ;;  %v10291_v28 = vld [vmem:[#allocation6_spill] sm:$0xff]  ;;  %v10292_v15 = vld [vmem:[#allocation52_spill] sm:$0xff] }
 0x289   : > { %v5160_v24 = vmul.f32 %v10239_v8, %v4480_v35  ;;  %v5162_v36 = vmul.f32 %v10240_v22, %v4482_v43  ;;  %v4481_v47 = vmax.f32 %v2553_v45, 0.0  ;;  %v4483_v18 = vmax.f32 %v2666_v1, 0.0  ;;  %3525 = vmatprep.mubr.bf16.mxu0 %v10139_v11  ;;  %v2710_v43 = vpop.f32.mrb[66].mxu1 }
 0x28a   : > { %3583 = vmatpush1.bf16.msra.mxu1 %v10287_v5  ;;  %v4512_v62 = vmax.f32 %v2555_v59, 0.0  ;;  %v2668_v38 = vadd.f32 %v2667_v10, %v10229_v61  ;;  %v5654_v31 = vadd.f32 %v5653_v51, %v5130_v39  ;;  %v2557_v20 = vadd.f32 %v2556_v56, %v10233_v60  ;;  %v2821_v39 = vpop.f32.mrb[81].mxu0  ;;  %v2712_v51 = vpop.f32.mrb[67].mxu1 }
 0x28b   : > { %v5685_v29 = vadd.f32 %v7523_v50, %v5160_v24  ;;  %v2670_v46 = vadd.f32 %v2669_v27, %v10234_v0  ;;  %v5161_v2 = vmul.f32 %v10243_v63, %v4481_v47  ;;  %v5163_v14 = vmul.f32 %v10244_v4, %v4483_v18  ;;  %v10289_v0 = vld [vmem:[#allocation50_spill] sm:$0xff]  ;;  %v2823_v56 = vpop.f32.mrb[82].mxu0 }
 0x28c   : > { %v5192_v3 = vmul.f32 %v10239_v8, %v4512_v62  ;;  %v4514_v61 = vmax.f32 %v2668_v38, 0.0  ;;  %v10288_v53 = vcombine.high %v7425_v58, %v7427_v37  ;;  %v7814_v50 = vadd.f32 %v5654_v31, %v5131_v30  ;;  %v10293_v27 = vld [vmem:[#allocation18_spill] sm:$0xff]  ;;  %v10294_v30 = vld [vmem:[#allocation19_spill] sm:$0xff]  ;;  %v2825_v24 = vpop.f32.mrb[83].mxu0 }
 0x28d   : > { %v4513_v60 = vmax.f32 %v2557_v20, 0.0  ;;  %v4515_v25 = vmax.f32 %v2670_v46, 0.0  ;;  %v2707_v16 = vadd.f32 %v2706_v42, %v10289_v0  ;;  %v10290_v44 = vcombine.low %v7425_v58, %v7427_v37  ;;  %v10296_v58 = vld [vmem:[#allocation56_spill] sm:$0xff] }
 0x28e   : > { %3584 = vmatprep.subr.bf16.mxu1 %v10288_v53  ;;  %v5686_v8 = vadd.f32 %v5685_v29, %v5161_v2  ;;  %v5718_v10 = vadd.f32 %v10291_v28, %v5192_v3  ;;  %v5194_v13 = vmul.f32 %v10240_v22, %v4514_v61  ;;  %v2820_v35 = vadd.f32 %v2819_v49, %v10292_v15  ;;  %v10297_v22 = vld [vmem:[#allocation58_spill] sm:$0xff]  ;;  %v10298_v29 = vld [vmem:[#allocation51_spill] sm:$0xff] }
 0x28f   : > { %3585 = vmatpush1.bf16.msra.mxu1 %v10290_v44  ;;  %v10295_v45 = vcombine.high %v10293_v27, %v10294_v30  ;;  %v5193_v1 = vmul.f32 %v10243_v63, %v4513_v60  ;;  %v5195_v59 = vmul.f32 %v10244_v4, %v4515_v25  ;;  %v4036_v5 = vmax.f32 %v2707_v16, 0.0  ;;  %v10299_v63 = vld [vmem:[#allocation8_spill] sm:$0xff]  ;;  %v10300_v3 = vld [vmem:[#allocation55_spill] sm:$0xff]  ;;  %v10301_v60 = vld [vmem:[#allocation57_spill] sm:$0xff] }
 0x290   : > { %v2709_v37 = vadd.f32 %v2708_v9, %v10296_v58  ;;  %v5687_v47 = vadd.f32 %v5686_v8, %v5162_v36  ;;  %v4038_v18 = vmax.f32 %v2820_v35, 0.0  ;;  %v2822_v62 = vadd.f32 %v2821_v39, %v10297_v22  ;;  %3413 = vmatmul.mubr.bf16.gmra.mrb[172].mxu1 %v10299_v63  ;;  %3526 = vmatmul.mubr.bf16.gmra.mrb[188].mxu0 %v10299_v63  ;;  %v10303_v9 = vld [vmem:[#allocation59_spill] sm:$0xff] }
 0x291   : > { %3586 = vmatprep.subr.bf16.mxu1 %v10295_v45  ;;  %v2711_v38 = vadd.f32 %v2710_v43, %v10289_v0  ;;  %v5719_v31 = vadd.f32 %v5718_v10, %v5193_v1  ;;  %v4716_v20 = vmul.f32 %v10298_v29, %v4036_v5  ;;  %v2824_v2 = vadd.f32 %v2823_v56, %v10292_v15  ;;  %v2716_v10 = vpop.f32.mrb[68].mxu1 }
 0x292   : > { %v4037_v46 = vmax.f32 %v2709_v37, 0.0  ;;  %v7834_v4 = vadd.f32 %v5687_v47, %v5163_v14  ;;  %v4718_v61 = vmul.f32 %v10300_v3, %v4038_v18  ;;  %v4039_v42 = vmax.f32 %v2822_v62, 0.0  ;;  %3422 = vmatprep.mubr.bf16.mxu1 %v10139_v11  ;;  %3535 = vmatprep.mubr.bf16.mxu0 %v10139_v11  ;;  %v2718_v45 = vpop.f32.mrb[69].mxu1 }
 0x293   : > { %v4068_v49 = vmax.f32 %v2711_v38, 0.0  ;;  %v5720_v36 = vadd.f32 %v5719_v31, %v5194_v13  ;;  %v5227_v53 = vadd.f32 %v7584_v26, %v4716_v20  ;;  %v4070_v16 = vmax.f32 %v2824_v2, 0.0  ;;  %v2829_v13 = vpop.f32.mrb[84].mxu0 }
 0x294   : > { %v4717_v25 = vmul.f32 %v10301_v60, %v4037_v46  ;;  %v10302_v14 = vcombine.low %v10293_v27, %v10294_v30  ;;  %v4719_v39 = vmul.f32 %v10303_v9, %v4039_v42  ;;  %v2713_v8 = vadd.f32 %v2712_v51, %v10296_v58  ;;  %v2831_v27 = vpop.f32.mrb[85].mxu0  ;;  %v2720_v51 = vpop.f32.mrb[70].mxu1 }
 0x295   : > { %v4748_v44 = vmul.f32 %v10298_v29, %v4068_v49  ;;  %v2826_v28 = vadd.f32 %v2825_v24, %v10297_v22  ;;  %v7849_v26 = vadd.f32 %v5720_v36, %v5195_v59  ;;  %v4750_v43 = vmul.f32 %v10300_v3, %v4070_v16  ;;  %v2833_v47 = vpop.f32.mrb[86].mxu0  ;;  %v2722_v38 = vpop.f32.mrb[71].mxu1 }
 0x296   : > { %3587 = vmatpush1.bf16.msra.mxu1 %v10302_v14  ;;  %v5228_v35 = vadd.f32 %v5227_v53, %v4717_v25  ;;  %v2717_v56 = vadd.f32 %v2716_v10, %v10289_v0  ;;  %v4069_v1 = vmax.f32 %v2713_v8, 0.0  ;;  %v2830_v37 = vadd.f32 %v2829_v13, %v10292_v15  ;;  %v2835_v31 = vpop.f32.mrb[87].mxu0 }
 0x297   : > { %v5260_v30 = vadd.f32 %v7604_v12, %v4748_v44  ;;  %v4071_v5 = vmax.f32 %v2826_v28, 0.0  ;;  %v2719_v59 = vadd.f32 %v2718_v45, %v10296_v58  ;;  %v2832_v62 = vadd.f32 %v2831_v27, %v10297_v22  ;;  %v2726_v45 = vpop.f32.mrb[72].mxu1  ;;  %v2839_v27 = vpop.f32.mrb[88].mxu0 }
 0x298   : > { %v5229_v24 = vadd.f32 %v5228_v35, %v4718_v61  ;;  %v4100_v18 = vmax.f32 %v2717_v56, 0.0  ;;  %v4749_v20 = vmul.f32 %v10301_v60, %v4069_v1  ;;  %v4102_v2 = vmax.f32 %v2830_v37, 0.0  ;;  %3423 = vmatmul.mubr.bf16.gmra.mrb[176].mxu1 %v6631_v55  ;;  %3536 = vmatmul.mubr.bf16.gmra.mrb[192].mxu0 %v6631_v55  ;;  %v2728_v37 = vpop.f32.mrb[73].mxu1 }
 0x299   : > { %v4751_v46 = vmul.f32 %v10303_v9, %v4071_v5  ;;  %v2721_v12 = vadd.f32 %v2720_v51, %v10289_v0  ;;  %v4101_v36 = vmax.f32 %v2719_v59, 0.0  ;;  %v4103_v61 = vmax.f32 %v2832_v62, 0.0  ;;  %3432 = vmatprep.mubr.bf16.mxu1 %v10139_v11  ;;  %3545 = vmatprep.mubr.bf16.mxu0 %v10139_v11  ;;  %v2841_v51 = vpop.f32.mrb[89].mxu0  ;;  %v2730_v59 = vpop.f32.mrb[74].mxu1 }
 0x29a   : > { %v7860_v42 = vadd.f32 %v5229_v24, %v4719_v39  ;;  %v4780_v49 = vmul.f32 %v10298_v29, %v4100_v18  ;;  %v5261_v53 = vadd.f32 %v5260_v30, %v4749_v20  ;;  %v4782_v25 = vmul.f32 %v10300_v3, %v4102_v2  ;;  %v2843_v62 = vpop.f32.mrb[90].mxu0 }
 0x29b   : > { %v4132_v16 = vmax.f32 %v2721_v12, 0.0  ;;  %v2834_v14 = vadd.f32 %v2833_v47, %v10292_v15  ;;  %v4781_v39 = vmul.f32 %v10301_v60, %v4101_v36  ;;  %v4783_v8 = vmul.f32 %v10303_v9, %v4103_v61  ;;  %v2732_v12 = vpop.f32.mrb[75].mxu1 }
 0x29c   : > { %v5293_v44 = vadd.f32 %v7631_v33, %v4780_v49  ;;  %v2723_v28 = vadd.f32 %v2722_v38, %v10296_v58  ;;  %v5262_v10 = vadd.f32 %v5261_v53, %v4750_v43  ;;  %v2836_v56 = vadd.f32 %v2835_v31, %v10297_v22  ;;  %v2845_v49 = vpop.f32.mrb[91].mxu0 }
 0x29d   : > { %v4812_v13 = vmul.f32 %v10298_v29, %v4132_v16  ;;  %v4134_v35 = vmax.f32 %v2834_v14, 0.0  ;;  %v2727_v33 = vadd.f32 %v2726_v45, %v10289_v0  ;;  %v2840_v5 = vadd.f32 %v2839_v27, %v10292_v15 }
 0x29e   : > { %v5294_v30 = vadd.f32 %v5293_v44, %v4781_v39  ;;  %v4133_v1 = vmax.f32 %v2723_v28, 0.0  ;;  %v7877_v47 = vadd.f32 %v5262_v10, %v4751_v46  ;;  %v4135_v18 = vmax.f32 %v2836_v56, 0.0 }
 0x29f   : > { %v5326_v24 = vadd.f32 %v7645_v17, %v4812_v13  ;;  %v4814_v43 = vmul.f32 %v10300_v3, %v4134_v35  ;;  %v4164_v20 = vmax.f32 %v2727_v33, 0.0  ;;  %v4166_v2 = vmax.f32 %v2840_v5, 0.0  ;;  %v2736_v33 = vpop.f32.mrb[76].mxu1  ;;  %v2849_v5 = vpop.f32.mrb[92].mxu0 }
 0x2a0   : > { %v5295_v38 = vadd.f32 %v5294_v30, %v4782_v25  ;;  %v4813_v31 = vmul.f32 %v10301_v60, %v4133_v1  ;;  %v4815_v36 = vmul.f32 %v10303_v9, %v4135_v18  ;;  %v2729_v61 = vadd.f32 %v2728_v37, %v10296_v58  ;;  %3433 = vmatmul.mubr.bf16.gmra.mrb[180].mxu1 %v6629_v52  ;;  %v2851_v18 = vpop.f32.mrb[93].mxu0 }
 0x2a1   : > { %v2842_v46 = vadd.f32 %v2841_v51, %v10297_v22  ;;  %v2731_v17 = vadd.f32 %v2730_v59, %v10289_v0  ;;  %v4844_v14 = vmul.f32 %v10298_v29, %v4164_v20  ;;  %v4846_v25 = vmul.f32 %v10300_v3, %v4166_v2  ;;  %3546 = vmatmul.mubr.bf16.gmra.mrb[196].mxu0 %v6629_v52  ;;  %v625_v59 = vld [vmem:[#allocation3 + $0x368] sm:$0xff] }
 0x2a2   : > { %v7886_v53 = vadd.f32 %v5295_v38, %v4783_v8  ;;  %v5327_v16 = vadd.f32 %v5326_v24, %v4813_v31  ;;  %v4165_v44 = vmax.f32 %v2729_v61, 0.0  ;;  %v2844_v10 = vadd.f32 %v2843_v62, %v10292_v15  ;;  %3442 = vmatprep.mubr.bf16.mxu1 %v10139_v11  ;;  %3555 = vmatprep.mubr.bf16.mxu0 %v10139_v11  ;;  %v641_v62 = vld [vmem:[#allocation3 + $0x3e8] sm:$0xff] }
 0x2a3   : > { %v4167_v39 = vmax.f32 %v2842_v46, 0.0  ;;  %v4196_v28 = vmax.f32 %v2731_v17, 0.0  ;;  %v5359_v8 = vadd.f32 %v7656_v41, %v4844_v14  ;;  %v2733_v35 = vadd.f32 %v2732_v12, %v10296_v58 }
 0x2a4   : > { %v5328_v13 = vadd.f32 %v5327_v16, %v4814_v43  ;;  %v2846_v56 = vadd.f32 %v2845_v49, %v10297_v22  ;;  %v4845_v45 = vmul.f32 %v10301_v60, %v4165_v44  ;;  %v4198_v1 = vmax.f32 %v2844_v10, 0.0  ;;  %v2738_v43 = vpop.f32.mrb[77].mxu1  ;;  %v2853_v49 = vpop.f32.mrb[94].mxu0 }
 0x2a5   : > { %v4847_v27 = vmul.f32 %v10303_v9, %v4167_v39  ;;  %v4876_v30 = vmul.f32 %v10298_v29, %v4196_v28  ;;  %v4197_v51 = vmax.f32 %v2733_v35, 0.0  ;;  %v2737_v41 = vadd.f32 %v2736_v33, %v10289_v0  ;;  %v2740_v12 = vpop.f32.mrb[78].mxu1  ;;  %v2855_v14 = vpop.f32.mrb[95].mxu0  ;;  %v720_v33 = vld [vmem:[#allocation3 + $0x660] sm:$0xff] }
 0x2a6   : > { %v7901_v37 = vadd.f32 %v5328_v13, %v4815_v36  ;;  %v4199_v24 = vmax.f32 %v2846_v56, 0.0  ;;  %v5360_v38 = vadd.f32 %v5359_v8, %v4845_v45  ;;  %v4878_v20 = vmul.f32 %v10300_v3, %v4198_v1  ;;  %v2742_v16 = vpop.f32.mrb[79].mxu1 }
 0x2a7   : > { %v5392_v31 = vadd.f32 %v7673_v34, %v4876_v30  ;;  %v2850_v2 = vadd.f32 %v2849_v5, %v10292_v15  ;;  %v4877_v36 = vmul.f32 %v10301_v60, %v4197_v51  ;;  %v4228_v46 = vmax.f32 %v2737_v41, 0.0 }
 0x2a8   : > { %v4879_v61 = vmul.f32 %v10303_v9, %v4199_v24  ;;  %v2739_v17 = vadd.f32 %v2738_v43, %v10296_v58  ;;  %v5361_v44 = vadd.f32 %v5360_v38, %v4846_v25  ;;  %v2852_v28 = vadd.f32 %v2851_v18, %v10297_v22  ;;  %3443 = vmatmul.mubr.bf16.gmra.mrb[184].mxu1 %v10197_v19  ;;  %v736_v25 = vld [vmem:[#allocation3 + $0x6e0] sm:$0xff]  ;;  %v673_v38 = vld [vmem:[#allocation3 + $0x4e8] sm:$0xff] }
 0x2a9   : > { %v4230_v39 = vmax.f32 %v2850_v2, 0.0  ;;  %v6094_v34 = vcombine.low %v625_v59, %v641_v62  ;;  %v5393_v10 = vadd.f32 %v5392_v31, %v4877_v36  ;;  %v4908_v13 = vmul.f32 %v10298_v29, %v4228_v46  ;;  %3556 = vmatmul.mubr.bf16.gmra.mrb[200].mxu0 %v10197_v19  ;;  %3452 = vmatprep.mubr.bf16.mxu1 %v10139_v11  ;;  %v2746_v31 = vpop.f32.mrb[80].mxu1  ;;  %v2859_v2 = vpop.f32.mrb[96].mxu0 }
 0x2aa   : > { %v4229_v8 = vmax.f32 %v2739_v17, 0.0  ;;  %v6095_v35 = vcombine.high %v625_v59, %v641_v62  ;;  %v7913_v56 = vadd.f32 %v5361_v44, %v4847_v27  ;;  %v4231_v30 = vmax.f32 %v2852_v28, 0.0  ;;  %v657_v62 = vld [vmem:[#allocation3 + $0x468] sm:$0xff]  ;;  %3565 = vmatprep.mubr.bf16.mxu0 %v10139_v11  ;;  %v2861_v46 = vpop.f32.mrb[97].mxu0 }
 0x2ab   : > { %v4910_v45 = vmul.f32 %v10300_v3, %v4230_v39  ;;  %v2741_v1 = vadd.f32 %v2740_v12, %v10289_v0  ;;  %v5394_v5 = vadd.f32 %v5393_v10, %v4878_v20  ;;  %v5425_v51 = vadd.f32 %v7682_v21, %v4908_v13 }
 0x2ac   : > { %v4909_v24 = vmul.f32 %v10301_v60, %v4229_v8  ;;  %3695 = vmatprep.subr.bf16.mxu0 %v6095_v35  ;;  %v2854_v27 = vadd.f32 %v2853_v49, %v10292_v15  ;;  %v4911_v41 = vmul.f32 %v10303_v9, %v4231_v30  ;;  %v2743_v18 = vadd.f32 %v2742_v16, %v10296_v58  ;;  %v2748_v49 = vpop.f32.mrb[81].mxu1  ;;  %v689_v35 = vld [vmem:[#allocation3 + $0x568] sm:$0xff] }
 0x2ad   : > { %v4260_v43 = vmax.f32 %v2741_v1, 0.0  ;;  %3696 = vmatpush1.bf16.msra.mxu0 %v6094_v34  ;;  %v2856_v59 = vadd.f32 %v2855_v14, %v10297_v22  ;;  %v7926_v21 = vadd.f32 %v5394_v5, %v4879_v61  ;;  %v6188_v36 = vcombine.low %v720_v33, %v736_v25  ;;  %v2750_v28 = vpop.f32.mrb[82].mxu1  ;;  %v2863_v14 = vpop.f32.mrb[98].mxu0  ;;  %v705_v61 = vld [vmem:[#allocation3 + $0x5e8] sm:$0xff]  ;;  %v10304_v5 = vld [vmem:[#allocation24_spill] sm:$0xff] }
 0x2ae   : > { %v5426_v20 = vadd.f32 %v5425_v51, %v4909_v24  ;;  %v4262_v12 = vmax.f32 %v2854_v27, 0.0  ;;  %v4261_v44 = vmax.f32 %v2743_v18, 0.0  ;;  %v6189_v16 = vcombine.high %v720_v33, %v736_v25  ;;  %v2752_v30 = vpop.f32.mrb[83].mxu1  ;;  %v2865_v1 = vpop.f32.mrb[99].mxu0 }
 0x2af   : > { %v4940_v17 = vmul.f32 %v10298_v29, %v4260_v43  ;;  %v4263_v39 = vmax.f32 %v2856_v59, 0.0  ;;  %v6126_v13 = vcombine.low %v657_v62, %v673_v38  ;;  %v6127_v8 = vcombine.high %v657_v62, %v673_v38 }
 0x2b0   : > { %v5427_v34 = vadd.f32 %v5426_v20, %v4910_v45  ;;  %v4942_v10 = vmul.f32 %v10300_v3, %v4262_v12  ;;  %v4941_v24 = vmul.f32 %v10301_v60, %v4261_v44  ;;  %3588 = vmatprep.subr.bf16.mxu1 %v6189_v16  ;;  %v2747_v33 = vadd.f32 %v2746_v31, %v10289_v0  ;;  %v10305_v20 = vld [vmem:[#allocation12_spill] sm:$0xff]  ;;  %v2756_v16 = vpop.f32.mrb[84].mxu1 }
 0x2b1   : > { %v5458_v51 = vadd.f32 %v10304_v5, %v4940_v17  ;;  %v4943_v27 = vmul.f32 %v10303_v9, %v4263_v39  ;;  %3589 = vmatpush1.bf16.msra.mxu1 %v6188_v36  ;;  %3697 = vmatprep.subr.bf16.mxu0 %v6127_v8  ;;  %v2860_v45 = vadd.f32 %v2859_v2, %v10292_v15  ;;  %v752_v39 = vld [vmem:[#allocation3 + $0x760] sm:$0xff]  ;;  %v2758_v5 = vpop.f32.mrb[85].mxu1 }
 0x2b2   : > { %v7934_v25 = vadd.f32 %v5427_v34, %v4911_v41  ;;  %v2749_v43 = vadd.f32 %v2748_v49, %v10296_v58  ;;  %3698 = vmatpush1.bf16.msra.mxu0 %v6126_v13  ;;  %v4292_v59 = vmax.f32 %v2747_v33, 0.0  ;;  %v2862_v62 = vadd.f32 %v2861_v46, %v10297_v22  ;;  %3453 = vmatmul.mubr.bf16.gmra.mrb[188].mxu1 %v10305_v20  ;;  %v768_v46 = vld [vmem:[#allocation3 + $0x7e0] sm:$0xff]  ;;  %v2869_v34 = vpop.f32.mrb[100].mxu0 }
 0x2b3   : > { %v5459_v18 = vadd.f32 %v5458_v51, %v4941_v24  ;;  %v6158_v38 = vcombine.low %v689_v35, %v705_v61  ;;  %v4294_v12 = vmax.f32 %v2860_v45, 0.0  ;;  %v6159_v44 = vcombine.high %v689_v35, %v705_v61  ;;  %3566 = vmatmul.mubr.bf16.gmra.mrb[204].mxu0 %v10305_v20  ;;  %3608 = vmatprep.mubr.bf16.mxu1 %v10139_v11  ;;  %v737_v61 = vld [vmem:[#allocation3 + $0x6e8] sm:$0xff]  ;;  %v2871_v51 = vpop.f32.mrb[101].mxu0 }
 0x2b4   : > { %v4293_v17 = vmax.f32 %v2749_v43, 0.0  ;;  %v2751_v41 = vadd.f32 %v2750_v28, %v10289_v0  ;;  %v4972_v2 = vmul.f32 %v10298_v29, %v4292_v59  ;;  %v4295_v36 = vmax.f32 %v2862_v62, 0.0  ;;  %3721 = vmatprep.mubr.bf16.mxu0 %v10139_v11  ;;  %v2760_v43 = vpop.f32.mrb[86].mxu1 }
 0x2b5   : > { %v5460_v31 = vadd.f32 %v5459_v18, %v4942_v10  ;;  %v2864_v49 = vadd.f32 %v2863_v14, %v10292_v15  ;;  %v4974_v13 = vmul.f32 %v10300_v3, %v4294_v12  ;;  %3699 = vmatprep.subr.bf16.mxu0 %v6159_v44  ;;  %v2753_v35 = vadd.f32 %v2752_v30, %v10296_v58  ;;  %v721_v10 = vld [vmem:[#allocation3 + $0x668] sm:$0xff]  ;;  %v2873_v18 = vpop.f32.mrb[102].mxu0 }
 0x2b6   : > { %v4973_v28 = vmul.f32 %v10301_v60, %v4293_v17  ;;  %v4324_v8 = vmax.f32 %v2751_v41, 0.0  ;;  %v5491_v14 = vadd.f32 %v7711_v32, %v4972_v2  ;;  %v4975_v33 = vmul.f32 %v10303_v9, %v4295_v36  ;;  %3700 = vmatpush1.bf16.msra.mxu0 %v6158_v38  ;;  %v2762_v17 = vpop.f32.mrb[87].mxu1  ;;  %v2875_v44 = vpop.f32.mrb[103].mxu0 }
 0x2b7   : > { %v7949_v24 = vadd.f32 %v5460_v31, %v4943_v27  ;;  %v4326_v45 = vmax.f32 %v2864_v49, 0.0  ;;  %v4325_v62 = vmax.f32 %v2753_v35, 0.0  ;;  %v2866_v12 = vadd.f32 %v2865_v1, %v10297_v22 }
 0x2b8   : > { %v5004_v59 = vmul.f32 %v10298_v29, %v4324_v8  ;;  %v6220_v30 = vcombine.low %v752_v39, %v768_v46  ;;  %v5492_v41 = vadd.f32 %v5491_v14, %v4973_v28  ;;  %v6221_v31 = vcombine.high %v752_v39, %v768_v46  ;;  %v769_v28 = vld [vmem:[#allocation3 + $0x7e8] sm:$0xff] }
 0x2b9   : > { %10306 = vst [vmem:[#allocation28_spill] sm:$0xff] %v7949_v24  ;;  %v5006_v27 = vmul.f32 %v10300_v3, %v4326_v45  ;;  %v6190_v20 = vcombine.low %v721_v10, %v737_v61  ;;  %v5005_v2 = vmul.f32 %v10301_v60, %v4325_v62  ;;  %v4327_v38 = vmax.f32 %v2866_v12, 0.0  ;;  %v753_v24 = vld [vmem:[#allocation3 + $0x768] sm:$0xff]  ;;  %v2879_v45 = vpop.f32.mrb[104].mxu0  ;;  %v530_v12 = vld [vmem:[#allocation3 + $0x70] sm:$0xff] }
 0x2ba   : > { %v5524_v32 = vadd.f32 %v7729_v57, %v5004_v59  ;;  %v6191_v36 = vcombine.high %v721_v10, %v737_v61  ;;  %v5493_v49 = vadd.f32 %v5492_v41, %v4974_v13  ;;  %3590 = vmatprep.subr.bf16.mxu1 %v6221_v31  ;;  %v2757_v8 = vadd.f32 %v2756_v16, %v10289_v0  ;;  %v2766_v16 = vpop.f32.mrb[88].mxu1  ;;  %v546_v41 = vld [vmem:[#allocation3 + $0xf0] sm:$0xff] }
 0x2bb   : > { %v2870_v1 = vadd.f32 %v2869_v34, %v10292_v15  ;;  %v2759_v35 = vadd.f32 %v2758_v5, %v10296_v58  ;;  %v5007_v39 = vmul.f32 %v10303_v9, %v4327_v38  ;;  %3591 = vmatpush1.bf16.msra.mxu1 %v6220_v30  ;;  %v2872_v57 = vadd.f32 %v2871_v51, %v10297_v22  ;;  %v2768_v31 = vpop.f32.mrb[89].mxu1 }
 0x2bc   : > { %v5525_v14 = vadd.f32 %v5524_v32, %v5005_v2  ;;  %3701 = vmatprep.subr.bf16.mxu0 %v6191_v36  ;;  %v7963_v46 = vadd.f32 %v5493_v49, %v4975_v33  ;;  %v4356_v13 = vmax.f32 %v2757_v8, 0.0  ;;  %v6222_v5 = vcombine.low %v753_v24, %v769_v28  ;;  %v2881_v32 = vpop.f32.mrb[105].mxu0  ;;  %v2770_v2 = vpop.f32.mrb[90].mxu1 }
 0x2bd   : > { %3702 = vmatpush1.bf16.msra.mxu0 %v6190_v20  ;;  %v4358_v10 = vmax.f32 %v2870_v1, 0.0  ;;  %v4357_v61 = vmax.f32 %v2759_v35, 0.0  ;;  %v4359_v59 = vmax.f32 %v2872_v57, 0.0  ;;  %v6223_v62 = vcombine.high %v753_v24, %v769_v28  ;;  %v2883_v38 = vpop.f32.mrb[106].mxu0  ;;  %v2772_v8 = vpop.f32.mrb[91].mxu1 }
 0x2be   : > { %v5526_v34 = vadd.f32 %v5525_v14, %v5006_v27  ;;  %v5036_v30 = vmul.f32 %v10298_v29, %v4356_v13  ;;  %v2761_v20 = vadd.f32 %v2760_v43, %v10289_v0  ;;  %3609 = vmatmul.mubr.bf16.vlgmr.msra.gmra.mrb[192].mxu1 %v10269_v7  ;;  %v2874_v36 = vadd.f32 %v2873_v18, %v10292_v15  ;;  %v2885_v1 = vpop.f32.mrb[107].mxu0 }
 0x2bf   : > { %v5038_v51 = vmul.f32 %v10300_v3, %v4358_v10  ;;  %v5037_v33 = vmul.f32 %v10301_v60, %v4357_v61  ;;  %v5039_v24 = vmul.f32 %v10303_v9, %v4359_v59  ;;  %3703 = vmatprep.subr.bf16.mxu0 %v6223_v62  ;;  %v2763_v49 = vadd.f32 %v2762_v17, %v10296_v58 }
 0x2c0   : > { %v7970_v27 = vadd.f32 %v5526_v34, %v5007_v39  ;;  %v5557_v35 = vadd.f32 %v7752_v6, %v5036_v30  ;;  %v4388_v28 = vmax.f32 %v2761_v20, 0.0  ;;  %v2876_v43 = vadd.f32 %v2875_v44, %v10297_v22  ;;  %3618 = vmatprep.mubr.bf16.mxu1 %v10139_v11  ;;  %v2889_v30 = vpop.f32.mrb[108].mxu0 }
 0x2c1   : > { %3704 = vmatpush1.bf16.msra.mxu0 %v6222_v5  ;;  %v6000_v14 = vcombine.low %v530_v12, %v546_v41  ;;  %v4390_v39 = vmax.f32 %v2874_v36, 0.0  ;;  %v4389_v57 = vmax.f32 %v2763_v49, 0.0  ;;  %v6001_v13 = vcombine.high %v530_v12, %v546_v41 }
 0x2c2   : > { %v2767_v10 = vadd.f32 %v2766_v16, %v10289_v0  ;;  %v5558_v61 = vadd.f32 %v5557_v35, %v5037_v33  ;;  %v5068_v18 = vmul.f32 %v10298_v29, %v4388_v28  ;;  %v4391_v17 = vmax.f32 %v2876_v43, 0.0 }
 0x2c3   : > { %v2880_v34 = vadd.f32 %v2879_v45, %v10292_v15  ;;  %v5070_v6 = vmul.f32 %v10300_v3, %v4390_v39  ;;  %v5069_v59 = vmul.f32 %v10301_v60, %v4389_v57  ;;  %3802 = vmatprep.subr.bf16.mxu1 %v6001_v13  ;;  %v2769_v5 = vadd.f32 %v2768_v31, %v10296_v58  ;;  %v2776_v45 = vpop.f32.mrb[92].mxu1  ;;  %v2891_v31 = vpop.f32.mrb[109].mxu0  ;;  %v578_v39 = vld [vmem:[#allocation3 + $0x1f0] sm:$0xff] }
 0x2c4   : > { %3722 = vmatmul.mubr.bf16.vlgmr.msra.gmra.mrb[208].mxu0 %v10269_v7  ;;  %v4420_v44 = vmax.f32 %v2767_v10, 0.0  ;;  %v5559_v62 = vadd.f32 %v5558_v61, %v5038_v51  ;;  %v5590_v12 = vadd.f32 %v7784_v48, %v5068_v18  ;;  %v5071_v16 = vmul.f32 %v10303_v9, %v4391_v17  ;;  %3803 = vmatpush1.bf16.msra.mxu1 %v6000_v14  ;;  %v2778_v35 = vpop.f32.mrb[93].mxu1  ;;  %v562_v14 = vld [vmem:[#allocation3 + $0x170] sm:$0xff]  ;;  %v2893_v13 = vpop.f32.mrb[110].mxu0 }
 0x2c5   : > { %v4422_v41 = vmax.f32 %v2880_v34, 0.0  ;;  %3731 = vmatprep.mubr.bf16.mxu0 %v10139_v11  ;;  %v4421_v20 = vmax.f32 %v2769_v5, 0.0  ;;  %v2882_v36 = vadd.f32 %v2881_v32, %v10297_v22  ;;  %v2771_v49 = vadd.f32 %v2770_v2, %v10289_v0  ;;  %v2780_v57 = vpop.f32.mrb[94].mxu1 }
 0x2c6   : > { %v5100_v33 = vmul.f32 %v10298_v29, %v4420_v44  ;;  %v7991_v51 = vadd.f32 %v5559_v62, %v5039_v24  ;;  %v5591_v48 = vadd.f32 %v5590_v12, %v5069_v59  ;;  %v2884_v43 = vadd.f32 %v2883_v38, %v10292_v15  ;;  %3619 = vmatmul.mubr.bf16.gmra.mrb[196].mxu1 %v10214_v54  ;;  %v2782_v18 = vpop.f32.mrb[95].mxu1  ;;  %v2895_v24 = vpop.f32.mrb[111].mxu0 }
 0x2c7   : > { %v5102_v28 = vmul.f32 %v10300_v3, %v4422_v41  ;;  %v5101_v32 = vmul.f32 %v10301_v60, %v4421_v20  ;;  %v4423_v2 = vmax.f32 %v2882_v36, 0.0  ;;  %v4452_v61 = vmax.f32 %v2771_v49, 0.0  ;;  %3628 = vmatprep.mubr.bf16.mxu1 %v10139_v11 }
 0x2c8   : > { %v5623_v10 = vadd.f32 %v7796_v40, %v5100_v33  ;;  %v5592_v17 = vadd.f32 %v5591_v48, %v5070_v6  ;;  %v4454_v34 = vmax.f32 %v2884_v43, 0.0  ;;  %v2773_v38 = vadd.f32 %v2772_v8, %v10296_v58 }
 0x2c9   : > { %v2886_v59 = vadd.f32 %v2885_v1, %v10297_v22  ;;  %v5103_v5 = vmul.f32 %v10303_v9, %v4423_v2  ;;  %v5132_v62 = vmul.f32 %v10298_v29, %v4452_v61  ;;  %v6032_v40 = vcombine.low %v562_v14, %v578_v39 }
 0x2ca   : > { %v5624_v44 = vadd.f32 %v5623_v10, %v5101_v32  ;;  %v8003_v12 = vadd.f32 %v5592_v17, %v5071_v16  ;;  %v5134_v41 = vmul.f32 %v10300_v3, %v4454_v34  ;;  %v4453_v33 = vmax.f32 %v2773_v38, 0.0  ;;  %v2932_v10 = vpop.f32.mrb[96].mxu1  ;;  %v3045_v32 = vpop.f32.mrb[112].mxu0 }
 0x2cb   : > { %v4455_v20 = vmax.f32 %v2886_v59, 0.0  ;;  %v5656_v6 = vadd.f32 %v7814_v50, %v5132_v62  ;;  %v6033_v49 = vcombine.high %v562_v14, %v578_v39  ;;  %v2777_v8 = vadd.f32 %v2776_v45, %v10289_v0  ;;  %v2934_v39 = vpop.f32.mrb[97].mxu1  ;;  %v8018_v2 = vpop.f32.mrb[113].mxu0  ;;  %v594_v62 = vld [vmem:[#allocation3 + $0x270] sm:$0xff] }
 0x2cc   : > { %v5625_v36 = vadd.f32 %v5624_v44, %v5102_v28  ;;  %3732 = vmatmul.mubr.bf16.gmra.mrb[212].mxu0 %v10214_v54  ;;  %v5133_v1 = vmul.f32 %v10301_v60, %v4453_v33  ;;  %v2890_v43 = vadd.f32 %v2889_v30, %v10292_v15  ;;  %v2779_v16 = vadd.f32 %v2778_v35, %v10296_v58  ;;  %v2936_v34 = vpop.f32.mrb[98].mxu1  ;;  %v8021_v38 = vpop.f32.mrb[114].mxu0 }
 0x2cd   : > { %v5135_v48 = vmul.f32 %v10303_v9, %v4455_v20  ;;  %3741 = vmatprep.mubr.bf16.mxu0 %v10139_v11  ;;  %3804 = vmatprep.subr.bf16.mxu1 %v6033_v49  ;;  %v4484_v50 = vmax.f32 %v2777_v8, 0.0  ;;  %v2892_v14 = vadd.f32 %v2891_v31, %v10297_v22  ;;  %v2781_v45 = vadd.f32 %v2780_v57, %v10289_v0  ;;  %v610_v0 = vld [vmem:[#allocation3 + $0x2f0] sm:$0xff]  ;;  %v8026_v57 = vpop.f32.mrb[99].mxu1 }
 0x2ce   : > { %v8014_v28 = vadd.f32 %v5625_v36, %v5103_v5  ;;  %v5657_v61 = vadd.f32 %v5656_v6, %v5133_v1  ;;  %3805 = vmatpush1.bf16.msra.mxu1 %v6032_v40  ;;  %v4486_v30 = vmax.f32 %v2890_v43, 0.0  ;;  %v4485_v17 = vmax.f32 %v2779_v16, 0.0  ;;  %v8028_v40 = vpop.f32.mrb[115].mxu0 }
 0x2cf   : > { %v2894_v35 = vadd.f32 %v2893_v13, %v10292_v15  ;;  %v5164_v59 = vmul.f32 %v10298_v29, %v4484_v50  ;;  %v4487_v44 = vmax.f32 %v2892_v14, 0.0  ;;  %v4516_v5 = vmax.f32 %v2781_v45, 0.0  ;;  %3629 = vmatmul.mubr.bf16.gmra.mrb[200].mxu1 %v6619_v23 }
 0x2d0   : > { %v2783_v31 = vadd.f32 %v2782_v18, %v10296_v58  ;;  %v5658_v33 = vadd.f32 %v5657_v61, %v5134_v41  ;;  %v5166_v15 = vmul.f32 %v10300_v3, %v4486_v30  ;;  %v5165_v13 = vmul.f32 %v10301_v60, %v4485_v17  ;;  %3638 = vmatprep.mubr.bf16.mxu1 %v10139_v11  ;;  %v8061_v61 = vpop.f32.mrb[116].mxu0 }
 0x2d1   : > { %v4518_v20 = vmax.f32 %v2894_v35, 0.0  ;;  %v5689_v36 = vadd.f32 %v7834_v4, %v5164_v59  ;;  %v5167_v58 = vmul.f32 %v10303_v9, %v4487_v44  ;;  %v5196_v18 = vmul.f32 %v10298_v29, %v4516_v5  ;;  %v6405_v29 = vld [vmem:[%s9980_s4 + $0x8] sm:$0xff] }
 0x2d2   : > { %v4517_v6 = vmax.f32 %v2783_v31, 0.0  ;;  %v8036_v49 = vadd.f32 %v5658_v33, %v5135_v48  ;;  %v2896_v41 = vadd.f32 %v2895_v24, %v10297_v22  ;;  %v6064_v1 = vcombine.low %v594_v62, %v610_v0  ;;  %v10308_v48 = vld [vmem:[#allocation20_spill] sm:$0xff]  ;;  %v6406_v22 = vld [vmem:[%s9981_s5 + $0x8] sm:$0xff]  ;;  %v8059_v24 = vpop.f32.mrb[100].mxu1  ;;  %v8071_v31 = vpop.f32.mrb[117].mxu0 }
 0x2d3   : > { %v5198_v8 = vmul.f32 %v10300_v3, %v4518_v20  ;;  %v5690_v43 = vadd.f32 %v5689_v36, %v5165_v13  ;;  %v5722_v16 = vadd.f32 %v7849_v26, %v5196_v18  ;;  %v6065_v14 = vcombine.high %v594_v62, %v610_v0  ;;  %v10309_v26 = vld [vmem:[#allocation21_spill] sm:$0xff]  ;;  %v10310_v59 = vld [vmem:[#allocation22_spill] sm:$0xff]  ;;  %v8069_v5 = vpop.f32.mrb[101].mxu1  ;;  %v8081_v20 = vpop.f32.mrb[118].mxu0 }
 0x2d4   : > { %10307 = vst [vmem:[#allocation34_spill] sm:$0xff] %v8036_v49  ;;  %v5197_v50 = vmul.f32 %v10301_v60, %v4517_v6  ;;  %3742 = vmatmul.mubr.bf16.gmra.mrb[216].mxu0 %v6619_v23  ;;  %v4519_v4 = vmax.f32 %v2896_v41, 0.0  ;;  %v8047_v45 = vrot.slane %v6405_v29, %v10308_v48  ;;  %v8053_v3 = vrot.slane %v6406_v22, %v10308_v48  ;;  %v8079_v13 = vpop.f32.mrb[102].mxu1  ;;  %v10312_v41 = vld [vmem:[#allocation23_spill] sm:$0xff] }
 0x2d5   : > { %v8056_v60 = vrot.slane %v6405_v29, %v10309_v26  ;;  %3751 = vmatprep.mubr.bf16.mxu0 %v10139_v11  ;;  %v5691_v30 = vadd.f32 %v5690_v43, %v5166_v15  ;;  %3806 = vmatprep.subr.bf16.mxu1 %v6065_v14  ;;  %v8064_v35 = vrot.slane %v6406_v22, %v10309_v26 }
 0x2d6   : > { %v5723_v17 = vadd.f32 %v5722_v16, %v5197_v50  ;;  %v8067_v44 = vrot.slane %v6405_v29, %v10310_v59  ;;  %v5199_v62 = vmul.f32 %v10303_v9, %v4519_v4  ;;  %3807 = vmatpush1.bf16.msra.mxu1 %v6064_v1  ;;  %v2933_v0 = vadd.f32 %v2932_v10, %v8047_v45  ;;  %v8090_v9 = vpop.f32.mrb[103].mxu1  ;;  %v8092_v10 = vpop.f32.mrb[119].mxu0  ;;  %v626_v4 = vld [vmem:[#allocation3 + $0x370] sm:$0xff] }
 0x2d7   : > { %v3046_v33 = vadd.f32 %v3045_v32, %v8056_v60  ;;  %v8077_v15 = vrot.slane %v6406_v22, %v10310_v59  ;;  %v8083_v36 = vadd.f32 %v5691_v30, %v5167_v58  ;;  %v8087_v43 = vrot.slane %v6405_v29, %v10312_v41  ;;  %3639 = vmatmul.mubr.bf16.gmra.mrb[204].mxu1 %v10299_v63  ;;  %v642_v29 = vld [vmem:[#allocation3 + $0x3f0] sm:$0xff] }
 0x2d8   : > { %v5724_v18 = vadd.f32 %v5723_v17, %v5198_v8  ;;  %v2935_v6 = vadd.f32 %v2934_v39, %v8067_v44  ;;  %v4040_v32 = vmax.f32 %v2933_v0, 0.0  ;;  %v8095_v16 = vrot.slane %v6406_v22, %v10312_v41  ;;  %3648 = vmatprep.mubr.bf16.mxu1 %v10139_v11 }
 0x2d9   : > { %10311 = vst [vmem:[#allocation25_spill] sm:$0xff] %v8083_v36  ;;  %v4042_v1 = vmax.f32 %v3046_v33, 0.0  ;;  %v2937_v58 = vadd.f32 %v2936_v34, %v8047_v45  ;;  %v3048_v50 = vadd.f32 %v8018_v2, %v8087_v43  ;;  %v3050_v14 = vadd.f32 %v8021_v38, %v8056_v60 }
 0x2da   : > { %v8099_v8 = vadd.f32 %v5724_v18, %v5199_v62  ;;  %v4041_v39 = vmax.f32 %v2935_v6, 0.0  ;;  %v4720_v30 = vmul.f32 %v8053_v3, %v4040_v32  ;;  %v2939_v34 = vadd.f32 %v8026_v57, %v8067_v44  ;;  %v531_v18 = vld [vmem:[#allocation3 + $0x78] sm:$0xff]  ;;  %v8116_v57 = vpop.f32.mrb[104].mxu1 }
 0x2db   : > { %v4722_v22 = vmul.f32 %v8064_v35, %v4042_v1  ;;  %v4072_v17 = vmax.f32 %v2937_v58, 0.0  ;;  %v4043_v0 = vmax.f32 %v3048_v50, 0.0  ;;  %v4074_v33 = vmax.f32 %v3050_v14, 0.0  ;;  %v547_v6 = vld [vmem:[#allocation3 + $0xf8] sm:$0xff]  ;;  %v8122_v59 = vpop.f32.mrb[105].mxu1 }
 0x2dc   : > { %10313 = vst [vmem:[#allocation26_spill] sm:$0xff] %v8099_v8  ;;  %v4721_v62 = vmul.f32 %v8077_v15, %v4041_v39  ;;  %v3052_v2 = vadd.f32 %v8028_v40, %v8087_v43  ;;  %3752 = vmatmul.mubr.bf16.gmra.mrb[220].mxu0 %v10299_v63  ;;  %v5231_v38 = vadd.f32 %v7860_v42, %v4720_v30  ;;  %v4073_v1 = vmax.f32 %v2939_v34, 0.0  ;;  %v8118_v39 = vpop.f32.mrb[120].mxu0  ;;  %v8130_v48 = vpop.f32.mrb[106].mxu1 }
 0x2dd   : > { %v4752_v32 = vmul.f32 %v8053_v3, %v4072_v17  ;;  %v6096_v58 = vcombine.low %v626_v4, %v642_v29  ;;  %3761 = vmatprep.mubr.bf16.mxu0 %v10139_v11  ;;  %v4723_v50 = vmul.f32 %v8095_v16, %v4043_v0  ;;  %v4754_v40 = vmul.f32 %v8064_v35, %v4074_v33  ;;  %v8124_v26 = vpop.f32.mrb[121].mxu0 }
 0x2de   : > { %v4075_v14 = vmax.f32 %v3052_v2, 0.0  ;;  %v6097_v41 = vcombine.high %v626_v4, %v642_v29  ;;  %v5232_v42 = vadd.f32 %v5231_v38, %v4721_v62  ;;  %v4753_v17 = vmul.f32 %v8077_v15, %v4073_v1  ;;  %v8132_v63 = vpop.f32.mrb[122].mxu0 }
 0x2df   : > { %v5264_v30 = vadd.f32 %v7877_v47, %v4752_v32  ;;  %v8128_v34 = vcombine.low %v531_v18, %v547_v6  ;;  %v8135_v33 = vcombine.high %v531_v18, %v547_v6  ;;  %v2943_v4 = vadd.f32 %v8059_v24, %v8047_v45  ;;  %v8141_v47 = vpop.f32.mrb[107].mxu1  ;;  %v8143_v62 = vpop.f32.mrb[123].mxu0  ;;  %3649 = vmatmul.mubr.bf16.gmra.mrb[208].mxu1 %v6631_v55 }
 0x2e0   : > { %v4755_v0 = vmul.f32 %v8095_v16, %v4075_v14  ;;  %3808 = vmatprep.subr.bf16.mxu1 %v6097_v41  ;;  %v3056_v29 = vadd.f32 %v8061_v61, %v8056_v60  ;;  %v5233_v2 = vadd.f32 %v5232_v42, %v4722_v22  ;;  %v2945_v32 = vadd.f32 %v8069_v5, %v8067_v44 }
 0x2e1   : > { %v5265_v38 = vadd.f32 %v5264_v30, %v4753_v17  ;;  %3809 = vmatpush1.bf16.msra.mxu1 %v6096_v58  ;;  %v3058_v41 = vadd.f32 %v8071_v31, %v8087_v43  ;;  %3915 = vmatprep.subr.bf16.mxu0 %v8135_v33  ;;  %v4104_v18 = vmax.f32 %v2943_v4, 0.0  ;;  %v2947_v61 = vadd.f32 %v8079_v13, %v8047_v45  ;;  %v563_v31 = vld [vmem:[#allocation3 + $0x178] sm:$0xff]  ;;  %v658_v17 = vld [vmem:[#allocation3 + $0x470] sm:$0xff] }
 0x2e2   : > { %v4106_v24 = vmax.f32 %v3056_v29, 0.0  ;;  %v3060_v6 = vadd.f32 %v8081_v20, %v8056_v60  ;;  %v8155_v22 = vadd.f32 %v5233_v2, %v4723_v50  ;;  %3916 = vmatpush1.bf16.msra.mxu0 %v8128_v34  ;;  %v4105_v5 = vmax.f32 %v2945_v32, 0.0  ;;  %3658 = vmatprep.mubr.bf16.mxu1 %v10139_v11  ;;  %v674_v20 = vld [vmem:[#allocation3 + $0x4f0] sm:$0xff]  ;;  %v579_v4 = vld [vmem:[#allocation3 + $0x1f8] sm:$0xff]  ;;  %v8171_v32 = vpop.f32.mrb[124].mxu0 }
 0x2e3   : > { %v5266_v1 = vadd.f32 %v5265_v38, %v4754_v40  ;;  %v4107_v58 = vmax.f32 %v3058_v41, 0.0  ;;  %v4784_v14 = vmul.f32 %v8053_v3, %v4104_v18  ;;  %v4136_v13 = vmax.f32 %v2947_v61, 0.0  ;;  %v8169_v38 = vpop.f32.mrb[108].mxu1 }
 0x2e4   : > { %10314 = vst [vmem:[#allocation35_spill] sm:$0xff] %v8155_v22  ;;  %v4786_v42 = vmul.f32 %v8064_v35, %v4106_v24  ;;  %v4138_v30 = vmax.f32 %v3060_v6, 0.0  ;;  %3762 = vmatmul.mubr.bf16.gmra.mrb[224].mxu0 %v6631_v55  ;;  %v4785_v40 = vmul.f32 %v8077_v15, %v4105_v5  ;;  %v2949_v2 = vadd.f32 %v8090_v9, %v8067_v44  ;;  %v8178_v61 = vpop.f32.mrb[109].mxu1  ;;  %v8180_v6 = vpop.f32.mrb[125].mxu0 }
 0x2e5   : > { %v8162_v50 = vadd.f32 %v5266_v1, %v4755_v0  ;;  %v4787_v29 = vmul.f32 %v8095_v16, %v4107_v58  ;;  %3771 = vmatprep.mubr.bf16.mxu0 %v10139_v11  ;;  %v5297_v41 = vadd.f32 %v7886_v53, %v4784_v14  ;;  %v4816_v18 = vmul.f32 %v8053_v3, %v4136_v13  ;;  %v8184_v55 = vpop.f32.mrb[110].mxu1 }
 0x2e6   : > { %v4818_v0 = vmul.f32 %v8064_v35, %v4138_v30  ;;  %v3062_v24 = vadd.f32 %v8092_v10, %v8087_v43  ;;  %v4137_v9 = vmax.f32 %v2949_v2, 0.0  ;;  %v6128_v1 = vcombine.low %v658_v17, %v674_v20  ;;  %v8191_v10 = vpop.f32.mrb[111].mxu1 }
 0x2e7   : > { %10315 = vst [vmem:[#allocation36_spill] sm:$0xff] %v8162_v50  ;;  %v6129_v5 = vcombine.high %v658_v17, %v674_v20  ;;  %v8182_v58 = vcombine.low %v563_v31, %v579_v4  ;;  %v8186_v50 = vpop.f32.mrb[126].mxu0  ;;  %v5298_v53 = vadd.f32 %v5297_v41, %v4785_v40  ;;  %v5330_v14 = vadd.f32 %v7901_v37, %v4816_v18 }
 0x2e8   : > { %v4139_v13 = vmax.f32 %v3062_v24, 0.0  ;;  %v8189_v30 = vcombine.high %v563_v31, %v579_v4  ;;  %v8193_v22 = vpop.f32.mrb[127].mxu0  ;;  %v4817_v2 = vmul.f32 %v8077_v15, %v4137_v9  ;;  %v2953_v17 = vadd.f32 %v8116_v57, %v8047_v45  ;;  %3659 = vmatmul.mubr.bf16.gmra.mrb[212].mxu1 %v6629_v52 }
 0x2e9   : > { %3810 = vmatprep.subr.bf16.mxu1 %v6129_v5  ;;  %v3066_v20 = vadd.f32 %v8118_v39, %v8056_v60  ;;  %v2955_v40 = vadd.f32 %v8122_v59, %v8067_v44  ;;  %v5299_v37 = vadd.f32 %v5298_v53, %v4786_v42  ;;  %v3068_v4 = vadd.f32 %v8124_v26, %v8087_v43  ;;  %v706_v5 = vld [vmem:[#allocation3 + $0x5f0] sm:$0xff] }
 0x2ea   : > { %v4819_v31 = vmul.f32 %v8095_v16, %v4139_v13  ;;  %3917 = vmatprep.subr.bf16.mxu0 %v8189_v30  ;;  %3811 = vmatpush1.bf16.msra.mxu1 %v6128_v1  ;;  %v5331_v41 = vadd.f32 %v5330_v14, %v4817_v2  ;;  %v4168_v18 = vmax.f32 %v2953_v17, 0.0  ;;  %v2957_v42 = vadd.f32 %v8130_v48, %v8047_v45  ;;  %v690_v1 = vld [vmem:[#allocation3 + $0x570] sm:$0xff]  ;;  %v8220_v13 = vpop.f32.mrb[112].mxu1  ;;  %v8222_v48 = vpop.f32.mrb[128].mxu0 }
 0x2eb   : > { %3918 = vmatpush1.bf16.msra.mxu0 %v8182_v58  ;;  %v4170_v57 = vmax.f32 %v3066_v20, 0.0  ;;  %v4169_v24 = vmax.f32 %v2955_v40, 0.0  ;;  %v8208_v39 = vadd.f32 %v5299_v37, %v4787_v29  ;;  %v4171_v59 = vmax.f32 %v3068_v4, 0.0  ;;  %3668 = vmatprep.mubr.bf16.mxu1 %v10139_v11  ;;  %v611_v40 = vld [vmem:[#allocation3 + $0x2f8] sm:$0xff]  ;;  %v8227_v37 = vpop.f32.mrb[113].mxu1  ;;  %v8229_v4 = vpop.f32.mrb[129].mxu0 }
 0x2ec   : > { %v3070_v9 = vadd.f32 %v8132_v63, %v8056_v60  ;;  %3772 = vmatmul.mubr.bf16.gmra.mrb[228].mxu0 %v6629_v52  ;;  %v5332_v26 = vadd.f32 %v5331_v41, %v4818_v0  ;;  %v4848_v53 = vmul.f32 %v8053_v3, %v4168_v18  ;;  %v4200_v2 = vmax.f32 %v2957_v42, 0.0  ;;  %v595_v0 = vld [vmem:[#allocation3 + $0x278] sm:$0xff]  ;;  %v8238_v42 = vpop.f32.mrb[130].mxu0 }
 0x2ed   : > { %10316 = vst [vmem:[#allocation27_spill] sm:$0xff] %v8208_v39  ;;  %v4850_v14 = vmul.f32 %v8064_v35, %v4170_v57  ;;  %v4849_v29 = vmul.f32 %v8077_v15, %v4169_v24  ;;  %3781 = vmatprep.mubr.bf16.mxu0 %v10139_v11  ;;  %v4851_v63 = vmul.f32 %v8095_v16, %v4171_v59  ;;  %v8236_v59 = vpop.f32.mrb[114].mxu1 }
 0x2ee   : > { %v4202_v17 = vmax.f32 %v3070_v9, 0.0  ;;  %v2959_v20 = vadd.f32 %v8141_v47, %v8067_v44  ;;  %v8231_v41 = vadd.f32 %v5332_v26, %v4819_v31  ;;  %v5363_v18 = vadd.f32 %v7913_v56, %v4848_v53  ;;  %v8242_v8 = vpop.f32.mrb[115].mxu1  ;;  %v8244_v31 = vpop.f32.mrb[131].mxu0 }
 0x2ef   : > { %v3072_v57 = vadd.f32 %v8143_v62, %v8087_v43  ;;  %v6160_v24 = vcombine.low %v690_v1, %v706_v5  ;;  %v4880_v47 = vmul.f32 %v8053_v3, %v4200_v2  ;;  %v6161_v39 = vcombine.high %v690_v1, %v706_v5  ;;  %v627_v5 = vld [vmem:[#allocation3 + $0x378] sm:$0xff] }
 0x2f0   : > { %10317 = vst [vmem:[#allocation31_spill] sm:$0xff] %v8231_v41  ;;  %v4882_v9 = vmul.f32 %v8064_v35, %v4202_v17  ;;  %v4201_v52 = vmax.f32 %v2959_v20, 0.0  ;;  %v5364_v26 = vadd.f32 %v5363_v18, %v4849_v29  ;;  %v8246_v53 = vcombine.low %v595_v0, %v611_v40  ;;  %v643_v17 = vld [vmem:[#allocation3 + $0x3f8] sm:$0xff]  ;;  %3669 = vmatmul.mubr.bf16.gmra.mrb[216].mxu1 %v10197_v19 }
 0x2f1   : > { %v4203_v56 = vmax.f32 %v3072_v57, 0.0  ;;  %v8248_v62 = vcombine.high %v595_v0, %v611_v40  ;;  %v5396_v41 = vadd.f32 %v7926_v21, %v4880_v47  ;;  %3812 = vmatprep.subr.bf16.mxu1 %v6161_v39  ;;  %v2963_v2 = vadd.f32 %v8169_v38, %v8047_v45  ;;  %3678 = vmatprep.mubr.bf16.mxu1 %v10139_v11  ;;  %v738_v47 = vld [vmem:[#allocation3 + $0x6f0] sm:$0xff] }
 0x2f2   : > { %10318 = vst [vmem:[#allocation39_spill] sm:$0xff] %v8246_v53  ;;  %v4881_v36 = vmul.f32 %v8077_v15, %v4201_v52  ;;  %v3076_v1 = vadd.f32 %v8171_v32, %v8056_v60  ;;  %v5365_v20 = vadd.f32 %v5364_v26, %v4850_v14  ;;  %3813 = vmatpush1.bf16.msra.mxu1 %v6160_v24  ;;  %v722_v24 = vld [vmem:[#allocation3 + $0x670] sm:$0xff] }
 0x2f3   : > { %v4883_v29 = vmul.f32 %v8095_v16, %v4203_v56  ;;  %3919 = vmatprep.subr.bf16.mxu0 %v8248_v62  ;;  %v2965_v21 = vadd.f32 %v8178_v61, %v8067_v44  ;;  %v4232_v52 = vmax.f32 %v2963_v2, 0.0  ;;  %v3078_v38 = vadd.f32 %v8180_v6, %v8087_v43  ;;  %v8274_v61 = vpop.f32.mrb[132].mxu0 }
 0x2f4   : > { %v5397_v0 = vadd.f32 %v5396_v41, %v4881_v36  ;;  %3920 = vmatpush1.bf16.msra.mxu0 %v8246_v53  ;;  %v4234_v39 = vmax.f32 %v3076_v1, 0.0  ;;  %v8264_v32 = vadd.f32 %v5365_v20, %v4851_v63  ;;  %v8266_v40 = vcombine.low %v627_v5, %v643_v17  ;;  %v8272_v36 = vpop.f32.mrb[116].mxu1  ;;  %v8281_v56 = vpop.f32.mrb[133].mxu0  ;;  %v675_v20 = vld [vmem:[#allocation3 + $0x4f8] sm:$0xff] }
 0x2f5   : > { %v4233_v14 = vmax.f32 %v2965_v21, 0.0  ;;  %v8268_v18 = vcombine.high %v627_v5, %v643_v17  ;;  %3782 = vmatmul.mubr.bf16.gmra.mrb[232].mxu0 %v10197_v19  ;;  %v4912_v6 = vmul.f32 %v8053_v3, %v4232_v52  ;;  %v4235_v63 = vmax.f32 %v3078_v38, 0.0  ;;  %v8279_v26 = vpop.f32.mrb[117].mxu1  ;;  %v659_v17 = vld [vmem:[#allocation3 + $0x478] sm:$0xff] }
 0x2f6   : > { %10319 = vst [vmem:[#allocation29_spill] sm:$0xff] %v8264_v32  ;;  %10320 = vst [vmem:[#allocation30_spill] sm:$0xff] %v8266_v40  ;;  %v5398_v41 = vadd.f32 %v5397_v0, %v4882_v9  ;;  %v4914_v57 = vmul.f32 %v8064_v35, %v4234_v39  ;;  %3791 = vmatprep.mubr.bf16.mxu0 %v10139_v11  ;;  %v2967_v9 = vadd.f32 %v8184_v55, %v8047_v45  ;;  %v8291_v21 = vpop.f32.mrb[118].mxu1  ;;  %v8293_v0 = vpop.f32.mrb[134].mxu0 }
 0x2f7   : > { %10321 = vst [vmem:[#allocation32_spill] sm:$0xff] %v8268_v18  ;;  %v4913_v2 = vmul.f32 %v8077_v15, %v4233_v14  ;;  %3921 = vmatprep.subr.bf16.mxu0 %v8268_v18  ;;  %v3080_v1 = vadd.f32 %v8186_v50, %v8056_v60  ;;  %v2969_v5 = vadd.f32 %v8191_v10, %v8067_v44  ;;  %v8302_v50 = vpop.f32.mrb[119].mxu1  ;;  %v8304_v10 = vpop.f32.mrb[135].mxu0  ;;  %v707_v18 = vld [vmem:[#allocation3 + $0x5f8] sm:$0xff] }
 0x2f8   : > { %v8295_v52 = vadd.f32 %v5398_v41, %v4883_v29  ;;  %v5429_v39 = vadd.f32 %v7934_v25, %v4912_v6  ;;  %v4915_v38 = vmul.f32 %v8095_v16, %v4235_v63  ;;  %3922 = vmatpush1.bf16.msra.mxu0 %v8266_v40  ;;  %v3082_v55 = vadd.f32 %v8193_v22, %v8087_v43  ;;  %v691_v40 = vld [vmem:[#allocation3 + $0x578] sm:$0xff] }
 0x2f9   : > { %v4264_v14 = vmax.f32 %v2967_v9, 0.0  ;;  %v4266_v19 = vmax.f32 %v3080_v1, 0.0  ;;  %v4265_v32 = vmax.f32 %v2969_v5, 0.0  ;;  %v6192_v23 = vcombine.low %v722_v24, %v738_v47 }
 0x2fa   : > { %10322 = vst [vmem:[#allocation33_spill] sm:$0xff] %v8295_v52  ;;  %v5430_v49 = vadd.f32 %v5429_v39, %v4913_v2  ;;  %v4267_v29 = vmax.f32 %v3082_v55, 0.0  ;;  %v6193_v41 = vcombine.high %v722_v24, %v738_v47  ;;  %v8306_v52 = vcombine.low %v659_v17, %v675_v20  ;;  %v10324_v47 = vld [vmem:[#allocation28_spill] sm:$0xff] }
 0x2fb   : > { %v4944_v25 = vmul.f32 %v8053_v3, %v4264_v14  ;;  %v4946_v6 = vmul.f32 %v8064_v35, %v4266_v19  ;;  %v4945_v63 = vmul.f32 %v8077_v15, %v4265_v32  ;;  %v8311_v22 = vcombine.high %v659_v17, %v675_v20  ;;  %v8324_v32 = vpop.f32.mrb[120].mxu1 }
 0x2fc   : > { %10323 = vst [vmem:[#allocation37_spill] sm:$0xff] %v8306_v52  ;;  %v5431_v53 = vadd.f32 %v5430_v49, %v4914_v57  ;;  %v4947_v9 = vmul.f32 %v8095_v16, %v4267_v29  ;;  %3814 = vmatprep.subr.bf16.mxu1 %v6193_v41  ;;  %v2973_v2 = vadd.f32 %v8220_v13, %v8047_v45  ;;  %v8326_v57 = vpop.f32.mrb[136].mxu0  ;;  %v8334_v20 = vpop.f32.mrb[121].mxu1 }
 0x2fd   : > { %v3086_v24 = vadd.f32 %v8222_v48, %v8056_v60  ;;  %v5462_v1 = vadd.f32 %v10324_v47, %v4944_v25  ;;  %3815 = vmatpush1.bf16.msra.mxu1 %v6192_v23  ;;  %3923 = vmatprep.subr.bf16.mxu0 %v8311_v22  ;;  %v2975_v19 = vadd.f32 %v8227_v37, %v8067_v44  ;;  %v10327_v23 = vld [vmem:[#allocation12_spill] sm:$0xff]  ;;  %v8336_v37 = vpop.f32.mrb[137].mxu0 }
 0x2fe   : > { %v3088_v49 = vadd.f32 %v8229_v4, %v8087_v43  ;;  %v8328_v5 = vadd.f32 %v5431_v53, %v4915_v38  ;;  %3924 = vmatpush1.bf16.msra.mxu0 %v8306_v52  ;;  %v4296_v13 = vmax.f32 %v2973_v2, 0.0  ;;  %v8331_v17 = vcombine.low %v691_v40, %v707_v18  ;;  %3679 = vmatmul.mubr.bf16.gmra.mrb[220].mxu1 %v10327_v23  ;;  %v8342_v53 = vpop.f32.mrb[122].mxu1  ;;  %v8344_v38 = vpop.f32.mrb[138].mxu0 }
 0x2ff   : > { %v4298_v48 = vmax.f32 %v3086_v24, 0.0  ;;  %v5463_v39 = vadd.f32 %v5462_v1, %v4945_v63  ;;  %v4297_v4 = vmax.f32 %v2975_v19, 0.0  ;;  %v8338_v14 = vcombine.high %v691_v40, %v707_v18  ;;  %3792 = vmatmul.mubr.bf16.gmra.mrb[236].mxu0 %v10327_v23  ;;  %3834 = vmatprep.mubr.bf16.mxu1 %v10139_v11  ;;  %v754_v40 = vld [vmem:[#allocation3 + $0x770] sm:$0xff]  ;;  %v8353_v2 = vpop.f32.mrb[123].mxu1  ;;  %v8355_v24 = vpop.f32.mrb[139].mxu0  ;;  %v723_v23 = vld [vmem:[#allocation3 + $0x678] sm:$0xff] }
 0x300   : > { %10325 = vst [vmem:[#allocation38_spill] sm:$0xff] %v8328_v5  ;;  %10326 = vst [vmem:[#allocation41_spill] sm:$0xff] %v8331_v17  ;;  %v4299_v55 = vmax.f32 %v3088_v49, 0.0  ;;  %v4976_v29 = vmul.f32 %v8053_v3, %v4296_v13  ;;  %v2977_v25 = vadd.f32 %v8236_v59, %v8047_v45  ;;  %v3090_v63 = vadd.f32 %v8238_v42, %v8056_v60  ;;  %v770_v18 = vld [vmem:[#allocation3 + $0x7f0] sm:$0xff] }
 0x301   : > { %10328 = vst [vmem:[#allocation42_spill] sm:$0xff] %v8338_v14  ;;  %v4978_v41 = vmul.f32 %v8064_v35, %v4298_v48  ;;  %3947 = vmatprep.mubr.bf16.mxu0 %v10139_v11  ;;  %v5464_v47 = vadd.f32 %v5463_v39, %v4946_v6  ;;  %v4977_v1 = vmul.f32 %v8077_v15, %v4297_v4  ;;  %v739_v6 = vld [vmem:[#allocation3 + $0x6f8] sm:$0xff] }
 0x302   : > { %v4979_v19 = vmul.f32 %v8095_v16, %v4299_v55  ;;  %3925 = vmatprep.subr.bf16.mxu0 %v8338_v14  ;;  %v2979_v59 = vadd.f32 %v8242_v8, %v8067_v44  ;;  %v5495_v42 = vadd.f32 %v7963_v46, %v4976_v29  ;;  %v4328_v49 = vmax.f32 %v2977_v25, 0.0  ;;  %v755_v29 = vld [vmem:[#allocation3 + $0x778] sm:$0xff] }
 0x303   : > { %v4330_v13 = vmax.f32 %v3090_v63, 0.0  ;;  %3926 = vmatpush1.bf16.msra.mxu0 %v8331_v17  ;;  %v3092_v48 = vadd.f32 %v8244_v31, %v8087_v43  ;;  %v8366_v39 = vadd.f32 %v5464_v47, %v4947_v9  ;;  %v6224_v55 = vcombine.low %v754_v40, %v770_v18  ;;  %v771_v25 = vld [vmem:[#allocation3 + $0x7f8] sm:$0xff]  ;;  %v8377_v47 = vpop.f32.mrb[124].mxu1 }
 0x304   : > { %v4329_v4 = vmax.f32 %v2979_v59, 0.0  ;;  %v6225_v5 = vcombine.high %v754_v40, %v770_v18  ;;  %v5496_v14 = vadd.f32 %v5495_v42, %v4977_v1  ;;  %v5008_v52 = vmul.f32 %v8053_v3, %v4328_v49  ;;  %v8379_v40 = vpop.f32.mrb[140].mxu0  ;;  %v8385_v42 = vpop.f32.mrb[125].mxu1 }
 0x305   : > { %v5010_v8 = vmul.f32 %v8064_v35, %v4330_v13  ;;  %v4331_v46 = vmax.f32 %v3092_v48, 0.0  ;;  %v8371_v17 = vcombine.low %v723_v23, %v739_v6  ;;  %v8373_v31 = vcombine.high %v723_v23, %v739_v6  ;;  %v8387_v23 = vpop.f32.mrb[141].mxu0 }
 0x306   : > { %v5009_v63 = vmul.f32 %v8077_v15, %v4329_v4  ;;  %3816 = vmatprep.subr.bf16.mxu1 %v6225_v5  ;;  %v2983_v9 = vadd.f32 %v8272_v36, %v8047_v45  ;;  %v5497_v18 = vadd.f32 %v5496_v14, %v4978_v41  ;;  %v5528_v1 = vadd.f32 %v7970_v27, %v5008_v52  ;;  %v8397_v52 = vpop.f32.mrb[126].mxu1 }
 0x307   : > { %v5011_v59 = vmul.f32 %v8095_v16, %v4331_v46  ;;  %3817 = vmatpush1.bf16.msra.mxu1 %v6224_v55  ;;  %v3096_v5 = vadd.f32 %v8274_v61, %v8056_v60  ;;  %3927 = vmatprep.subr.bf16.mxu0 %v8373_v31  ;;  %v2985_v49 = vadd.f32 %v8279_v26, %v8067_v44  ;;  %v8399_v61 = vpop.f32.mrb[142].mxu0  ;;  %v8406_v26 = vpop.f32.mrb[127].mxu1 }
 0x308   : > { %v4360_v36 = vmax.f32 %v2983_v9, 0.0  ;;  %v3098_v14 = vadd.f32 %v8281_v56, %v8087_v43  ;;  %v8394_v27 = vcombine.low %v755_v29, %v771_v25  ;;  %6295 = vmatprep.subr.bf16.mxu1 %v8135_v33  ;;  %v8401_v41 = vadd.f32 %v5497_v18, %v4979_v19  ;;  %3928 = vmatpush1.bf16.msra.mxu0 %v8371_v17  ;;  %v8408_v4 = vpop.f32.mrb[143].mxu0 }
 0x309   : > { %v5529_v13 = vadd.f32 %v5528_v1, %v5009_v63  ;;  %v4362_v48 = vmax.f32 %v3096_v5, 0.0  ;;  %v8404_v6 = vcombine.high %v755_v29, %v771_v25  ;;  %v4361_v55 = vmax.f32 %v2985_v49, 0.0 }
 0x30a   : > { %v5040_v56 = vmul.f32 %v8053_v3, %v4360_v36  ;;  %v4363_v33 = vmax.f32 %v3098_v14, 0.0  ;;  %v2987_v46 = vadd.f32 %v8291_v21, %v8047_v45  ;;  %3835 = vmatmul.mubr.bf16.vlgmr.msra.gmra.mrb[224].mxu1 %v10269_v7  ;;  %v3100_v29 = vadd.f32 %v8293_v0, %v8056_v60  ;;  %v8438_v14 = vpop.f32.mrb[144].mxu0 }
 0x30b   : > { %v5530_v19 = vadd.f32 %v5529_v13, %v5010_v8  ;;  %v5042_v63 = vmul.f32 %v8064_v35, %v4362_v48  ;;  %3929 = vmatprep.subr.bf16.mxu0 %v8404_v6  ;;  %v2989_v25 = vadd.f32 %v8302_v50, %v8067_v44  ;;  %v5041_v18 = vmul.f32 %v8077_v15, %v4361_v55  ;;  %v8446_v55 = vpop.f32.mrb[145].mxu0 }
 0x30c   : > { %v5561_v9 = vadd.f32 %v7991_v51, %v5040_v56  ;;  %v5043_v1 = vmul.f32 %v8095_v16, %v4363_v33  ;;  %v4392_v21 = vmax.f32 %v2987_v46, 0.0  ;;  %6303 = vmatpush1.bf16.msra.mxu1 %v8128_v34  ;;  %3844 = vmatprep.mubr.bf16.mxu1 %v10139_v11  ;;  %v4394_v5 = vmax.f32 %v3100_v29, 0.0  ;;  %v8453_v29 = vpop.f32.mrb[146].mxu0 }
 0x30d   : > { %v8425_v8 = vadd.f32 %v5530_v19, %v5011_v59  ;;  %3930 = vmatpush1.bf16.msra.mxu0 %v8394_v27  ;;  %v4393_v0 = vmax.f32 %v2989_v25, 0.0  ;;  %v3102_v50 = vadd.f32 %v8304_v10, %v8087_v43  ;;  %6296 = vmatprep.subr.bf16.mxu1 %v8189_v30  ;;  %v2993_v49 = vadd.f32 %v8324_v32, %v8047_v45  ;;  %v8436_v59 = vpop.f32.mrb[128].mxu1 }
 0x30e   : > { %v5562_v51 = vadd.f32 %v5561_v9, %v5041_v18  ;;  %v5072_v36 = vmul.f32 %v8053_v3, %v4392_v21  ;;  %v3106_v34 = vadd.f32 %v8326_v57, %v8056_v60  ;;  %v5074_v13 = vmul.f32 %v8064_v35, %v4394_v5  ;;  %v8444_v56 = vpop.f32.mrb[129].mxu1 }
 0x30f   : > { %v5073_v48 = vmul.f32 %v8077_v15, %v4393_v0  ;;  %v4395_v10 = vmax.f32 %v3102_v50, 0.0  ;;  %v2995_v30 = vadd.f32 %v8334_v20, %v8067_v44  ;;  %v4424_v57 = vmax.f32 %v2993_v49, 0.0  ;;  %v8451_v19 = vpop.f32.mrb[130].mxu1  ;;  %v10329_v49 = vld [vmem:[#allocation39_spill] sm:$0xff] }
 0x310   : > { %v5563_v32 = vadd.f32 %v5562_v51, %v5042_v63  ;;  %v5594_v33 = vadd.f32 %v8003_v12, %v5072_v36  ;;  %3948 = vmatmul.mubr.bf16.vlgmr.msra.gmra.mrb[240].mxu0 %v10269_v7  ;;  %v4426_v46 = vmax.f32 %v3106_v34, 0.0  ;;  %6304 = vmatpush1.bf16.msra.mxu1 %v8182_v58  ;;  %v3108_v9 = vadd.f32 %v8336_v37, %v8087_v43  ;;  %v8462_v7 = vpop.f32.mrb[131].mxu1  ;;  %v8464_v12 = vpop.f32.mrb[147].mxu0 }
 0x311   : > { %v5075_v25 = vmul.f32 %v8095_v16, %v4395_v10  ;;  %v4425_v20 = vmax.f32 %v2995_v30, 0.0  ;;  %v2997_v63 = vadd.f32 %v8342_v53, %v8047_v45  ;;  %3957 = vmatprep.mubr.bf16.mxu0 %v10139_v11  ;;  %6297 = vmatprep.subr.bf16.mxu1 %v8248_v62  ;;  %v5104_v21 = vmul.f32 %v8053_v3, %v4424_v57  ;;  %v10330_v30 = vld [vmem:[#allocation32_spill] sm:$0xff]  ;;  %v10331_v57 = vld [vmem:[#allocation34_spill] sm:$0xff] }
 0x312   : > { %v8466_v58 = vadd.f32 %v5563_v32, %v5043_v1  ;;  %v5595_v18 = vadd.f32 %v5594_v33, %v5073_v48  ;;  %v5106_v5 = vmul.f32 %v8064_v35, %v4426_v46  ;;  %3845 = vmatmul.mubr.bf16.gmra.mrb[228].mxu1 %v10214_v54  ;;  %v4427_v53 = vmax.f32 %v3108_v9, 0.0  ;;  %v8488_v33 = vpop.f32.mrb[132].mxu1 }
 0x313   : > { %v5105_v37 = vmul.f32 %v8077_v15, %v4425_v20  ;;  %v4456_v0 = vmax.f32 %v2997_v63, 0.0  ;;  %v3110_v62 = vadd.f32 %v8344_v38, %v8056_v60  ;;  %3854 = vmatprep.mubr.bf16.mxu1 %v10139_v11  ;;  %v5627_v1 = vadd.f32 %v8014_v28, %v5104_v21 }
 0x314   : > { %v5596_v50 = vadd.f32 %v5595_v18, %v5074_v13  ;;  %v2999_v51 = vadd.f32 %v8353_v2, %v8067_v44  ;;  %v3112_v36 = vadd.f32 %v8355_v24, %v8087_v43  ;;  %6305 = vmatpush1.bf16.msra.mxu1 %v10329_v49  ;;  %v5107_v34 = vmul.f32 %v8095_v16, %v4427_v53  ;;  %v8490_v24 = vpop.f32.mrb[148].mxu0 }
 0x315   : > { %v5136_v48 = vmul.f32 %v8053_v3, %v4456_v0  ;;  %v4458_v10 = vmax.f32 %v3110_v62, 0.0  ;;  %v3003_v38 = vadd.f32 %v8377_v47, %v8047_v45  ;;  %6298 = vmatprep.subr.bf16.mxu1 %v10330_v30  ;;  %v5628_v28 = vadd.f32 %v5627_v1, %v5105_v37  ;;  %v8496_v47 = vpop.f32.mrb[133].mxu1  ;;  %v8498_v18 = vpop.f32.mrb[149].mxu0 }
 0x316   : > { %v8486_v13 = vadd.f32 %v5596_v50, %v5075_v25  ;;  %v4457_v32 = vmax.f32 %v2999_v51, 0.0  ;;  %v4459_v2 = vmax.f32 %v3112_v36, 0.0  ;;  %v3116_v63 = vadd.f32 %v8379_v40, %v8056_v60  ;;  %v8505_v0 = vpop.f32.mrb[134].mxu1  ;;  %v8507_v62 = vpop.f32.mrb[150].mxu0  ;;  %v10332_v51 = vld [vmem:[#allocation30_spill] sm:$0xff] }
 0x317   : > { %v5660_v46 = vadd.f32 %v10331_v57, %v5136_v48  ;;  %v5138_v20 = vmul.f32 %v8064_v35, %v4458_v10  ;;  %v4488_v9 = vmax.f32 %v3003_v38, 0.0  ;;  %v5629_v25 = vadd.f32 %v5628_v28, %v5106_v5  ;;  %v10333_v38 = vld [vmem:[#allocation9_spill] sm:$0xff]  ;;  %v8540_v57 = vld [vmem:[%s9981_s5 + $0x10] sm:$0xff] }
 0x318   : > { %v5137_v21 = vmul.f32 %v8077_v15, %v4457_v32  ;;  %v5139_v37 = vmul.f32 %v8095_v16, %v4459_v2  ;;  %3958 = vmatmul.mubr.bf16.gmra.mrb[244].mxu0 %v10214_v54  ;;  %v3005_v53 = vadd.f32 %v8385_v42, %v8067_v44  ;;  %v4490_v50 = vmax.f32 %v3116_v63, 0.0  ;;  %6306 = vmatpush1.bf16.msra.mxu1 %v10332_v51  ;;  %v8516_v54 = vpop.f32.mrb[135].mxu1  ;;  %v8518_v42 = vpop.f32.mrb[151].mxu0  ;;  %v10335_v63 = vld [vmem:[#allocation14_spill] sm:$0xff] }
 0x319   : > { %v5168_v40 = vmul.f32 %v8053_v3, %v4488_v9  ;;  %v3118_v1 = vadd.f32 %v8387_v23, %v8087_v43  ;;  %v3007_v5 = vadd.f32 %v8397_v52, %v8047_v45  ;;  %3967 = vmatprep.mubr.bf16.mxu0 %v10139_v11  ;;  %v8520_v36 = vadd.f32 %v5629_v25, %v5107_v34  ;;  %v8528_v45 = vld [vmem:[%s9980_s4 + $0x10] sm:$0xff]  ;;  %v10334_v23 = vld [vmem:[#allocation25_spill] sm:$0xff] }
 0x31a   : > { %v5661_v49 = vadd.f32 %v5660_v46, %v5137_v21  ;;  %v4489_v48 = vmax.f32 %v3005_v53, 0.0  ;;  %v3120_v10 = vadd.f32 %v8399_v61, %v8056_v60  ;;  %3855 = vmatmul.mubr.bf16.gmra.mrb[232].mxu1 %v10333_v38  ;;  %6299 = vmatprep.subr.bf16.mxu1 %v8311_v22  ;;  %v5170_v30 = vmul.f32 %v8064_v35, %v4490_v50  ;;  %v10336_v25 = vld [vmem:[#allocation37_spill] sm:$0xff]  ;;  %v8556_v50 = vpop.f32.mrb[152].mxu0 }
 0x31b   : > { %v5693_v52 = vadd.f32 %v10334_v23, %v5168_v40  ;;  %v4491_v34 = vmax.f32 %v3118_v1, 0.0  ;;  %v4520_v28 = vmax.f32 %v3007_v5, 0.0  ;;  %3864 = vmatprep.mubr.bf16.mxu1 %v10139_v11  ;;  %v3009_v2 = vadd.f32 %v8406_v26, %v8067_v44  ;;  %v8554_v40 = vpop.f32.mrb[136].mxu1  ;;  %v10338_v1 = vld [vmem:[#allocation26_spill] sm:$0xff] }
 0x31c   : > { %v5662_v32 = vadd.f32 %v5661_v49, %v5138_v20  ;;  %v5169_v60 = vmul.f32 %v8077_v15, %v4489_v48  ;;  %v4522_v61 = vmax.f32 %v3120_v10, 0.0  ;;  %v3122_v9 = vadd.f32 %v8408_v4, %v8087_v43  ;;  %6307 = vmatpush1.bf16.msra.mxu1 %v10336_v25  ;;  %v8566_v51 = vpop.f32.mrb[137].mxu1  ;;  %v10339_v10 = vld [vmem:[#allocation15_spill] sm:$0xff]  ;;  %v10342_v25 = vld [vmem:[#allocation17_spill] sm:$0xff] }
 0x31d   : > { %v5171_v22 = vmul.f32 %v8095_v16, %v4491_v34  ;;  %v5200_v46 = vmul.f32 %v8053_v3, %v4520_v28  ;;  %v8548_v20 = vrot.slane %v8528_v45, %v10335_v63  ;;  %v4521_v53 = vmax.f32 %v3009_v2, 0.0  ;;  %v10337_v3 = vld [vmem:[#allocation42_spill] sm:$0xff]  ;;  %v10341_v2 = vld [vmem:[#allocation41_spill] sm:$0xff] }
 0x31e   : > { %v8551_v21 = vadd.f32 %v5662_v32, %v5139_v37  ;;  %v5694_v44 = vadd.f32 %v5693_v52, %v5169_v60  ;;  %v5202_v26 = vmul.f32 %v8064_v35, %v4522_v61  ;;  %6300 = vmatprep.subr.bf16.mxu1 %v10337_v3  ;;  %v4523_v4 = vmax.f32 %v3122_v9, 0.0  ;;  %v8568_v35 = vpop.f32.mrb[153].mxu0  ;;  %v8580_v52 = vpop.f32.mrb[138].mxu1 }
 0x31f   : > { %v5726_v43 = vadd.f32 %v10338_v1, %v5200_v46  ;;  %v3159_v5 = vadd.f32 %v8436_v59, %v8548_v20  ;;  %v8564_v37 = vrot.slane %v8540_v57, %v10335_v63  ;;  %v5201_v48 = vmul.f32 %v8077_v15, %v4521_v53  ;;  %v8582_v34 = vpop.f32.mrb[154].mxu0  ;;  %v8594_v60 = vpop.f32.mrb[139].mxu1  ;;  %v10343_v53 = vld [vmem:[#allocation8_spill] sm:$0xff]  ;;  %v10353_v63 = vld [vmem:[#allocation29_spill] sm:$0xff] }
 0x320   : > { %v5695_v49 = vadd.f32 %v5694_v44, %v5170_v30  ;;  %3968 = vmatmul.mubr.bf16.gmra.mrb[248].mxu0 %v10333_v38  ;;  %v8574_v23 = vrot.slane %v8528_v45, %v10339_v10  ;;  %v8578_v59 = vrot.slane %v8540_v57, %v10339_v10  ;;  %v5203_v28 = vmul.f32 %v8095_v16, %v4523_v4  ;;  %v10340_v30 = vld [vmem:[#allocation16_spill] sm:$0xff]  ;;  %v8596_v61 = vpop.f32.mrb[155].mxu0 }
 0x321   : > { %v4044_v32 = vmax.f32 %v3159_v5, 0.0  ;;  %v8587_v15 = vrot.slane %v8528_v45, %v10340_v30  ;;  %v8591_v38 = vrot.slane %v8540_v57, %v10340_v30  ;;  %3977 = vmatprep.mubr.bf16.mxu0 %v10139_v11  ;;  %6308 = vmatpush1.bf16.msra.mxu1 %v10341_v2  ;;  %v5727_v16 = vadd.f32 %v5726_v43, %v5201_v48 }
 0x322   : > { %v8599_v46 = vadd.f32 %v5695_v49, %v5171_v22  ;;  %v3272_v9 = vadd.f32 %v8438_v14, %v8574_v23  ;;  %v8605_v44 = vrot.slane %v8528_v45, %v10342_v25  ;;  %3865 = vmatmul.mubr.bf16.gmra.mrb[236].mxu1 %v10343_v53  ;;  %v8613_v4 = vrot.slane %v8540_v57, %v10342_v25 }
 0x323   : > { %v4724_v3 = vmul.f32 %v8564_v37, %v4044_v32  ;;  %v3161_v1 = vadd.f32 %v8444_v56, %v8587_v15  ;;  %v3163_v22 = vadd.f32 %v8451_v19, %v8548_v20  ;;  %3874 = vmatprep.mubr.bf16.mxu1 %v10139_v11  ;;  %v5728_v14 = vadd.f32 %v5727_v16, %v5202_v26  ;;  %v10344_v56 = vld [vmem:[#allocation35_spill] sm:$0xff] }
 0x324   : > { %v4046_v43 = vmax.f32 %v3272_v9, 0.0  ;;  %v3274_v5 = vadd.f32 %v8446_v55, %v8605_v44  ;;  %v3276_v49 = vadd.f32 %v8453_v29, %v8574_v23  ;;  %6301 = vmatprep.subr.bf16.mxu1 %v8373_v31  ;;  %v3165_v25 = vadd.f32 %v8462_v7, %v8587_v15  ;;  %v8630_v9 = vpop.f32.mrb[140].mxu1  ;;  %v8632_v29 = vpop.f32.mrb[156].mxu0 }
 0x325   : > { %v5235_v48 = vadd.f32 %v10344_v56, %v4724_v3  ;;  %v4045_v32 = vmax.f32 %v3161_v1, 0.0  ;;  %v4076_v2 = vmax.f32 %v3163_v22, 0.0  ;;  %6309 = vmatpush1.bf16.msra.mxu1 %v8371_v17  ;;  %v8627_v19 = vadd.f32 %v5728_v14, %v5203_v28  ;;  %v8639_v7 = vpop.f32.mrb[141].mxu1  ;;  %v8641_v28 = vpop.f32.mrb[157].mxu0 }
 0x326   : > { %v4726_v26 = vmul.f32 %v8578_v59, %v4046_v43  ;;  %v4047_v16 = vmax.f32 %v3274_v5, 0.0  ;;  %v4078_v55 = vmax.f32 %v3276_v49, 0.0  ;;  %6302 = vmatprep.subr.bf16.mxu1 %v8404_v6  ;;  %v4077_v1 = vmax.f32 %v3165_v25, 0.0  ;;  %v8650_v25 = vpop.f32.mrb[142].mxu1  ;;  %v8652_v5 = vpop.f32.mrb[158].mxu0  ;;  %v10345_v49 = vld [vmem:[#allocation36_spill] sm:$0xff] }
 0x327   : > { %v4725_v31 = vmul.f32 %v8591_v38, %v4045_v32  ;;  %v4756_v3 = vmul.f32 %v8564_v37, %v4076_v2  ;;  %v3278_v17 = vadd.f32 %v8464_v12, %v8605_v44  ;;  %v3169_v6 = vadd.f32 %v8488_v33, %v8548_v20 }
 0x328   : > { %v4727_v22 = vmul.f32 %v8613_v4, %v4047_v16  ;;  %v4758_v14 = vmul.f32 %v8578_v59, %v4078_v55  ;;  %3978 = vmatmul.mubr.bf16.gmra.mrb[252].mxu0 %v10343_v53  ;;  %v3282_v43 = vadd.f32 %v8490_v24, %v8574_v23  ;;  %v4757_v32 = vmul.f32 %v8591_v38, %v4077_v1  ;;  %v8657_v16 = vpop.f32.mrb[143].mxu1  ;;  %v8659_v53 = vpop.f32.mrb[159].mxu0 }
 0x329   : > { %v5236_v12 = vadd.f32 %v5235_v48, %v4725_v31  ;;  %v5268_v56 = vadd.f32 %v10345_v49, %v4756_v3  ;;  %v4079_v2 = vmax.f32 %v3278_v17, 0.0  ;;  %3987 = vmatprep.mubr.bf16.mxu0 %v10139_v11  ;;  %6310 = vmatpush1.bf16.msra.mxu1 %v8394_v27  ;;  %v4108_v33 = vmax.f32 %v3169_v6, 0.0  ;;  %v10346_v31 = vld [vmem:[#allocation11_spill] sm:$0xff] }
 0x32a   : > { %v4110_v24 = vmax.f32 %v3282_v43, 0.0  ;;  %v3171_v55 = vadd.f32 %v8496_v47, %v8587_v15  ;;  %v3284_v48 = vadd.f32 %v8498_v18, %v8605_v44  ;;  %3875 = vmatmul.mubr.bf16.gmra.mrb[240].mxu1 %v10346_v31  ;;  %v3173_v49 = vadd.f32 %v8505_v0, %v8548_v20 }
 0x32b   : > { %v5237_v3 = vadd.f32 %v5236_v12, %v4726_v26  ;;  %v5269_v1 = vadd.f32 %v5268_v56, %v4757_v32  ;;  %v4759_v17 = vmul.f32 %v8613_v4, %v4079_v2  ;;  %3884 = vmatprep.mubr.bf16.mxu1 %v10139_v11  ;;  %v4788_v27 = vmul.f32 %v8564_v37, %v4108_v33  ;;  %v10348_v12 = vld [vmem:[#allocation27_spill] sm:$0xff]  ;;  %v8682_v33 = vpop.f32.mrb[144].mxu1 }
 0x32c   : > { %v4790_v6 = vmul.f32 %v8578_v59, %v4110_v24  ;;  %v4109_v43 = vmax.f32 %v3171_v55, 0.0  ;;  %v4111_v47 = vmax.f32 %v3284_v48, 0.0  ;;  %v4140_v10 = vmax.f32 %v3173_v49, 0.0  ;;  %v8684_v24 = vpop.f32.mrb[160].mxu0  ;;  %v8691_v48 = vpop.f32.mrb[145].mxu1 }
 0x32d   : > { %v8673_v30 = vadd.f32 %v5237_v3, %v4727_v22  ;;  %v5270_v18 = vadd.f32 %v5269_v1, %v4758_v14  ;;  %v3286_v26 = vadd.f32 %v8507_v62, %v8574_v23  ;;  %v5301_v56 = vadd.f32 %v10348_v12, %v4788_v27  ;;  %v8693_v3 = vpop.f32.mrb[161].mxu0  ;;  %v8700_v27 = vpop.f32.mrb[146].mxu1 }
 0x32e   : > { %v4789_v32 = vmul.f32 %v8591_v38, %v4109_v43  ;;  %v4791_v0 = vmul.f32 %v8613_v4, %v4111_v47  ;;  %v3175_v2 = vadd.f32 %v8516_v54, %v8587_v15  ;;  %v4820_v14 = vmul.f32 %v8564_v37, %v4140_v10  ;;  %v8702_v10 = vpop.f32.mrb[162].mxu0  ;;  %v10350_v43 = vld [vmem:[#allocation31_spill] sm:$0xff] }
 0x32f   : > { %10347 = vst [vmem:[#allocation40_spill] sm:$0xff] %v8673_v30  ;;  %v8686_v22 = vadd.f32 %v5270_v18, %v4759_v17  ;;  %v4142_v55 = vmax.f32 %v3286_v26, 0.0  ;;  %v3288_v62 = vadd.f32 %v8518_v42, %v8605_v44  ;;  %v3179_v54 = vadd.f32 %v8554_v40, %v8548_v20  ;;  %v8711_v40 = vpop.f32.mrb[163].mxu0 }
 0x330   : > { %v5302_v1 = vadd.f32 %v5301_v56, %v4789_v32  ;;  %v4141_v49 = vmax.f32 %v3175_v2, 0.0  ;;  %3988 = vmatmul.mubr.bf16.gmra.mrb[0].mxu0 %v10346_v31  ;;  %v3292_v17 = vadd.f32 %v8556_v50, %v8574_v23  ;;  %v5334_v42 = vadd.f32 %v10350_v43, %v4820_v14  ;;  %v8709_v31 = vpop.f32.mrb[147].mxu1  ;;  %v10351_v2 = vld [vmem:[#allocation10_spill] sm:$0xff] }
 0x331   : > { %10349 = vst [vmem:[#allocation43_spill] sm:$0xff] %v8686_v22  ;;  %v4822_v47 = vmul.f32 %v8578_v59, %v4142_v55  ;;  %v4143_v18 = vmax.f32 %v3288_v62, 0.0  ;;  %v3181_v26 = vadd.f32 %v8566_v51, %v8587_v15  ;;  %3997 = vmatprep.mubr.bf16.mxu0 %v10139_v11  ;;  %v4172_v56 = vmax.f32 %v3179_v54, 0.0 }
 0x332   : > { %v5303_v12 = vadd.f32 %v5302_v1, %v4790_v6  ;;  %v4821_v50 = vmul.f32 %v8591_v38, %v4141_v49  ;;  %v4174_v32 = vmax.f32 %v3292_v17, 0.0  ;;  %3885 = vmatmul.mubr.bf16.gmra.mrb[244].mxu1 %v10351_v2  ;;  %v3294_v62 = vadd.f32 %v8568_v35, %v8605_v44 }
 0x333   : > { %v4823_v14 = vmul.f32 %v8613_v4, %v4143_v18  ;;  %v4173_v55 = vmax.f32 %v3181_v26, 0.0  ;;  %v3183_v51 = vadd.f32 %v8580_v52, %v8548_v20  ;;  %3894 = vmatprep.mubr.bf16.mxu1 %v10139_v11  ;;  %v4852_v1 = vmul.f32 %v8564_v37, %v4172_v56 }
 0x334   : > { %v8721_v43 = vadd.f32 %v5303_v12, %v4791_v0  ;;  %v5335_v6 = vadd.f32 %v5334_v42, %v4821_v50  ;;  %v4854_v49 = vmul.f32 %v8578_v59, %v4174_v32  ;;  %v4175_v17 = vmax.f32 %v3294_v62, 0.0  ;;  %v8733_v42 = vpop.f32.mrb[148].mxu1  ;;  %v8735_v12 = vpop.f32.mrb[164].mxu0 }
 0x335   : > { %v4853_v54 = vmul.f32 %v8591_v38, %v4173_v55  ;;  %v4204_v18 = vmax.f32 %v3183_v51, 0.0  ;;  %v3296_v26 = vadd.f32 %v8582_v34, %v8574_v23  ;;  %v5367_v22 = vadd.f32 %v10353_v63, %v4852_v1  ;;  %v8743_v63 = vpop.f32.mrb[165].mxu0  ;;  %v10355_v1 = vld [vmem:[#allocation33_spill] sm:$0xff] }
 0x336   : > { %10352 = vst [vmem:[#allocation46_spill] sm:$0xff] %v8721_v43  ;;  %v5336_v35 = vadd.f32 %v5335_v6, %v4822_v47  ;;  %v3185_v52 = vadd.f32 %v8594_v60, %v8587_v15  ;;  %v3298_v0 = vadd.f32 %v8596_v61, %v8605_v44  ;;  %v4855_v50 = vmul.f32 %v8613_v4, %v4175_v17  ;;  %v8741_v47 = vpop.f32.mrb[149].mxu1  ;;  %v8750_v6 = vpop.f32.mrb[166].mxu0 }
 0x337   : > { %v4884_v56 = vmul.f32 %v8564_v37, %v4204_v18  ;;  %v4206_v32 = vmax.f32 %v3296_v26, 0.0  ;;  %v3189_v34 = vadd.f32 %v8630_v9, %v8548_v20  ;;  %v5368_v55 = vadd.f32 %v5367_v22, %v4853_v54  ;;  %v8748_v51 = vpop.f32.mrb[150].mxu1 }
 0x338   : > { %v8745_v60 = vadd.f32 %v5336_v35, %v4823_v14  ;;  %v4205_v61 = vmax.f32 %v3185_v52, 0.0  ;;  %v4207_v62 = vmax.f32 %v3298_v0, 0.0  ;;  %3998 = vmatmul.mubr.bf16.gmra.mrb[4].mxu0 %v10351_v2  ;;  %v3302_v26 = vadd.f32 %v8632_v29, %v8574_v23  ;;  %v8756_v43 = vpop.f32.mrb[151].mxu1  ;;  %v8758_v14 = vpop.f32.mrb[167].mxu0  ;;  %v10356_v52 = vld [vmem:[#allocation13_spill] sm:$0xff] }
 0x339   : > { %v5400_v17 = vadd.f32 %v10355_v1, %v4884_v56  ;;  %v4886_v18 = vmul.f32 %v8578_v59, %v4206_v32  ;;  %v4236_v9 = vmax.f32 %v3189_v34, 0.0  ;;  %v5369_v22 = vadd.f32 %v5368_v55, %v4854_v49 }
 0x33a   : > { %10354 = vst [vmem:[#allocation47_spill] sm:$0xff] %v8745_v60  ;;  %v4885_v54 = vmul.f32 %v8591_v38, %v4205_v61  ;;  %v4887_v2 = vmul.f32 %v8613_v4, %v4207_v62  ;;  %v3191_v35 = vadd.f32 %v8639_v7, %v8587_v15  ;;  %3895 = vmatmul.mubr.bf16.gmra.mrb[248].mxu1 %v10356_v52  ;;  %v4238_v56 = vmax.f32 %v3302_v26, 0.0  ;;  %v10357_v61 = vld [vmem:[#allocation38_spill] sm:$0xff] }
 0x33b   : > { %v4916_v0 = vmul.f32 %v8564_v37, %v4236_v9  ;;  %v3304_v29 = vadd.f32 %v8641_v28, %v8605_v44  ;;  %v3193_v32 = vadd.f32 %v8650_v25, %v8548_v20  ;;  %3904 = vmatprep.mubr.bf16.mxu1 %v10139_v11  ;;  %v8771_v49 = vadd.f32 %v5369_v22, %v4855_v50  ;;  %v8780_v50 = vpop.f32.mrb[152].mxu1 }
 0x33c   : > { %v5401_v34 = vadd.f32 %v5400_v17, %v4885_v54  ;;  %v4237_v55 = vmax.f32 %v3191_v35, 0.0  ;;  %v3306_v7 = vadd.f32 %v8652_v5, %v8574_v23  ;;  %v4918_v1 = vmul.f32 %v8578_v59, %v4238_v56  ;;  %v8782_v17 = vpop.f32.mrb[168].mxu0  ;;  %v8790_v35 = vpop.f32.mrb[153].mxu1 }
 0x33d   : > { %v5433_v62 = vadd.f32 %v10357_v61, %v4916_v0  ;;  %v4239_v9 = vmax.f32 %v3304_v29, 0.0  ;;  %v4268_v26 = vmax.f32 %v3193_v32, 0.0  ;;  %v3195_v25 = vadd.f32 %v8657_v16, %v8587_v15  ;;  %v8792_v0 = vpop.f32.mrb[169].mxu0 }
 0x33e   : > { %v5402_v60 = vadd.f32 %v5401_v34, %v4886_v18  ;;  %v4917_v28 = vmul.f32 %v8591_v38, %v4237_v55  ;;  %v4270_v30 = vmax.f32 %v3306_v7, 0.0  ;;  %v3308_v54 = vadd.f32 %v8659_v53, %v8605_v44  ;;  %v8797_v34 = vpop.f32.mrb[154].mxu1  ;;  %v8799_v55 = vpop.f32.mrb[170].mxu0 }
 0x33f   : > { %v4919_v22 = vmul.f32 %v8613_v4, %v4239_v9  ;;  %v4948_v5 = vmul.f32 %v8564_v37, %v4268_v26  ;;  %v3199_v18 = vadd.f32 %v8682_v33, %v8548_v20  ;;  %v4269_v32 = vmax.f32 %v3195_v25, 0.0  ;;  %v8804_v9 = vpop.f32.mrb[155].mxu1  ;;  %v8806_v26 = vpop.f32.mrb[171].mxu0 }
 0x340   : > { %v8794_v56 = vadd.f32 %v5402_v60, %v4887_v2  ;;  %v5434_v16 = vadd.f32 %v5433_v62, %v4917_v28  ;;  %v4950_v29 = vmul.f32 %v8578_v59, %v4270_v30  ;;  %v4271_v53 = vmax.f32 %v3308_v54, 0.0  ;;  %v10358_v28 = vld [vmem:[#allocation12_spill] sm:$0xff] }
 0x341   : > { %v5466_v7 = vadd.f32 %v8366_v39, %v4948_v5  ;;  %v4300_v61 = vmax.f32 %v3199_v18, 0.0  ;;  %v3312_v33 = vadd.f32 %v8684_v24, %v8574_v23  ;;  %v4949_v2 = vmul.f32 %v8591_v38, %v4269_v32 }
 0x342   : > { %v5435_v60 = vadd.f32 %v5434_v16, %v4918_v1  ;;  %v3201_v30 = vadd.f32 %v8691_v48, %v8587_v15  ;;  %v3314_v62 = vadd.f32 %v8693_v3, %v8605_v44  ;;  %3905 = vmatmul.mubr.bf16.gmra.mrb[252].mxu1 %v10358_v28  ;;  %v4951_v39 = vmul.f32 %v8613_v4, %v4271_v53 }
 0x343   : > { %v4980_v25 = vmul.f32 %v8564_v37, %v4300_v61  ;;  %v4302_v24 = vmax.f32 %v3312_v33, 0.0  ;;  %v3203_v5 = vadd.f32 %v8700_v27, %v8548_v20  ;;  %4007 = vmatprep.mubr.bf16.mxu1 %v10139_v11  ;;  %v5467_v54 = vadd.f32 %v5466_v7, %v4949_v2 }
 0x344   : > { %v8819_v1 = vadd.f32 %v5435_v60, %v4919_v22  ;;  %v4301_v18 = vmax.f32 %v3201_v30, 0.0  ;;  %v4303_v48 = vmax.f32 %v3314_v62, 0.0  ;;  %v3316_v53 = vadd.f32 %v8702_v10, %v8574_v23  ;;  %v8829_v60 = vpop.f32.mrb[156].mxu1  ;;  %v8836_v10 = vpop.f32.mrb[172].mxu0 }
 0x345   : > { %v5499_v16 = vadd.f32 %v8401_v41, %v4980_v25  ;;  %v4982_v3 = vmul.f32 %v8578_v59, %v4302_v24  ;;  %v4332_v32 = vmax.f32 %v3203_v5, 0.0  ;;  %v5468_v61 = vadd.f32 %v5467_v54, %v4950_v29  ;;  %v8838_v29 = vpop.f32.mrb[157].mxu1  ;;  %v8844_v5 = vpop.f32.mrb[173].mxu0 }
 0x346   : > { %v4981_v33 = vmul.f32 %v8591_v38, %v4301_v18  ;;  %v4983_v27 = vmul.f32 %v8613_v4, %v4303_v48  ;;  %v3205_v22 = vadd.f32 %v8709_v31, %v8587_v15  ;;  %v4334_v2 = vmax.f32 %v3316_v53, 0.0  ;;  %v8846_v54 = vpop.f32.mrb[158].mxu1 }
 0x347   : > { %v5012_v7 = vmul.f32 %v8564_v37, %v4332_v32  ;;  %v3318_v41 = vadd.f32 %v8711_v40, %v8605_v44  ;;  %v3209_v30 = vadd.f32 %v8733_v42, %v8548_v20  ;;  %v8840_v62 = vadd.f32 %v5468_v61, %v4951_v39  ;;  %v8850_v32 = vpop.f32.mrb[174].mxu0  ;;  %v8852_v53 = vpop.f32.mrb[159].mxu1 }
 0x348   : > { %v5500_v25 = vadd.f32 %v5499_v16, %v4981_v33  ;;  %v4333_v24 = vmax.f32 %v3205_v22, 0.0  ;;  %v3322_v31 = vadd.f32 %v8735_v12, %v8574_v23  ;;  %v5014_v18 = vmul.f32 %v8578_v59, %v4334_v2  ;;  %v8858_v33 = vpop.f32.mrb[175].mxu0 }
 0x349   : > { %v5532_v40 = vadd.f32 %v8425_v8, %v5012_v7  ;;  %v4335_v42 = vmax.f32 %v3318_v41, 0.0  ;;  %v4364_v48 = vmax.f32 %v3209_v30, 0.0  ;;  %v3211_v12 = vadd.f32 %v8741_v47, %v8587_v15 }
 0x34a   : > { %v5501_v39 = vadd.f32 %v5500_v25, %v4982_v3  ;;  %v5013_v16 = vmul.f32 %v8591_v38, %v4333_v24  ;;  %v4366_v61 = vmax.f32 %v3322_v31, 0.0  ;;  %4008 = vmatmul.mubr.bf16.vlgmr.msra.gmra.mrb[0].mxu1 %v10356_v52  ;;  %v3324_v7 = vadd.f32 %v8743_v63, %v8605_v44 }
 0x34b   : > { %v5015_v8 = vmul.f32 %v8613_v4, %v4335_v42  ;;  %v5044_v22 = vmul.f32 %v8564_v37, %v4364_v48  ;;  %v3213_v3 = vadd.f32 %v8748_v51, %v8548_v20  ;;  %4017 = vmatprep.mubr.bf16.mxu1 %v10139_v11  ;;  %v4365_v52 = vmax.f32 %v3211_v12, 0.0 }
 0x34c   : > { %v8867_v2 = vadd.f32 %v5501_v39, %v4983_v27  ;;  %v5533_v41 = vadd.f32 %v5532_v40, %v5013_v16  ;;  %v5046_v47 = vmul.f32 %v8578_v59, %v4366_v61  ;;  %v4367_v25 = vmax.f32 %v3324_v7, 0.0  ;;  %v8878_v27 = vpop.f32.mrb[160].mxu1 }
 0x34d   : > { %v5565_v30 = vadd.f32 %v8466_v58, %v5044_v22  ;;  %v4396_v24 = vmax.f32 %v3213_v3, 0.0  ;;  %v3326_v31 = vadd.f32 %v8750_v6, %v8574_v23  ;;  %v5045_v63 = vmul.f32 %v8591_v38, %v4365_v52  ;;  %v8884_v6 = vpop.f32.mrb[176].mxu0 }
 0x34e   : > { %v5534_v42 = vadd.f32 %v5533_v41, %v5014_v18  ;;  %v3215_v51 = vadd.f32 %v8756_v43, %v8587_v15  ;;  %v3328_v11 = vadd.f32 %v8758_v14, %v8605_v44  ;;  %v5047_v40 = vmul.f32 %v8613_v4, %v4367_v25  ;;  %v8886_v18 = vpop.f32.mrb[161].mxu1  ;;  %v8890_v14 = vpop.f32.mrb[177].mxu0 }
 0x34f   : > { %v5076_v58 = vmul.f32 %v8564_v37, %v4396_v24  ;;  %v4398_v48 = vmax.f32 %v3326_v31, 0.0  ;;  %v3219_v39 = vadd.f32 %v8780_v50, %v8548_v20  ;;  %v5566_v43 = vadd.f32 %v5565_v30, %v5045_v63  ;;  %v8892_v22 = vpop.f32.mrb[162].mxu1  ;;  %v8898_v52 = vpop.f32.mrb[178].mxu0 }
 0x350   : > { %v8888_v16 = vadd.f32 %v5534_v42, %v5015_v8  ;;  %v4397_v61 = vmax.f32 %v3215_v51, 0.0  ;;  %v4399_v12 = vmax.f32 %v3328_v11, 0.0  ;;  %v3332_v50 = vadd.f32 %v8782_v17, %v8574_v23  ;;  %v8900_v25 = vpop.f32.mrb[163].mxu1 }
 0x351   : > { %v5598_v7 = vadd.f32 %v8486_v13, %v5076_v58  ;;  %v5078_v3 = vmul.f32 %v8578_v59, %v4398_v48  ;;  %v4428_v41 = vmax.f32 %v3219_v39, 0.0  ;;  %v5567_v8 = vadd.f32 %v5566_v43, %v5046_v47  ;;  %v8907_v13 = vpop.f32.mrb[179].mxu0 }
 0x352   : > { %v5077_v30 = vmul.f32 %v8591_v38, %v4397_v61  ;;  %v5079_v24 = vmul.f32 %v8613_v4, %v4399_v12  ;;  %v3221_v31 = vadd.f32 %v8790_v35, %v8587_v15  ;;  %4018 = vmatmul.mubr.bf16.gmra.mrb[4].mxu1 %v10358_v28  ;;  %v4430_v63 = vmax.f32 %v3332_v50, 0.0  ;;  %v8931_v50 = vpop.f32.mrb[180].mxu0 }
 0x353   : > { %v5108_v42 = vmul.f32 %v8564_v37, %v4428_v41  ;;  %v3334_v17 = vadd.f32 %v8792_v0, %v8605_v44  ;;  %v3223_v47 = vadd.f32 %v8797_v34, %v8548_v20  ;;  %v8914_v51 = vadd.f32 %v5567_v8, %v5047_v40  ;;  %v8923_v40 = vpop.f32.mrb[164].mxu1 }
 0x354   : > { %v5599_v11 = vadd.f32 %v5598_v7, %v5077_v30  ;;  %v4429_v58 = vmax.f32 %v3221_v31, 0.0  ;;  %v3336_v35 = vadd.f32 %v8799_v55, %v8574_v23  ;;  %v5110_v48 = vmul.f32 %v8578_v59, %v4430_v63 }
 0x355   : > { %v5631_v28 = vadd.f32 %v8520_v36, %v5108_v42  ;;  %v4431_v39 = vmax.f32 %v3334_v17, 0.0  ;;  %v4460_v43 = vmax.f32 %v3223_v47, 0.0  ;;  %v3225_v34 = vadd.f32 %v8804_v9, %v8587_v15  ;;  %v8938_v42 = vpop.f32.mrb[181].mxu0 }
 0x356   : > { %v5600_v61 = vadd.f32 %v5599_v11, %v5078_v3  ;;  %v5109_v12 = vmul.f32 %v8591_v38, %v4429_v58  ;;  %v4462_v0 = vmax.f32 %v3336_v35, 0.0  ;;  %v3338_v36 = vadd.f32 %v8806_v26, %v8605_v44  ;;  %v8933_v3 = vpop.f32.mrb[165].mxu1  ;;  %v8945_v11 = vpop.f32.mrb[182].mxu0 }
 0x357   : > { %v5111_v7 = vmul.f32 %v8613_v4, %v4431_v39  ;;  %v5140_v41 = vmul.f32 %v8564_v37, %v4460_v43  ;;  %v3229_v55 = vadd.f32 %v8829_v60, %v8548_v20  ;;  %v4461_v31 = vmax.f32 %v3225_v34, 0.0  ;;  %v8940_v63 = vpop.f32.mrb[166].mxu1  ;;  %v8954_v43 = vpop.f32.mrb[183].mxu0 }
 0x358   : > { %v8935_v8 = vadd.f32 %v5600_v61, %v5079_v24  ;;  %v5632_v30 = vadd.f32 %v5631_v28, %v5109_v12  ;;  %v5142_v9 = vmul.f32 %v8578_v59, %v4462_v0  ;;  %v4463_v26 = vmax.f32 %v3338_v36, 0.0  ;;  %v8947_v58 = vpop.f32.mrb[167].mxu1 }
 0x359   : > { %v5664_v17 = vadd.f32 %v8551_v21, %v5140_v41  ;;  %v4492_v47 = vmax.f32 %v3229_v55, 0.0  ;;  %v3342_v60 = vadd.f32 %v8836_v10, %v8574_v23  ;;  %v5141_v35 = vmul.f32 %v8591_v38, %v4461_v31 }
 0x35a   : > { %v5633_v24 = vadd.f32 %v5632_v30, %v5110_v48  ;;  %v3231_v28 = vadd.f32 %v8838_v29, %v8587_v15  ;;  %v3344_v39 = vadd.f32 %v8844_v5, %v8605_v44  ;;  %v5143_v21 = vmul.f32 %v8613_v4, %v4463_v26 }
 0x35b   : > { %v5172_v61 = vmul.f32 %v8564_v37, %v4492_v47  ;;  %v4494_v10 = vmax.f32 %v3342_v60, 0.0  ;;  %v3233_v12 = vadd.f32 %v8846_v54, %v8548_v20  ;;  %v5665_v48 = vadd.f32 %v5664_v17, %v5141_v35  ;;  %v8970_v54 = vpop.f32.mrb[168].mxu1  ;;  %v10359_v47 = vld [vmem:[#allocation20_spill] sm:$0xff] }
 0x35c   : > { %v8960_v0 = vadd.f32 %v5633_v24, %v5111_v7  ;;  %v4493_v34 = vmax.f32 %v3231_v28, 0.0  ;;  %v4495_v41 = vmax.f32 %v3344_v39, 0.0  ;;  %v3346_v55 = vadd.f32 %v8850_v32, %v8574_v23  ;;  %v8979_v23 = vpop.f32.mrb[184].mxu0  ;;  %v8981_v32 = vpop.f32.mrb[169].mxu1 }
 0x35d   : > { %v5697_v29 = vadd.f32 %v8599_v46, %v5172_v61  ;;  %v5174_v36 = vmul.f32 %v8578_v59, %v4494_v10  ;;  %v4524_v5 = vmax.f32 %v3233_v12, 0.0  ;;  %v5666_v30 = vadd.f32 %v5665_v48, %v5142_v9  ;;  %v8991_v35 = vpop.f32.mrb[170].mxu1  ;;  %v10360_v48 = vld [vmem:[#allocation21_spill] sm:$0xff] }
 0x35e   : > { %v5173_v31 = vmul.f32 %v8591_v38, %v4493_v34  ;;  %v5175_v26 = vmul.f32 %v8613_v4, %v4495_v41  ;;  %v3235_v20 = vadd.f32 %v8852_v53, %v8587_v15  ;;  %v4526_v17 = vmax.f32 %v3346_v55, 0.0  ;;  %v8999_v61 = vpop.f32.mrb[171].mxu1 }
 0x35f   : > { %v5204_v7 = vmul.f32 %v8564_v37, %v4524_v5  ;;  %v3348_v46 = vadd.f32 %v8858_v33, %v8605_v44  ;;  %v8977_v60 = vrot.slane %v8528_v45, %v10359_v47  ;;  %v8983_v9 = vadd.f32 %v5666_v30, %v5143_v21  ;;  %v8989_v37 = vpop.f32.mrb[185].mxu0 }
 0x360   : > { %v5698_v24 = vadd.f32 %v5697_v29, %v5173_v31  ;;  %v4525_v15 = vmax.f32 %v3235_v20, 0.0  ;;  %v8987_v53 = vrot.slane %v8540_v57, %v10359_v47  ;;  %v5206_v33 = vmul.f32 %v8578_v59, %v4526_v17  ;;  %v8997_v21 = vpop.f32.mrb[186].mxu0  ;;  %v10361_v29 = vld [vmem:[#allocation22_spill] sm:$0xff]  ;;  %v10362_v31 = vld [vmem:[#allocation23_spill] sm:$0xff] }
 0x361   : > { %v5730_v44 = vadd.f32 %v8627_v19, %v5204_v7  ;;  %v4527_v28 = vmax.f32 %v3348_v46, 0.0  ;;  %v3385_v39 = vadd.f32 %v8878_v27, %v8977_v60  ;;  %v9004_v34 = vrot.slane %v8528_v45, %v10360_v48  ;;  %v9010_v59 = vpop.f32.mrb[187].mxu0 }
 0x362   : > { %v5699_v10 = vadd.f32 %v5698_v24, %v5174_v36  ;;  %v5205_v12 = vmul.f32 %v8591_v38, %v4525_v15  ;;  %v9008_v19 = vrot.slane %v8540_v57, %v10360_v48  ;;  %v9015_v5 = vrot.slane %v8528_v45, %v10361_v29 }
 0x363   : > { %v5207_v41 = vmul.f32 %v8613_v4, %v4527_v28  ;;  %v4048_v27 = vmax.f32 %v3385_v39, 0.0  ;;  %v9019_v38 = vrot.slane %v8540_v57, %v10361_v29  ;;  %v3498_v30 = vadd.f32 %v8884_v6, %v9004_v34  ;;  %v9042_v15 = vpop.f32.mrb[172].mxu1 }
 0x364   : > { %v9021_v36 = vadd.f32 %v5699_v10, %v5175_v26  ;;  %v5731_v55 = vadd.f32 %v5730_v44, %v5205_v12  ;;  %v9027_v20 = vrot.slane %v8528_v45, %v10362_v31  ;;  %v3387_v7 = vadd.f32 %v8886_v18, %v9015_v5  ;;  %v10363_v44 = vld [vmem:[#allocation40_spill] sm:$0xff]  ;;  %v9047_v10 = vpop.f32.mrb[188].mxu0 }
 0x365   : > { %v4728_v4 = vmul.f32 %v8987_v53, %v4048_v27  ;;  %v9034_v17 = vrot.slane %v8540_v57, %v10362_v31  ;;  %v3389_v26 = vadd.f32 %v8892_v22, %v8977_v60  ;;  %v4050_v24 = vmax.f32 %v3498_v30, 0.0  ;;  %v9049_v22 = vpop.f32.mrb[173].mxu1 }
 0x366   : > { %v5732_v46 = vadd.f32 %v5731_v55, %v5206_v33  ;;  %v3500_v6 = vadd.f32 %v8890_v14, %v9027_v20  ;;  %v3502_v45 = vadd.f32 %v8898_v52, %v9004_v34  ;;  %v4049_v18 = vmax.f32 %v3387_v7, 0.0  ;;  %v9054_v52 = vpop.f32.mrb[189].mxu0  ;;  %v9056_v55 = vpop.f32.mrb[174].mxu1 }
 0x367   : > { %v5239_v28 = vadd.f32 %v10363_v44, %v4728_v4  ;;  %v4080_v39 = vmax.f32 %v3389_v26, 0.0  ;;  %v3391_v57 = vadd.f32 %v8900_v25, %v9015_v5  ;;  %v4730_v14 = vmul.f32 %v9008_v19, %v4050_v24  ;;  %v9062_v26 = vpop.f32.mrb[190].mxu0 }
 0x368   : > { %v9051_v33 = vadd.f32 %v5732_v46, %v5207_v41  ;;  %v4051_v12 = vmax.f32 %v3500_v6, 0.0  ;;  %v4082_v27 = vmax.f32 %v3502_v45, 0.0  ;;  %v4729_v30 = vmul.f32 %v9019_v38, %v4049_v18  ;;  %v9064_v41 = vpop.f32.mrb[175].mxu1  ;;  %v9072_v44 = vpop.f32.mrb[191].mxu0 }
 0x369   : > { %v4760_v4 = vmul.f32 %v8987_v53, %v4080_v39  ;;  %v4081_v7 = vmax.f32 %v3391_v57, 0.0  ;;  %v3504_v25 = vadd.f32 %v8907_v13, %v9027_v20  ;;  %v3395_v6 = vadd.f32 %v8923_v40, %v8977_v60  ;;  %v10364_v39 = vld [vmem:[#allocation43_spill] sm:$0xff] }
 0x36a   : > { %v4731_v46 = vmul.f32 %v9034_v17, %v4051_v12  ;;  %v4762_v24 = vmul.f32 %v9008_v19, %v4082_v27  ;;  %v3508_v45 = vadd.f32 %v8931_v50, %v9004_v34  ;;  %v5240_v18 = vadd.f32 %v5239_v28, %v4729_v30 }
 0x36b   : > { %v5272_v57 = vadd.f32 %v10364_v39, %v4760_v4  ;;  %v4761_v13 = vmul.f32 %v9019_v38, %v4081_v7  ;;  %v4083_v31 = vmax.f32 %v3504_v25, 0.0  ;;  %v4112_v29 = vmax.f32 %v3395_v6, 0.0  ;;  %v9085_v6 = vpop.f32.mrb[176].mxu1 }
 0x36c   : > { %v4114_v48 = vmax.f32 %v3508_v45, 0.0  ;;  %v3397_v12 = vadd.f32 %v8933_v3, %v9015_v5  ;;  %v3510_v27 = vadd.f32 %v8938_v42, %v9027_v20  ;;  %v5241_v40 = vadd.f32 %v5240_v18, %v4730_v14  ;;  %v9091_v14 = vpop.f32.mrb[192].mxu0 }
 0x36d   : > { %v5273_v47 = vadd.f32 %v5272_v57, %v4761_v13  ;;  %v4763_v50 = vmul.f32 %v9034_v17, %v4083_v31  ;;  %v3399_v28 = vadd.f32 %v8940_v63, %v8977_v60  ;;  %v4792_v30 = vmul.f32 %v8987_v53, %v4112_v29  ;;  %v9093_v31 = vpop.f32.mrb[177].mxu1  ;;  %v10366_v63 = vld [vmem:[#allocation46_spill] sm:$0xff] }
 0x36e   : > { %v4794_v4 = vmul.f32 %v9008_v19, %v4114_v48  ;;  %v4113_v7 = vmax.f32 %v3397_v12, 0.0  ;;  %v4115_v25 = vmax.f32 %v3510_v27, 0.0  ;;  %v9087_v45 = vadd.f32 %v5241_v40, %v4731_v46  ;;  %v9100_v46 = vpop.f32.mrb[193].mxu0 }
 0x36f   : > { %v5274_v3 = vadd.f32 %v5273_v47, %v4762_v24  ;;  %v4144_v39 = vmax.f32 %v3399_v28, 0.0  ;;  %v3512_v42 = vadd.f32 %v8945_v11, %v9004_v34  ;;  %v5305_v18 = vadd.f32 %v10366_v63, %v4792_v30  ;;  %v9102_v47 = vpop.f32.mrb[178].mxu1  ;;  %v9109_v27 = vpop.f32.mrb[194].mxu0 }
 0x370   : > { %10365 = vst [vmem:[#allocation44_spill] sm:$0xff] %v9087_v45  ;;  %v4793_v29 = vmul.f32 %v9019_v38, %v4113_v7  ;;  %v4795_v48 = vmul.f32 %v9034_v17, %v4115_v25  ;;  %v3401_v57 = vadd.f32 %v8947_v58, %v9015_v5  ;;  %v3514_v12 = vadd.f32 %v8954_v43, %v9027_v20  ;;  %v9111_v40 = vpop.f32.mrb[179].mxu1  ;;  %v10368_v25 = vld [vmem:[#allocation47_spill] sm:$0xff] }
 0x371   : > { %v9104_v24 = vadd.f32 %v5274_v3, %v4763_v50  ;;  %v4824_v11 = vmul.f32 %v8987_v53, %v4144_v39  ;;  %v4146_v13 = vmax.f32 %v3512_v42, 0.0  ;;  %v3405_v58 = vadd.f32 %v8970_v54, %v8977_v60  ;;  %v9117_v50 = vpop.f32.mrb[195].mxu0 }
 0x372   : > { %v5306_v28 = vadd.f32 %v5305_v18, %v4793_v29  ;;  %v4145_v30 = vmax.f32 %v3401_v57, 0.0  ;;  %v3518_v7 = vadd.f32 %v8979_v23, %v9004_v34  ;;  %v4147_v42 = vmax.f32 %v3514_v12, 0.0 }
 0x373   : > { %10367 = vst [vmem:[#allocation45_spill] sm:$0xff] %v9104_v24  ;;  %v5338_v3 = vadd.f32 %v10368_v25, %v4824_v11  ;;  %v4826_v39 = vmul.f32 %v9008_v19, %v4146_v13  ;;  %v3407_v43 = vadd.f32 %v8981_v32, %v9015_v5  ;;  %v4176_v29 = vmax.f32 %v3405_v58, 0.0 }
 0x374   : > { %v5307_v63 = vadd.f32 %v5306_v28, %v4794_v4  ;;  %v4825_v18 = vmul.f32 %v9019_v38, %v4145_v30  ;;  %v4178_v57 = vmax.f32 %v3518_v7, 0.0  ;;  %v4827_v54 = vmul.f32 %v9034_v17, %v4147_v42  ;;  %v9133_v4 = vpop.f32.mrb[180].mxu1 }
 0x375   : > { %v4177_v24 = vmax.f32 %v3407_v43, 0.0  ;;  %v3520_v23 = vadd.f32 %v8989_v37, %v9027_v20  ;;  %v3409_v11 = vadd.f32 %v8991_v35, %v8977_v60  ;;  %v4856_v12 = vmul.f32 %v8987_v53, %v4176_v29  ;;  %v9138_v37 = vpop.f32.mrb[196].mxu0  ;;  %v9140_v42 = vpop.f32.mrb[181].mxu1 }
 0x376   : > { %v9129_v25 = vadd.f32 %v5307_v63, %v4795_v48  ;;  %v5339_v13 = vadd.f32 %v5338_v3, %v4825_v18  ;;  %v4858_v32 = vmul.f32 %v9008_v19, %v4178_v57  ;;  %v3522_v7 = vadd.f32 %v8997_v21, %v9004_v34  ;;  %v9147_v63 = vpop.f32.mrb[197].mxu0 }
 0x377   : > { %v4857_v28 = vmul.f32 %v9019_v38, %v4177_v24  ;;  %v4179_v30 = vmax.f32 %v3520_v23, 0.0  ;;  %v4208_v58 = vmax.f32 %v3409_v11, 0.0  ;;  %v5371_v48 = vadd.f32 %v8771_v49, %v4856_v12  ;;  %v9149_v24 = vpop.f32.mrb[182].mxu1  ;;  %v9155_v57 = vpop.f32.mrb[198].mxu0 }
 0x378   : > { %10369 = vst [vmem:[#allocation7_spill] sm:$0xff] %v9129_v25  ;;  %v5340_v35 = vadd.f32 %v5339_v13, %v4826_v39  ;;  %v3411_v3 = vadd.f32 %v8999_v61, %v9015_v5  ;;  %v3524_v43 = vadd.f32 %v9010_v59, %v9027_v20  ;;  %v4210_v29 = vmax.f32 %v3522_v7, 0.0  ;;  %v9157_v49 = vpop.f32.mrb[183].mxu1  ;;  %v9161_v13 = vpop.f32.mrb[199].mxu0 }
 0x379   : > { %v4859_v18 = vmul.f32 %v9034_v17, %v4179_v30  ;;  %v4888_v21 = vmul.f32 %v8987_v53, %v4208_v58  ;;  %v3415_v39 = vadd.f32 %v9042_v15, %v8977_v60  ;;  %v5372_v23 = vadd.f32 %v5371_v48, %v4857_v28 }
 0x37a   : > { %v9159_v61 = vadd.f32 %v5340_v35, %v4827_v54  ;;  %v4209_v59 = vmax.f32 %v3411_v3, 0.0  ;;  %v4211_v11 = vmax.f32 %v3524_v43, 0.0  ;;  %v4890_v30 = vmul.f32 %v9008_v19, %v4210_v29 }
 0x37b   : > { %v5404_v12 = vadd.f32 %v8794_v56, %v4888_v21  ;;  %v4240_v58 = vmax.f32 %v3415_v39, 0.0  ;;  %v3528_v7 = vadd.f32 %v9047_v10, %v9004_v34  ;;  %v5373_v15 = vadd.f32 %v5372_v23, %v4858_v32  ;;  %v9180_v21 = vpop.f32.mrb[184].mxu1 }
 0x37c   : > { %v4889_v25 = vmul.f32 %v9019_v38, %v4209_v59  ;;  %v4891_v45 = vmul.f32 %v9034_v17, %v4211_v11  ;;  %v3417_v54 = vadd.f32 %v9049_v22, %v9015_v5  ;;  %v3530_v56 = vadd.f32 %v9054_v52, %v9027_v20  ;;  %v9184_v59 = vpop.f32.mrb[200].mxu0  ;;  %v9186_v52 = vpop.f32.mrb[185].mxu1 }
 0x37d   : > { %v4920_v28 = vmul.f32 %v8987_v53, %v4240_v58  ;;  %v4242_v35 = vmax.f32 %v3528_v7, 0.0  ;;  %v3419_v48 = vadd.f32 %v9056_v55, %v8977_v60  ;;  %v9176_v3 = vadd.f32 %v5373_v15, %v4859_v18 }
 0x37e   : > { %v5405_v10 = vadd.f32 %v5404_v12, %v4889_v25  ;;  %v4241_v32 = vmax.f32 %v3417_v54, 0.0  ;;  %v3532_v43 = vadd.f32 %v9062_v26, %v9004_v34  ;;  %v4243_v39 = vmax.f32 %v3530_v56, 0.0  ;;  %v9191_v26 = vpop.f32.mrb[201].mxu0  ;;  %v9193_v12 = vpop.f32.mrb[186].mxu1 }
 0x37f   : > { %v5437_v22 = vadd.f32 %v8819_v1, %v4920_v28  ;;  %v4922_v29 = vmul.f32 %v9008_v19, %v4242_v35  ;;  %v4272_v23 = vmax.f32 %v3419_v48, 0.0  ;;  %v3421_v11 = vadd.f32 %v9064_v41, %v9015_v5  ;;  %v9201_v15 = vpop.f32.mrb[202].mxu0  ;;  %v9203_v54 = vpop.f32.mrb[187].mxu1 }
 0x380   : > { %v5406_v55 = vadd.f32 %v5405_v10, %v4890_v30  ;;  %v4921_v18 = vmul.f32 %v9019_v38, %v4241_v32  ;;  %v4274_v25 = vmax.f32 %v3532_v43, 0.0  ;;  %v4923_v1 = vmul.f32 %v9034_v17, %v4243_v39  ;;  %v9208_v48 = vpop.f32.mrb[203].mxu0 }
 0x381   : > { %v4952_v58 = vmul.f32 %v8987_v53, %v4272_v23  ;;  %v3534_v7 = vadd.f32 %v9072_v44, %v9027_v20  ;;  %v3425_v30 = vadd.f32 %v9085_v6, %v8977_v60  ;;  %v4273_v56 = vmax.f32 %v3421_v11, 0.0 }
 0x382   : > { %v9205_v28 = vadd.f32 %v5406_v55, %v4891_v45  ;;  %v5438_v41 = vadd.f32 %v5437_v22, %v4921_v18  ;;  %v4954_v35 = vmul.f32 %v9008_v19, %v4274_v25  ;;  %v3538_v44 = vadd.f32 %v9091_v14, %v9004_v34 }
 0x383   : > { %v5470_v10 = vadd.f32 %v8840_v62, %v4952_v58  ;;  %v4275_v32 = vmax.f32 %v3534_v7, 0.0  ;;  %v4304_v43 = vmax.f32 %v3425_v30, 0.0  ;;  %v4953_v39 = vmul.f32 %v9019_v38, %v4273_v56 }
 0x384   : > { %v5439_v6 = vadd.f32 %v5438_v41, %v4922_v29  ;;  %v3427_v45 = vadd.f32 %v9093_v31, %v9015_v5  ;;  %v3540_v22 = vadd.f32 %v9100_v46, %v9027_v20  ;;  %v4306_v18 = vmax.f32 %v3538_v44, 0.0 }
 0x385   : > { %v4955_v23 = vmul.f32 %v9034_v17, %v4275_v32  ;;  %v4984_v55 = vmul.f32 %v8987_v53, %v4304_v43  ;;  %v3429_v62 = vadd.f32 %v9102_v47, %v8977_v60  ;;  %v5471_v14 = vadd.f32 %v5470_v10, %v4953_v39  ;;  %v9228_v30 = vpop.f32.mrb[188].mxu1 }
 0x386   : > { %v9222_v25 = vadd.f32 %v5439_v6, %v4923_v1  ;;  %v4305_v29 = vmax.f32 %v3427_v45, 0.0  ;;  %v4307_v11 = vmax.f32 %v3540_v22, 0.0  ;;  %v4986_v31 = vmul.f32 %v9008_v19, %v4306_v18  ;;  %v9234_v10 = vpop.f32.mrb[204].mxu0  ;;  %v9236_v32 = vpop.f32.mrb[189].mxu1 }
 0x387   : > { %v5503_v58 = vadd.f32 %v8867_v2, %v4984_v55  ;;  %v4336_v7 = vmax.f32 %v3429_v62, 0.0  ;;  %v3542_v46 = vadd.f32 %v9109_v27, %v9004_v34  ;;  %v5472_v41 = vadd.f32 %v5471_v14, %v4954_v35  ;;  %v9243_v44 = vpop.f32.mrb[205].mxu0  ;;  %v9245_v6 = vpop.f32.mrb[190].mxu1 }
 0x388   : > { %v4985_v56 = vmul.f32 %v9019_v38, %v4305_v29  ;;  %v4987_v47 = vmul.f32 %v9034_v17, %v4307_v11  ;;  %v3431_v1 = vadd.f32 %v9111_v40, %v9015_v5  ;;  %v3544_v27 = vadd.f32 %v9117_v50, %v9027_v20  ;;  %v9251_v55 = vpop.f32.mrb[206].mxu0  ;;  %v9253_v18 = vpop.f32.mrb[191].mxu1 }
 0x389   : > { %v5016_v2 = vmul.f32 %v8987_v53, %v4336_v7  ;;  %v4338_v43 = vmax.f32 %v3542_v46, 0.0  ;;  %v3435_v35 = vadd.f32 %v9133_v4, %v8977_v60  ;;  %v9247_v39 = vadd.f32 %v5472_v41, %v4955_v23  ;;  %v9257_v29 = vpop.f32.mrb[207].mxu0 }
 0x38a   : > { %v5504_v40 = vadd.f32 %v5503_v58, %v4985_v56  ;;  %v4337_v45 = vmax.f32 %v3431_v1, 0.0  ;;  %v3548_v22 = vadd.f32 %v9138_v37, %v9004_v34  ;;  %v4339_v4 = vmax.f32 %v3544_v27, 0.0 }
 0x38b   : > { %v5536_v50 = vadd.f32 %v8888_v16, %v5016_v2  ;;  %v5018_v62 = vmul.f32 %v9008_v19, %v4338_v43  ;;  %v4368_v14 = vmax.f32 %v3435_v35, 0.0  ;;  %v3437_v7 = vadd.f32 %v9140_v42, %v9015_v5 }
 0x38c   : > { %v5505_v11 = vadd.f32 %v5504_v40, %v4986_v31  ;;  %v5017_v23 = vmul.f32 %v9019_v38, %v4337_v45  ;;  %v4370_v58 = vmax.f32 %v3548_v22, 0.0  ;;  %v5019_v37 = vmul.f32 %v9034_v17, %v4339_v4 }
 0x38d   : > { %v5048_v46 = vmul.f32 %v8987_v53, %v4368_v14  ;;  %v3550_v16 = vadd.f32 %v9147_v63, %v9027_v20  ;;  %v3439_v41 = vadd.f32 %v9149_v24, %v8977_v60  ;;  %v4369_v2 = vmax.f32 %v3437_v7, 0.0 }
 0x38e   : > { %v9268_v56 = vadd.f32 %v5505_v11, %v4987_v47  ;;  %v5537_v1 = vadd.f32 %v5536_v50, %v5017_v23  ;;  %v5050_v31 = vmul.f32 %v9008_v19, %v4370_v58  ;;  %v3552_v35 = vadd.f32 %v9155_v57, %v9004_v34 }
 0x38f   : > { %v5569_v43 = vadd.f32 %v8914_v51, %v5048_v46  ;;  %v4371_v27 = vmax.f32 %v3550_v16, 0.0  ;;  %v4400_v42 = vmax.f32 %v3439_v41, 0.0  ;;  %v5049_v45 = vmul.f32 %v9019_v38, %v4369_v2 }
 0x390   : > { %v5538_v40 = vadd.f32 %v5537_v1, %v5018_v62  ;;  %v3441_v63 = vadd.f32 %v9157_v49, %v9015_v5  ;;  %v3554_v24 = vadd.f32 %v9161_v13, %v9027_v20  ;;  %v4402_v50 = vmax.f32 %v3552_v35, 0.0 }
 0x391   : > { %v5051_v47 = vmul.f32 %v9034_v17, %v4371_v27  ;;  %v5080_v22 = vmul.f32 %v8987_v53, %v4400_v42  ;;  %v3445_v51 = vadd.f32 %v9180_v21, %v8977_v60  ;;  %v5570_v57 = vadd.f32 %v5569_v43, %v5049_v45  ;;  %v9289_v58 = vpop.f32.mrb[192].mxu1 }
 0x392   : > { %v9283_v4 = vadd.f32 %v5538_v40, %v5019_v37  ;;  %v4401_v62 = vmax.f32 %v3441_v63, 0.0  ;;  %v4403_v14 = vmax.f32 %v3554_v24, 0.0  ;;  %v5082_v49 = vmul.f32 %v9008_v19, %v4402_v50  ;;  %v9295_v16 = vpop.f32.mrb[193].mxu1 }
 0x393   : > { %v5602_v11 = vadd.f32 %v8935_v8, %v5080_v22  ;;  %v4432_v23 = vmax.f32 %v3445_v51, 0.0  ;;  %v3558_v13 = vadd.f32 %v9184_v59, %v9004_v34  ;;  %v5571_v7 = vadd.f32 %v5570_v57, %v5050_v31  ;;  %v9302_v2 = vpop.f32.mrb[194].mxu1 }
 0x394   : > { %v5081_v46 = vmul.f32 %v9019_v38, %v4401_v62  ;;  %v5083_v21 = vmul.f32 %v9034_v17, %v4403_v14  ;;  %v3447_v37 = vadd.f32 %v9186_v52, %v9015_v5  ;;  %v3560_v1 = vadd.f32 %v9191_v26, %v9027_v20  ;;  %v9308_v42 = vpop.f32.mrb[195].mxu1 }
 0x395   : > { %v5112_v8 = vmul.f32 %v8987_v53, %v4432_v23  ;;  %v4434_v41 = vmax.f32 %v3558_v13, 0.0  ;;  %v3449_v59 = vadd.f32 %v9193_v12, %v8977_v60  ;;  %v9304_v31 = vadd.f32 %v5571_v7, %v5051_v47 }
 0x396   : > { %v5603_v43 = vadd.f32 %v5602_v11, %v5081_v46  ;;  %v4433_v27 = vmax.f32 %v3447_v37, 0.0  ;;  %v3562_v52 = vadd.f32 %v9201_v15, %v9004_v34  ;;  %v4435_v45 = vmax.f32 %v3560_v1, 0.0 }
 0x397   : > { %v5635_v35 = vadd.f32 %v8960_v0, %v5112_v8  ;;  %v5114_v40 = vmul.f32 %v9008_v19, %v4434_v41  ;;  %v4464_v26 = vmax.f32 %v3449_v59, 0.0  ;;  %v3451_v47 = vadd.f32 %v9203_v54, %v9015_v5  ;;  %v9315_v22 = vpop.f32.mrb[208].mxu0 }
 0x398   : > { %v5604_v63 = vadd.f32 %v5603_v43, %v5082_v49  ;;  %v5113_v12 = vmul.f32 %v9019_v38, %v4433_v27  ;;  %v4466_v24 = vmax.f32 %v3562_v52, 0.0  ;;  %v5115_v50 = vmul.f32 %v9034_v17, %v4435_v45  ;;  %v9323_v57 = vpop.f32.mrb[209].mxu0 }
 0x399   : > { %v5144_v15 = vmul.f32 %v8987_v53, %v4464_v26  ;;  %v3564_v0 = vadd.f32 %v9208_v48, %v9027_v20  ;;  %v3455_v51 = vadd.f32 %v9228_v30, %v8977_v60  ;;  %v4465_v54 = vmax.f32 %v3451_v47, 0.0  ;;  %v9328_v49 = vpop.f32.mrb[210].mxu0  ;;  %v9335_v30 = vpop.f32.mrb[196].mxu1 }
 0x39a   : > { %v9325_v62 = vadd.f32 %v5604_v63, %v5083_v21  ;;  %v5636_v14 = vadd.f32 %v5635_v35, %v5113_v12  ;;  %v5146_v11 = vmul.f32 %v9008_v19, %v4466_v24  ;;  %v3568_v48 = vadd.f32 %v9234_v10, %v9004_v34  ;;  %v9333_v46 = vpop.f32.mrb[211].mxu0  ;;  %v9342_v1 = vpop.f32.mrb[197].mxu1 }
 0x39b   : > { %v5668_v23 = vadd.f32 %v8983_v9, %v5144_v15  ;;  %v4467_v13 = vmax.f32 %v3564_v0, 0.0  ;;  %v4496_v7 = vmax.f32 %v3455_v51, 0.0  ;;  %v5145_v21 = vmul.f32 %v9019_v38, %v4465_v54  ;;  %v9348_v27 = vpop.f32.mrb[198].mxu1 }
 0x39c   : > { %v5637_v37 = vadd.f32 %v5636_v14, %v5114_v40  ;;  %v3457_v8 = vadd.f32 %v9236_v32, %v9015_v5  ;;  %v3570_v41 = vadd.f32 %v9243_v44, %v9027_v20  ;;  %v4498_v10 = vmax.f32 %v3568_v48, 0.0  ;;  %v9355_v44 = vld [vmem:[%s9980_s4 + $0x18] sm:$0xff]  ;;  %v9357_v45 = vpop.f32.mrb[199].mxu1 }
 0x39d   : > { %v5147_v9 = vmul.f32 %v9034_v17, %v4467_v13  ;;  %v5176_v59 = vmul.f32 %v8987_v53, %v4496_v7  ;;  %v3459_v43 = vadd.f32 %v9245_v6, %v8977_v60  ;;  %v5669_v35 = vadd.f32 %v5668_v23, %v5145_v21  ;;  %v9366_v6 = vld [vmem:[%s9981_s5 + $0x18] sm:$0xff] }
 0x39e   : > { %v9350_v52 = vadd.f32 %v5637_v37, %v5115_v50  ;;  %v4497_v40 = vmax.f32 %v3457_v8, 0.0  ;;  %v4499_v32 = vmax.f32 %v3570_v41, 0.0  ;;  %v5178_v63 = vmul.f32 %v9008_v19, %v4498_v10  ;;  %v10371_v8 = vld [vmem:[#allocation15_spill] sm:$0xff]  ;;  %v10372_v10 = vld [vmem:[#allocation16_spill] sm:$0xff] }
 0x39f   : > { %v5701_v26 = vadd.f32 %v9021_v36, %v5176_v59  ;;  %v4528_v12 = vmax.f32 %v3459_v43, 0.0  ;;  %v3572_v60 = vadd.f32 %v9251_v55, %v9004_v34  ;;  %v5670_v24 = vadd.f32 %v5669_v35, %v5146_v11  ;;  %v3733_v36 = vpop.f32.mrb[212].mxu0  ;;  %v10370_v55 = vld [vmem:[#allocation14_spill] sm:$0xff] }
 0x3a0   : > { %v5177_v47 = vmul.f32 %v9019_v38, %v4497_v40  ;;  %v5179_v50 = vmul.f32 %v9034_v17, %v4499_v32  ;;  %v3461_v15 = vadd.f32 %v9253_v18, %v9015_v5  ;;  %v3574_v34 = vadd.f32 %v9257_v29, %v9027_v20  ;;  %v9379_v54 = vpop.f32.mrb[213].mxu0 }
 0x3a1   : > { %v5208_v0 = vmul.f32 %v8987_v53, %v4528_v12  ;;  %v4530_v51 = vmax.f32 %v3572_v60, 0.0  ;;  %v9377_v14 = vrot.slane %v9355_v44, %v10370_v55  ;;  %v9381_v11 = vadd.f32 %v5670_v24, %v5147_v9  ;;  %v9387_v18 = vpop.f32.mrb[214].mxu0 }
 0x3a2   : > { %v5702_v23 = vadd.f32 %v5701_v26, %v5177_v47  ;;  %v4529_v13 = vmax.f32 %v3461_v15, 0.0  ;;  %v9385_v5 = vrot.slane %v9366_v6, %v10370_v55  ;;  %v4531_v29 = vmax.f32 %v3574_v34, 0.0  ;;  %v9393_v48 = vpop.f32.mrb[215].mxu0  ;;  %v10373_v26 = vld [vmem:[#allocation17_spill] sm:$0xff]  ;;  %v10374_v55 = vld [vmem:[#allocation44_spill] sm:$0xff] }
 0x3a3   : > { %v5734_v53 = vadd.f32 %v9051_v33, %v5208_v0  ;;  %v5210_v20 = vmul.f32 %v9008_v19, %v4530_v51  ;;  %v3611_v7 = vadd.f32 %v9289_v58, %v9377_v14  ;;  %v9398_v41 = vrot.slane %v9355_v44, %v10371_v8  ;;  %v9404_v33 = vpop.f32.mrb[200].mxu1 }
 0x3a4   : > { %v5703_v37 = vadd.f32 %v5702_v23, %v5178_v63  ;;  %v5209_v21 = vmul.f32 %v9019_v38, %v4529_v13  ;;  %v9402_v9 = vrot.slane %v9366_v6, %v10371_v8  ;;  %v5211_v19 = vmul.f32 %v9034_v17, %v4531_v29  ;;  %v9415_v43 = vpop.f32.mrb[201].mxu1 }
 0x3a5   : > { %v4052_v59 = vmax.f32 %v3611_v7, 0.0  ;;  %v9409_v58 = vrot.slane %v9355_v44, %v10372_v10  ;;  %v9413_v38 = vrot.slane %v9366_v6, %v10372_v10  ;;  %v3724_v32 = vadd.f32 %v9315_v22, %v9398_v41  ;;  %v9425_v63 = vpop.f32.mrb[202].mxu1 }
 0x3a6   : > { %v9417_v35 = vadd.f32 %v5703_v37, %v5179_v50  ;;  %v5735_v40 = vadd.f32 %v5734_v53, %v5209_v21  ;;  %v9423_v17 = vrot.slane %v9355_v44, %v10373_v26  ;;  %v9432_v24 = vrot.slane %v9366_v6, %v10373_v26  ;;  %v9436_v50 = vpop.f32.mrb[203].mxu1 }
 0x3a7   : > { %v4732_v12 = vmul.f32 %v9385_v5, %v4052_v59  ;;  %v3613_v60 = vadd.f32 %v9295_v16, %v9409_v58  ;;  %v3615_v47 = vadd.f32 %v9302_v2, %v9377_v14  ;;  %v4054_v15 = vmax.f32 %v3724_v32, 0.0  ;;  %v3743_v34 = vpop.f32.mrb[216].mxu0 }
 0x3a8   : > { %v5736_v22 = vadd.f32 %v5735_v40, %v5210_v20  ;;  %v3726_v0 = vadd.f32 %v9323_v57, %v9423_v17  ;;  %v3728_v51 = vadd.f32 %v9328_v49, %v9398_v41  ;;  %v3617_v53 = vadd.f32 %v9308_v42, %v9409_v58  ;;  %v9445_v29 = vpop.f32.mrb[217].mxu0 }
 0x3a9   : > { %v5243_v16 = vadd.f32 %v10374_v55, %v4732_v12  ;;  %v4053_v23 = vmax.f32 %v3613_v60, 0.0  ;;  %v4084_v13 = vmax.f32 %v3615_v47, 0.0  ;;  %v4734_v20 = vmul.f32 %v9402_v9, %v4054_v15  ;;  %v9450_v57 = vpop.f32.mrb[218].mxu0  ;;  %v10375_v60 = vld [vmem:[#allocation45_spill] sm:$0xff] }
 0x3aa   : > { %v9447_v2 = vadd.f32 %v5736_v22, %v5211_v19  ;;  %v4055_v7 = vmax.f32 %v3726_v0, 0.0  ;;  %v4086_v37 = vmax.f32 %v3728_v51, 0.0  ;;  %v4085_v8 = vmax.f32 %v3617_v53, 0.0  ;;  %v9456_v10 = vpop.f32.mrb[219].mxu0  ;;  %v9463_v26 = vpop.f32.mrb[204].mxu1 }
 0x3ab   : > { %v4733_v49 = vmul.f32 %v9413_v38, %v4053_v23  ;;  %v4764_v21 = vmul.f32 %v9385_v5, %v4084_v13  ;;  %v3730_v59 = vadd.f32 %v9333_v46, %v9423_v17  ;;  %v3621_v40 = vadd.f32 %v9335_v30, %v9377_v14  ;;  %v9467_v46 = vpop.f32.mrb[205].mxu1 }
 0x3ac   : > { %v4735_v42 = vmul.f32 %v9432_v24, %v4055_v7  ;;  %v4766_v19 = vmul.f32 %v9402_v9, %v4086_v37  ;;  %v3734_v32 = vadd.f32 %v3733_v36, %v9398_v41  ;;  %v4765_v22 = vmul.f32 %v9413_v38, %v4085_v8  ;;  %v9473_v23 = vpop.f32.mrb[206].mxu1 }
 0x3ad   : > { %v5244_v12 = vadd.f32 %v5243_v16, %v4733_v49  ;;  %v5276_v47 = vadd.f32 %v10375_v60, %v4764_v21  ;;  %v4087_v15 = vmax.f32 %v3730_v59, 0.0  ;;  %v4116_v0 = vmax.f32 %v3621_v40, 0.0  ;;  %v9478_v7 = vpop.f32.mrb[207].mxu1 }
 0x3ae   : > { %v4118_v51 = vmax.f32 %v3734_v32, 0.0  ;;  %v3623_v55 = vadd.f32 %v9342_v1, %v9409_v58  ;;  %v3736_v30 = vadd.f32 %v9379_v54, %v9423_v17  ;;  %v3625_v53 = vadd.f32 %v9348_v27, %v9377_v14  ;;  %v10376_v27 = vld [vmem:[#allocation7_spill] sm:$0xff] }
 0x3af   : > { %v5245_v36 = vadd.f32 %v5244_v12, %v4734_v20  ;;  %v5277_v13 = vadd.f32 %v5276_v47, %v4765_v22  ;;  %v4767_v16 = vmul.f32 %v9432_v24, %v4087_v15  ;;  %v4796_v37 = vmul.f32 %v9385_v5, %v4116_v0  ;;  %v9482_v8 = vpop.f32.mrb[220].mxu0 }
 0x3b0   : > { %v4798_v49 = vmul.f32 %v9402_v9, %v4118_v51  ;;  %v4117_v21 = vmax.f32 %v3623_v55, 0.0  ;;  %v4119_v1 = vmax.f32 %v3736_v30, 0.0  ;;  %v4148_v20 = vmax.f32 %v3625_v53, 0.0  ;;  %v9488_v32 = vpop.f32.mrb[221].mxu0 }
 0x3b1   : > { %v9484_v54 = vadd.f32 %v5245_v36, %v4735_v42  ;;  %v5278_v59 = vadd.f32 %v5277_v13, %v4766_v19  ;;  %v3738_v40 = vadd.f32 %v9387_v18, %v9398_v41  ;;  %v5309_v12 = vadd.f32 %v10376_v27, %v4796_v37  ;;  %v9495_v15 = vpop.f32.mrb[222].mxu0 }
 0x3b2   : > { %v4797_v60 = vmul.f32 %v9413_v38, %v4117_v21  ;;  %v4799_v47 = vmul.f32 %v9432_v24, %v4119_v1  ;;  %v3627_v22 = vadd.f32 %v9357_v45, %v9409_v58  ;;  %v4828_v19 = vmul.f32 %v9385_v5, %v4148_v20  ;;  %v9502_v51 = vpop.f32.mrb[223].mxu0  ;;  %v9512_v20 = vpop.f32.mrb[208].mxu1 }
 0x3b3   : > { %v9497_v42 = vadd.f32 %v5278_v59, %v4767_v16  ;;  %v4150_v0 = vmax.f32 %v3738_v40, 0.0  ;;  %v3740_v18 = vadd.f32 %v9393_v48, %v9423_v17  ;;  %v3631_v36 = vadd.f32 %v9404_v33, %v9377_v14  ;;  %v9519_v27 = vpop.f32.mrb[209].mxu1 }
 0x3b4   : > { %v5310_v55 = vadd.f32 %v5309_v12, %v4797_v60  ;;  %v4149_v30 = vmax.f32 %v3627_v22, 0.0  ;;  %v3744_v13 = vadd.f32 %v3743_v34, %v9398_v41  ;;  %v5342_v45 = vadd.f32 %v9159_v61, %v4828_v19  ;;  %v9527_v19 = vpop.f32.mrb[210].mxu1 }
 0x3b5   : > { %v4830_v16 = vmul.f32 %v9402_v9, %v4150_v0  ;;  %v4151_v53 = vmax.f32 %v3740_v18, 0.0  ;;  %v3633_v37 = vadd.f32 %v9415_v43, %v9409_v58  ;;  %v4180_v1 = vmax.f32 %v3631_v36, 0.0 }
 0x3b6   : > { %v5311_v21 = vadd.f32 %v5310_v55, %v4798_v49  ;;  %v4829_v48 = vmul.f32 %v9413_v38, %v4149_v30  ;;  %v4182_v59 = vmax.f32 %v3744_v13, 0.0  ;;  %v3746_v34 = vadd.f32 %v9445_v29, %v9423_v17 }
 0x3b7   : > { %v4831_v40 = vmul.f32 %v9432_v24, %v4151_v53  ;;  %v4181_v33 = vmax.f32 %v3633_v37, 0.0  ;;  %v3635_v61 = vadd.f32 %v9425_v63, %v9377_v14  ;;  %v4860_v49 = vmul.f32 %v9385_v5, %v4180_v1  ;;  %v9525_v22 = vpop.f32.mrb[224].mxu0 }
 0x3b8   : > { %v9521_v12 = vadd.f32 %v5311_v21, %v4799_v47  ;;  %v5343_v43 = vadd.f32 %v5342_v45, %v4829_v48  ;;  %v4862_v60 = vmul.f32 %v9402_v9, %v4182_v59  ;;  %v4183_v18 = vmax.f32 %v3746_v34, 0.0  ;;  %v9532_v55 = vpop.f32.mrb[225].mxu0  ;;  %v9534_v47 = vpop.f32.mrb[211].mxu1 }
 0x3b9   : > { %v4861_v0 = vmul.f32 %v9413_v38, %v4181_v33  ;;  %v4212_v29 = vmax.f32 %v3635_v61, 0.0  ;;  %v3748_v63 = vadd.f32 %v9450_v57, %v9398_v41  ;;  %v5375_v36 = vadd.f32 %v9176_v3, %v4860_v49  ;;  %v9541_v53 = vpop.f32.mrb[226].mxu0 }
 0x3ba   : > { %v5344_v30 = vadd.f32 %v5343_v43, %v4830_v16  ;;  %v3637_v13 = vadd.f32 %v9436_v50, %v9409_v58  ;;  %v3750_v45 = vadd.f32 %v9456_v10, %v9423_v17  ;;  %v4863_v37 = vmul.f32 %v9432_v24, %v4183_v18  ;;  %v9547_v1 = vpop.f32.mrb[227].mxu0 }
 0x3bb   : > { %v4892_v21 = vmul.f32 %v9385_v5, %v4212_v29  ;;  %v4214_v57 = vmax.f32 %v3748_v63, 0.0  ;;  %v3641_v48 = vadd.f32 %v9463_v26, %v9377_v14  ;;  %v5376_v3 = vadd.f32 %v5375_v36, %v4861_v0  ;;  %v3660_v63 = vpop.f32.mrb[212].mxu1 }
 0x3bc   : > { %v9549_v16 = vadd.f32 %v5344_v30, %v4831_v40  ;;  %v4213_v59 = vmax.f32 %v3637_v13, 0.0  ;;  %v4215_v50 = vmax.f32 %v3750_v45, 0.0  ;;  %v3754_v61 = vadd.f32 %v9482_v8, %v9398_v41  ;;  %v9568_v45 = vpop.f32.mrb[213].mxu1 }
 0x3bd   : > { %v5408_v33 = vadd.f32 %v9205_v28, %v4892_v21  ;;  %v4894_v10 = vmul.f32 %v9402_v9, %v4214_v57  ;;  %v4244_v34 = vmax.f32 %v3641_v48, 0.0  ;;  %v5377_v43 = vadd.f32 %v5376_v3, %v4862_v60 }
 0x3be   : > { %v4893_v49 = vmul.f32 %v9413_v38, %v4213_v59  ;;  %v4895_v26 = vmul.f32 %v9432_v24, %v4215_v50  ;;  %v3643_v40 = vadd.f32 %v9467_v46, %v9409_v58  ;;  %v4246_v18 = vmax.f32 %v3754_v61, 0.0 }
 0x3bf   : > { %v4924_v0 = vmul.f32 %v9385_v5, %v4244_v34  ;;  %v3756_v28 = vadd.f32 %v9488_v32, %v9423_v17  ;;  %v3645_v29 = vadd.f32 %v9473_v23, %v9377_v14  ;;  %v9564_v30 = vadd.f32 %v5377_v43, %v4863_v37  ;;  %v3773_v13 = vpop.f32.mrb[228].mxu0  ;;  %v9574_v23 = vpop.f32.mrb[214].mxu1 }
 0x3c0   : > { %v5409_v8 = vadd.f32 %v5408_v33, %v4893_v49  ;;  %v4245_v60 = vmax.f32 %v3643_v40, 0.0  ;;  %v3758_v36 = vadd.f32 %v9495_v15, %v9398_v41  ;;  %v4926_v21 = vmul.f32 %v9402_v9, %v4246_v18  ;;  %v9572_v48 = vpop.f32.mrb[229].mxu0  ;;  %v9581_v33 = vpop.f32.mrb[215].mxu1 }
 0x3c1   : > { %v5441_v46 = vadd.f32 %v9222_v25, %v4924_v0  ;;  %v4247_v57 = vmax.f32 %v3756_v28, 0.0  ;;  %v4276_v32 = vmax.f32 %v3645_v29, 0.0  ;;  %v3647_v15 = vadd.f32 %v9478_v7, %v9409_v58  ;;  %v9579_v50 = vpop.f32.mrb[230].mxu0 }
 0x3c2   : > { %v5410_v37 = vadd.f32 %v5409_v8, %v4894_v10  ;;  %v4925_v3 = vmul.f32 %v9413_v38, %v4245_v60  ;;  %v4278_v59 = vmax.f32 %v3758_v36, 0.0  ;;  %v3760_v61 = vadd.f32 %v9502_v51, %v9423_v17  ;;  %v9589_v43 = vpop.f32.mrb[231].mxu0 }
 0x3c3   : > { %v4927_v25 = vmul.f32 %v9432_v24, %v4247_v57  ;;  %v4956_v34 = vmul.f32 %v9385_v5, %v4276_v32  ;;  %v3651_v10 = vadd.f32 %v9512_v20, %v9377_v14  ;;  %v4277_v0 = vmax.f32 %v3647_v15, 0.0 }
 0x3c4   : > { %v9591_v49 = vadd.f32 %v5410_v37, %v4895_v26  ;;  %v5442_v40 = vadd.f32 %v5441_v46, %v4925_v3  ;;  %v4958_v7 = vmul.f32 %v9402_v9, %v4278_v59  ;;  %v4279_v28 = vmax.f32 %v3760_v61, 0.0  ;;  %v3670_v3 = vpop.f32.mrb[216].mxu1 }
 0x3c5   : > { %v5474_v18 = vadd.f32 %v9247_v39, %v4956_v34  ;;  %v4308_v29 = vmax.f32 %v3651_v10, 0.0  ;;  %v3764_v8 = vadd.f32 %v9525_v22, %v9398_v41  ;;  %v4957_v51 = vmul.f32 %v9413_v38, %v4277_v0  ;;  %v9612_v61 = vpop.f32.mrb[217].mxu1 }
 0x3c6   : > { %v5443_v60 = vadd.f32 %v5442_v40, %v4926_v21  ;;  %v3653_v20 = vadd.f32 %v9519_v27, %v9409_v58  ;;  %v3766_v26 = vadd.f32 %v9532_v55, %v9423_v17  ;;  %v4959_v36 = vmul.f32 %v9432_v24, %v4279_v28 }
 0x3c7   : > { %v4988_v46 = vmul.f32 %v9385_v5, %v4308_v29  ;;  %v4310_v57 = vmax.f32 %v3764_v8, 0.0  ;;  %v3655_v39 = vadd.f32 %v9527_v19, %v9377_v14  ;;  %v5475_v22 = vadd.f32 %v5474_v18, %v4957_v51 }
 0x3c8   : > { %v9606_v32 = vadd.f32 %v5443_v60, %v4927_v25  ;;  %v4309_v21 = vmax.f32 %v3653_v20, 0.0  ;;  %v4311_v37 = vmax.f32 %v3766_v26, 0.0  ;;  %v3768_v55 = vadd.f32 %v9541_v53, %v9398_v41  ;;  %v3783_v34 = vpop.f32.mrb[232].mxu0 }
 0x3c9   : > { %v5507_v59 = vadd.f32 %v9268_v56, %v4988_v46  ;;  %v4990_v27 = vmul.f32 %v9402_v9, %v4310_v57  ;;  %v4340_v15 = vmax.f32 %v3655_v39, 0.0  ;;  %v5476_v10 = vadd.f32 %v5475_v22, %v4958_v7  ;;  %v9618_v0 = vpop.f32.mrb[233].mxu0  ;;  %v9620_v56 = vpop.f32.mrb[218].mxu1 }
 0x3ca   : > { %v4989_v19 = vmul.f32 %v9413_v38, %v4309_v21  ;;  %v4991_v25 = vmul.f32 %v9432_v24, %v4311_v37  ;;  %v3657_v40 = vadd.f32 %v9534_v47, %v9409_v58  ;;  %v4342_v28 = vmax.f32 %v3768_v55, 0.0  ;;  %v3787_v7 = vpop.f32.mrb[234].mxu0  ;;  %v9626_v8 = vpop.f32.mrb[219].mxu1 }
 0x3cb   : > { %v5020_v18 = vmul.f32 %v9385_v5, %v4340_v15  ;;  %v3770_v53 = vadd.f32 %v9547_v1, %v9423_v17  ;;  %v3661_v29 = vadd.f32 %v3660_v63, %v9377_v14  ;;  %v9628_v60 = vadd.f32 %v5476_v10, %v4959_v36  ;;  %v9631_v26 = vpop.f32.mrb[235].mxu0 }
 0x3cc   : > { %v5508_v51 = vadd.f32 %v5507_v59, %v4989_v19  ;;  %v4341_v20 = vmax.f32 %v3657_v40, 0.0  ;;  %v3774_v47 = vadd.f32 %v3773_v13, %v9398_v41  ;;  %v5022_v57 = vmul.f32 %v9402_v9, %v4342_v28 }
 0x3cd   : > { %v5540_v46 = vadd.f32 %v9283_v4, %v5020_v18  ;;  %v4343_v39 = vmax.f32 %v3770_v53, 0.0  ;;  %v4372_v22 = vmax.f32 %v3661_v29, 0.0  ;;  %v3663_v36 = vadd.f32 %v9568_v45, %v9409_v58 }
 0x3ce   : > { %v5509_v1 = vadd.f32 %v5508_v51, %v4990_v27  ;;  %v5021_v63 = vmul.f32 %v9413_v38, %v4341_v20  ;;  %v4374_v21 = vmax.f32 %v3774_v47, 0.0  ;;  %v3776_v13 = vadd.f32 %v9572_v48, %v9423_v17 }
 0x3cf   : > { %v5023_v37 = vmul.f32 %v9432_v24, %v4343_v39  ;;  %v5052_v59 = vmul.f32 %v9385_v5, %v4372_v22  ;;  %v3665_v4 = vadd.f32 %v9574_v23, %v9377_v14  ;;  %v4373_v10 = vmax.f32 %v3663_v36, 0.0 }
 0x3d0   : > { %v9644_v15 = vadd.f32 %v5509_v1, %v4991_v25  ;;  %v5541_v55 = vadd.f32 %v5540_v46, %v5021_v63  ;;  %v5054_v27 = vmul.f32 %v9402_v9, %v4374_v21  ;;  %v4375_v40 = vmax.f32 %v3776_v13, 0.0 }
 0x3d1   : > { %v5573_v19 = vadd.f32 %v9304_v31, %v5052_v59  ;;  %v4404_v45 = vmax.f32 %v3665_v4, 0.0  ;;  %v3778_v18 = vadd.f32 %v9579_v50, %v9398_v41  ;;  %v5053_v53 = vmul.f32 %v9413_v38, %v4373_v10  ;;  %v3680_v25 = vpop.f32.mrb[220].mxu1 }
 0x3d2   : > { %v5542_v28 = vadd.f32 %v5541_v55, %v5022_v57  ;;  %v3667_v48 = vadd.f32 %v9581_v33, %v9409_v58  ;;  %v3780_v23 = vadd.f32 %v9589_v43, %v9423_v17  ;;  %v5055_v29 = vmul.f32 %v9432_v24, %v4375_v40  ;;  %v3793_v47 = vpop.f32.mrb[236].mxu0  ;;  %v3682_v46 = vpop.f32.mrb[221].mxu1 }
 0x3d3   : > { %v5084_v51 = vmul.f32 %v9385_v5, %v4404_v45  ;;  %v4406_v31 = vmax.f32 %v3778_v18, 0.0  ;;  %v3671_v20 = vadd.f32 %v3670_v3, %v9377_v14  ;;  %v5574_v57 = vadd.f32 %v5573_v19, %v5053_v53  ;;  %v3795_v1 = vpop.f32.mrb[237].mxu0  ;;  %v3684_v33 = vpop.f32.mrb[222].mxu1 }
 0x3d4   : > { %v9658_v50 = vadd.f32 %v5542_v28, %v5023_v37  ;;  %v4405_v39 = vmax.f32 %v3667_v48, 0.0  ;;  %v4407_v22 = vmax.f32 %v3780_v23, 0.0  ;;  %v3784_v36 = vadd.f32 %v3783_v34, %v9398_v41  ;;  %v3797_v59 = vpop.f32.mrb[238].mxu0  ;;  %v3686_v13 = vpop.f32.mrb[223].mxu1 }
 0x3d5   : > { %v5606_v63 = vadd.f32 %v9325_v62, %v5084_v51  ;;  %v5086_v43 = vmul.f32 %v9402_v9, %v4406_v31  ;;  %v4436_v21 = vmax.f32 %v3671_v20, 0.0  ;;  %v5575_v4 = vadd.f32 %v5574_v57, %v5054_v27  ;;  %v3799_v10 = vpop.f32.mrb[239].mxu0 }
 0x3d6   : > { %v5085_v3 = vmul.f32 %v9413_v38, %v4405_v39  ;;  %v5087_v37 = vmul.f32 %v9432_v24, %v4407_v22  ;;  %v3673_v55 = vadd.f32 %v9612_v61, %v9409_v58  ;;  %v4438_v40 = vmax.f32 %v3784_v36, 0.0 }
 0x3d7   : > { %v5116_v19 = vmul.f32 %v9385_v5, %v4436_v21  ;;  %v3786_v62 = vadd.f32 %v9618_v0, %v9423_v17  ;;  %v3675_v34 = vadd.f32 %v9620_v56, %v9377_v14  ;;  %v9672_v45 = vadd.f32 %v5575_v4, %v5055_v29 }
 0x3d8   : > { %v5607_v27 = vadd.f32 %v5606_v63, %v5085_v3  ;;  %v4437_v18 = vmax.f32 %v3673_v55, 0.0  ;;  %v3788_v28 = vadd.f32 %v3787_v7, %v9398_v41  ;;  %v5118_v61 = vmul.f32 %v9402_v9, %v4438_v40 }
 0x3d9   : > { %v5639_v53 = vadd.f32 %v9350_v52, %v5116_v19  ;;  %v4439_v48 = vmax.f32 %v3786_v62, 0.0  ;;  %v4468_v23 = vmax.f32 %v3675_v34, 0.0  ;;  %v3677_v0 = vadd.f32 %v9626_v8, %v9409_v58 }
 0x3da   : > { %v5608_v51 = vadd.f32 %v5607_v27, %v5086_v43  ;;  %v5117_v31 = vmul.f32 %v9413_v38, %v4437_v18  ;;  %v4470_v20 = vmax.f32 %v3788_v28, 0.0  ;;  %v3790_v7 = vadd.f32 %v9631_v26, %v9423_v17 }
 0x3db   : > { %v5119_v56 = vmul.f32 %v9432_v24, %v4439_v48  ;;  %v5148_v29 = vmul.f32 %v9385_v5, %v4468_v23  ;;  %v3681_v52 = vadd.f32 %v3680_v25, %v9377_v14  ;;  %v4469_v63 = vmax.f32 %v3677_v0, 0.0 }
 0x3dc   : > { %v9685_v57 = vadd.f32 %v5608_v51, %v5087_v37  ;;  %v5640_v39 = vadd.f32 %v5639_v53, %v5117_v31  ;;  %v5150_v22 = vmul.f32 %v9402_v9, %v4470_v20  ;;  %v4471_v21 = vmax.f32 %v3790_v7, 0.0 }
 0x3dd   : > { %v5672_v43 = vadd.f32 %v9381_v11, %v5148_v29  ;;  %v4500_v36 = vmax.f32 %v3681_v52, 0.0  ;;  %v3794_v8 = vadd.f32 %v3793_v47, %v9398_v41  ;;  %v3836_v4 = vpop.f32.mrb[224].mxu1  ;;  %v5149_v55 = vmul.f32 %v9413_v38, %v4469_v63 }
 0x3de   : > { %v5641_v3 = vadd.f32 %v5640_v39, %v5118_v61  ;;  %v3683_v26 = vadd.f32 %v3682_v46, %v9409_v58  ;;  %v3796_v25 = vadd.f32 %v3795_v1, %v9423_v17  ;;  %v3838_v37 = vpop.f32.mrb[225].mxu1  ;;  %v5151_v19 = vmul.f32 %v9432_v24, %v4471_v21  ;;  %v10378_v21 = vld [vmem:[#allocation21_spill] sm:$0xff] }
 0x3df   : > { %v5180_v40 = vmul.f32 %v9385_v5, %v4500_v36  ;;  %v4502_v62 = vmax.f32 %v3794_v8, 0.0  ;;  %v3685_v11 = vadd.f32 %v3684_v33, %v9377_v14  ;;  %v3840_v34 = vpop.f32.mrb[226].mxu1  ;;  %v5673_v47 = vadd.f32 %v5672_v43, %v5149_v55 }
 0x3e0   : > { %v9696_v27 = vadd.f32 %v5641_v3, %v5119_v56  ;;  %v4501_v18 = vmax.f32 %v3683_v26, 0.0  ;;  %v4503_v28 = vmax.f32 %v3796_v25, 0.0  ;;  %v3842_v53 = vpop.f32.mrb[227].mxu1  ;;  %v3798_v48 = vadd.f32 %v3797_v59, %v9398_v41  ;;  %v10377_v56 = vld [vmem:[#allocation20_spill] sm:$0xff]  ;;  %v10379_v26 = vld [vmem:[#allocation22_spill] sm:$0xff] }
 0x3e1   : > { %v5705_v61 = vadd.f32 %v9417_v35, %v5180_v40  ;;  %v5182_v46 = vmul.f32 %v9402_v9, %v4502_v62  ;;  %v4532_v1 = vmax.f32 %v3685_v11, 0.0  ;;  %v5674_v23 = vadd.f32 %v5673_v47, %v5150_v22  ;;  %v10380_v11 = vld [vmem:[#allocation23_spill] sm:$0xff] }
 0x3e2   : > { %v5181_v51 = vmul.f32 %v9413_v38, %v4501_v18  ;;  %v5183_v31 = vmul.f32 %v9432_v24, %v4503_v28  ;;  %v3687_v14 = vadd.f32 %v3686_v13, %v9409_v58  ;;  %v4534_v20 = vmax.f32 %v3798_v48, 0.0 }
 0x3e3   : > { %v5212_v33 = vmul.f32 %v9385_v5, %v4532_v1  ;;  %v3800_v0 = vadd.f32 %v3799_v10, %v9423_v17  ;;  %v9708_v35 = vrot.slane %v9355_v44, %v10377_v56  ;;  %v3949_v29 = vpop.f32.mrb[240].mxu0  ;;  %v9710_v7 = vadd.f32 %v5674_v23, %v5151_v19 }
 0x3e4   : > { %v5706_v41 = vadd.f32 %v5705_v61, %v5181_v51  ;;  %v4533_v59 = vmax.f32 %v3687_v14, 0.0  ;;  %v9714_v52 = vrot.slane %v9366_v6, %v10377_v56  ;;  %v3951_v39 = vpop.f32.mrb[241].mxu0  ;;  %v5214_v5 = vmul.f32 %v9402_v9, %v4534_v20 }
 0x3e5   : > { %v5738_v58 = vadd.f32 %v9447_v2, %v5212_v33  ;;  %v4535_v13 = vmax.f32 %v3800_v0, 0.0  ;;  %v3837_v17 = vadd.f32 %v3836_v4, %v9708_v35  ;;  %v3953_v10 = vpop.f32.mrb[242].mxu0  ;;  %v3846_v22 = vpop.f32.mrb[228].mxu1  ;;  %v9722_v36 = vrot.slane %v9355_v44, %v10378_v21 }
 0x3e6   : > { %v5707_v63 = vadd.f32 %v5706_v41, %v5182_v46  ;;  %v5213_v43 = vmul.f32 %v9413_v38, %v4533_v59  ;;  %v9726_v8 = vrot.slane %v9366_v6, %v10378_v21  ;;  %v3955_v3 = vpop.f32.mrb[243].mxu0  ;;  %v3848_v2 = vpop.f32.mrb[229].mxu1  ;;  %v9731_v4 = vrot.slane %v9355_v44, %v10379_v26 }
 0x3e7   : > { %v5215_v9 = vmul.f32 %v9432_v24, %v4535_v13  ;;  %v4056_v55 = vmax.f32 %v3837_v17, 0.0  ;;  %v9735_v38 = vrot.slane %v9366_v6, %v10379_v26  ;;  %v3850_v25 = vpop.f32.mrb[230].mxu1  ;;  %v3950_v62 = vadd.f32 %v3949_v29, %v9722_v36 }
 0x3e8   : > { %v9737_v19 = vadd.f32 %v5707_v63, %v5183_v31  ;;  %v5739_v40 = vadd.f32 %v5738_v58, %v5213_v43  ;;  %v9742_v47 = vrot.slane %v9355_v44, %v10380_v11  ;;  %v3852_v24 = vpop.f32.mrb[231].mxu1  ;;  %v3839_v28 = vadd.f32 %v3838_v37, %v9731_v4 }
 0x3e9   : > { %v4736_v18 = vmul.f32 %v9714_v52, %v4056_v55  ;;  %v3841_v61 = vadd.f32 %v3840_v34, %v9708_v35  ;;  %v3954_v46 = vadd.f32 %v3953_v10, %v9722_v36  ;;  %v4058_v48 = vmax.f32 %v3950_v62, 0.0 }
 0x3ea   : > { %v5740_v1 = vadd.f32 %v5739_v40, %v5214_v5  ;;  %v3952_v23 = vadd.f32 %v3951_v39, %v9742_v47  ;;  %v3843_v51 = vadd.f32 %v3842_v53, %v9731_v4  ;;  %v4057_v14 = vmax.f32 %v3839_v28, 0.0 }
 0x3eb   : > { %v5247_v31 = vadd.f32 %v9484_v54, %v4736_v18  ;;  %v4088_v44 = vmax.f32 %v3841_v61, 0.0  ;;  %v4090_v33 = vmax.f32 %v3954_v46, 0.0  ;;  %v3959_v20 = vpop.f32.mrb[244].mxu0  ;;  %v4738_v37 = vmul.f32 %v9726_v8, %v4058_v48 }
 0x3ec   : > { %v9751_v0 = vadd.f32 %v5740_v1, %v5215_v9  ;;  %v4059_v56 = vmax.f32 %v3952_v23, 0.0  ;;  %v4089_v34 = vmax.f32 %v3843_v51, 0.0  ;;  %v3961_v29 = vpop.f32.mrb[245].mxu0  ;;  %v4737_v41 = vmul.f32 %v9735_v38, %v4057_v14 }
 0x3ed   : > { %v4768_v59 = vmul.f32 %v9714_v52, %v4088_v44  ;;  %v9757_v39 = vmul.f32 %v9726_v8, %v4090_v33  ;;  %v3956_v54 = vadd.f32 %v3955_v3, %v9742_v47  ;;  %v3963_v53 = vpop.f32.mrb[246].mxu0  ;;  %v3856_v58 = vpop.f32.mrb[232].mxu1  ;;  %v9763_v13 = vrot.slane %v9366_v6, %v10380_v11 }
 0x3ee   : > { %v4769_v5 = vmul.f32 %v9735_v38, %v4089_v34  ;;  %v3847_v17 = vadd.f32 %v3846_v22, %v9708_v35  ;;  %v3960_v10 = vadd.f32 %v3959_v20, %v9722_v36  ;;  %v3965_v63 = vpop.f32.mrb[247].mxu0  ;;  %v3858_v43 = vpop.f32.mrb[233].mxu1  ;;  %v3849_v55 = vadd.f32 %v3848_v2, %v9731_v4 }
 0x3ef   : > { %v5280_v21 = vadd.f32 %v9497_v42, %v4768_v59  ;;  %v4091_v9 = vmax.f32 %v3956_v54, 0.0  ;;  %v9770_v3 = vadd.f32 %v3961_v29, %v9742_v47  ;;  %v3860_v26 = vpop.f32.mrb[234].mxu1  ;;  %v3851_v6 = vadd.f32 %v3850_v25, %v9708_v35 }
 0x3f0   : > { %v4120_v40 = vmax.f32 %v3847_v17, 0.0  ;;  %v4122_v62 = vmax.f32 %v3960_v10, 0.0  ;;  %v3964_v11 = vadd.f32 %v3963_v53, %v9722_v36  ;;  %v3862_v22 = vpop.f32.mrb[235].mxu1  ;;  %v4121_v61 = vmax.f32 %v3849_v55, 0.0 }
 0x3f1   : > { %v5281_v18 = vadd.f32 %v5280_v21, %v4769_v5  ;;  %v4771_v28 = vmul.f32 %v9763_v13, %v4091_v9  ;;  %v4123_v42 = vmax.f32 %v9770_v3, 0.0  ;;  %v4152_v1 = vmax.f32 %v3851_v6, 0.0 }
 0x3f2   : > { %v4800_v46 = vmul.f32 %v9714_v52, %v4120_v40  ;;  %v4802_v2 = vmul.f32 %v9726_v8, %v4122_v62  ;;  %v4154_v48 = vmax.f32 %v3964_v11, 0.0  ;;  %v4801_v23 = vmul.f32 %v9735_v38, %v4121_v61 }
 0x3f3   : > { %v3853_v51 = vadd.f32 %v3852_v24, %v9731_v4  ;;  %v3966_v25 = vadd.f32 %v3965_v63, %v9742_v47  ;;  %v4739_v14 = vmul.f32 %v9763_v13, %v4059_v56  ;;  %v3969_v44 = vpop.f32.mrb[248].mxu0  ;;  %v4832_v20 = vmul.f32 %v9714_v52, %v4152_v1 }
 0x3f4   : > { %v5313_v33 = vadd.f32 %v9521_v12, %v4800_v46  ;;  %v9785_v34 = vmul.f32 %v9726_v8, %v4154_v48  ;;  %v5248_v29 = vadd.f32 %v5247_v31, %v4737_v41  ;;  %v3971_v59 = vpop.f32.mrb[249].mxu0  ;;  %v3857_v5 = vadd.f32 %v3856_v58, %v9708_v35 }
 0x3f5   : > { %v4153_v54 = vmax.f32 %v3853_v51, 0.0  ;;  %v4155_v53 = vmax.f32 %v3966_v25, 0.0  ;;  %v3970_v24 = vadd.f32 %v3969_v44, %v9722_v36  ;;  %v3973_v17 = vpop.f32.mrb[250].mxu0  ;;  %v3866_v10 = vpop.f32.mrb[236].mxu1  ;;  %v5346_v56 = vadd.f32 %v9549_v16, %v4832_v20 }
 0x3f6   : > { %v5249_v63 = vadd.f32 %v5248_v29, %v4738_v37  ;;  %v3859_v12 = vadd.f32 %v3858_v43, %v9731_v4  ;;  %v3972_v21 = vadd.f32 %v3971_v59, %v9742_v47  ;;  %v3975_v9 = vpop.f32.mrb[251].mxu0  ;;  %v3868_v55 = vpop.f32.mrb[237].mxu1  ;;  %v4184_v3 = vmax.f32 %v3857_v5, 0.0 }
 0x3f7   : > { %v4833_v31 = vmul.f32 %v9735_v38, %v4153_v54  ;;  %v9794_v41 = vmul.f32 %v9763_v13, %v4155_v53  ;;  %v4186_v58 = vmax.f32 %v3970_v24, 0.0  ;;  %v3870_v40 = vpop.f32.mrb[238].mxu1  ;;  %v3861_v16 = vadd.f32 %v3860_v26, %v9708_v35 }
 0x3f8   : > { %v5250_v62 = vadd.f32 %v5249_v63, %v4739_v14  ;;  %v4185_v6 = vmax.f32 %v3859_v12, 0.0  ;;  %v4187_v11 = vmax.f32 %v3972_v21, 0.0  ;;  %v3872_v37 = vpop.f32.mrb[239].mxu1  ;;  %v4864_v43 = vmul.f32 %v9714_v52, %v4184_v3 }
 0x3f9   : > { %v5347_v61 = vadd.f32 %v5346_v56, %v4833_v31  ;;  %v4866_v46 = vmul.f32 %v9726_v8, %v4186_v58  ;;  %v3974_v1 = vadd.f32 %v3973_v17, %v9722_v36  ;;  %v4216_v25 = vmax.f32 %v3861_v16, 0.0 }
 0x3fa   : > { %5251 = vadd.xlane.f32.xlu0 %v5250_v62  ;;  %v4865_v48 = vmul.f32 %v9735_v38, %v4185_v6  ;;  %v9802_v51 = vmul.f32 %v9763_v13, %v4187_v11  ;;  %v3863_v14 = vadd.f32 %v3862_v22, %v9731_v4  ;;  %v5379_v44 = vadd.f32 %v9564_v30, %v4864_v43 }
 0x3fb   : > { %v4218_v26 = vmax.f32 %v3974_v1, 0.0  ;;  %v3976_v20 = vadd.f32 %v3975_v9, %v9742_v47  ;;  %v5282_v29 = vadd.f32 %v5281_v18, %v9757_v39  ;;  %v3979_v59 = vpop.f32.mrb[252].mxu0  ;;  %v4896_v54 = vmul.f32 %v9714_v52, %v4216_v25 }
 0x3fc   : > { %v4217_v53 = vmax.f32 %v3863_v14, 0.0  ;;  %v4803_v5 = vmul.f32 %v9763_v13, %v4123_v42  ;;  %v5314_v24 = vadd.f32 %v5313_v33, %v4801_v23  ;;  %v3981_v17 = vpop.f32.mrb[253].mxu0  ;;  %v5380_v56 = vadd.f32 %v5379_v44, %v4865_v48 }
 0x3fd   : > { %v4898_v63 = vmul.f32 %v9726_v8, %v4218_v26  ;;  %v4219_v12 = vmax.f32 %v3976_v20, 0.0  ;;  %v5283_v22 = vadd.f32 %v5282_v29, %v4771_v28  ;;  %v3983_v21 = vpop.f32.mrb[254].mxu0  ;;  %v3876_v30 = vpop.f32.mrb[240].mxu1  ;;  %v5412_v31 = vadd.f32 %v9591_v49, %v4896_v54 }
 0x3fe   : > { %v4897_v9 = vmul.f32 %v9735_v38, %v4217_v53  ;;  %v5315_v39 = vadd.f32 %v5314_v24, %v4802_v2  ;;  %v3867_v18 = vadd.f32 %v3866_v10, %v9708_v35  ;;  %v3985_v3 = vpop.f32.mrb[255].mxu0  ;;  %v3878_v58 = vpop.f32.mrb[241].mxu1  ;;  %v3980_v23 = vadd.f32 %v3979_v59, %v9722_v36 }
 0x3ff   : > { %v4899_v42 = vmul.f32 %v9763_v13, %v4219_v12  ;;  %5284 = vadd.xlane.f32.xlu0 %v5283_v22  ;;  %v3869_v33 = vadd.f32 %v3868_v55, %v9731_v4  ;;  %v3982_v28 = vadd.f32 %v3981_v17, %v9742_v47  ;;  %v3880_v62 = vpop.f32.mrb[242].mxu1  ;;  %v3871_v16 = vadd.f32 %v3870_v40, %v9708_v35 }
 0x400   : > { %v5413_v6 = vadd.f32 %v5412_v31, %v4897_v9  ;;  %v5316_v11 = vadd.f32 %v5315_v39, %v4803_v5  ;;  %v4248_v49 = vmax.f32 %v3867_v18, 0.0  ;;  %v3882_v2 = vpop.f32.mrb[243].mxu1  ;;  %v4250_v43 = vmax.f32 %v3980_v23, 0.0 }
 0x401   : > { %v4249_v10 = vmax.f32 %v3869_v33, 0.0  ;;  %v4251_v1 = vmax.f32 %v3982_v28, 0.0  ;;  %v3984_v48 = vadd.f32 %v3983_v21, %v9722_v36  ;;  %v4280_v14 = vmax.f32 %v3871_v16, 0.0 }
 0x402   : > { %5317 = vadd.xlane.f32.xlu1 %v5316_v11  ;;  %v4928_v25 = vmul.f32 %v9714_v52, %v4248_v49  ;;  %v3873_v55 = vadd.f32 %v3872_v37, %v9731_v4  ;;  %v3986_v44 = vadd.f32 %v3985_v3, %v9742_v47  ;;  %v4930_v26 = vmul.f32 %v9726_v8, %v4250_v43 }
 0x403   : > { %v4929_v20 = vmul.f32 %v9735_v38, %v4249_v10  ;;  %v9826_v40 = vmul.f32 %v9763_v13, %v4251_v1  ;;  %v4282_v29 = vmax.f32 %v3984_v48, 0.0  ;;  %v3989_v59 = vpop.f32.mrb[0].mxu0  ;;  %v4960_v53 = vmul.f32 %v9714_v52, %v4280_v14 }
 0x404   : > { %v5445_v54 = vadd.f32 %v9606_v32, %v4928_v25  ;;  %v4281_v5 = vmax.f32 %v3873_v55, 0.0  ;;  %v4283_v24 = vmax.f32 %v3986_v44, 0.0  ;;  %v3991_v17 = vpop.f32.mrb[1].mxu0  ;;  %v5348_v12 = vadd.f32 %v5347_v61, %v9785_v34 }
 0x405   : > { %v9831_v37 = vmul.f32 %v9726_v8, %v4282_v29  ;;  %v5381_v22 = vadd.f32 %v5380_v56, %v4866_v46  ;;  %v3877_v21 = vadd.f32 %v3876_v30, %v9708_v35  ;;  %v3993_v31 = vpop.f32.mrb[2].mxu0  ;;  %v3886_v9 = vpop.f32.mrb[244].mxu1  ;;  %v5478_v18 = vadd.f32 %v9628_v60, %v4960_v53 }
 0x406   : > { %v5446_v39 = vadd.f32 %v5445_v54, %v4929_v20  ;;  %v4961_v32 = vmul.f32 %v9735_v38, %v4281_v5  ;;  %v9838_v3 = vmul.f32 %v9763_v13, %v4283_v24  ;;  %v3995_v23 = vpop.f32.mrb[3].mxu0  ;;  %v3888_v33 = vpop.f32.mrb[245].mxu1  ;;  %v5349_v28 = vadd.f32 %v5348_v12, %v9794_v41 }
 0x407   : > { %v5382_v11 = vadd.f32 %v5381_v22, %v9802_v51  ;;  %v4312_v34 = vmax.f32 %v3877_v21, 0.0  ;;  %v3990_v61 = vadd.f32 %v3989_v59, %v9722_v36  ;;  %v3890_v46 = vpop.f32.mrb[246].mxu1  ;;  %v3879_v30 = vadd.f32 %v3878_v58, %v9731_v4 }
 0x408   : > { %v5479_v56 = vadd.f32 %v5478_v18, %v4961_v32  ;;  %v3992_v60 = vadd.f32 %v3991_v17, %v9742_v47  ;;  %v5414_v49 = vadd.f32 %v5413_v6, %v4898_v63  ;;  %v3892_v16 = vpop.f32.mrb[247].mxu1  ;;  %5350 = vadd.xlane.f32.xlu1 %v5349_v28  ;;  %v3881_v41 = vadd.f32 %v3880_v62, %v9708_v35 }
 0x409   : > { %5383 = vadd.xlane.f32.xlu0 %v5382_v11  ;;  %v4992_v43 = vmul.f32 %v9714_v52, %v4312_v34  ;;  %v4314_v10 = vmax.f32 %v3990_v61, 0.0  ;;  %v3994_v51 = vadd.f32 %v3993_v31, %v9722_v36  ;;  %v4313_v1 = vmax.f32 %v3879_v30, 0.0 }
 0x40a   : > { %v4315_v48 = vmax.f32 %v3992_v60, 0.0  ;;  %v5415_v25 = vadd.f32 %v5414_v49, %v4899_v42  ;;  %v3883_v14 = vadd.f32 %v3882_v2, %v9731_v4  ;;  %v4344_v63 = vmax.f32 %v3881_v41, 0.0 }
 0x40b   : > { %v5511_v58 = vadd.f32 %v9644_v15, %v4992_v43  ;;  %v4994_v55 = vmul.f32 %v9726_v8, %v4314_v10  ;;  %v4346_v6 = vmax.f32 %v3994_v51, 0.0  ;;  %v3999_v44 = vpop.f32.mrb[4].mxu0  ;;  %v4993_v20 = vmul.f32 %v9735_v38, %v4313_v1 }
 0x40c   : > { %v4995_v29 = vmul.f32 %v9763_v13, %v4315_v48  ;;  %v4345_v59 = vmax.f32 %v3883_v14, 0.0  ;;  %v3996_v62 = vadd.f32 %v3995_v23, %v9742_v47  ;;  %v4001_v54 = vpop.f32.mrb[5].mxu0  ;;  %5416 = vadd.xlane.f32.xlu1 %v5415_v25  ;;  %v5024_v42 = vmul.f32 %v9714_v52, %v4344_v63 }
 0x40d   : > { %v5026_v2 = vmul.f32 %v9726_v8, %v4346_v6  ;;  %v5447_v53 = vadd.f32 %v5446_v39, %v4930_v26  ;;  %v3887_v15 = vadd.f32 %v3886_v9, %v9708_v35  ;;  %v4003_v5 = vpop.f32.mrb[6].mxu0  ;;  %v3896_v24 = vpop.f32.mrb[248].mxu1  ;;  %v5512_v17 = vadd.f32 %v5511_v58, %v4993_v20 }
 0x40e   : > { %v5025_v12 = vmul.f32 %v9735_v38, %v4345_v59  ;;  %v4347_v22 = vmax.f32 %v3996_v62, 0.0  ;;  %v4000_v21 = vadd.f32 %v3999_v44, %v9722_v36  ;;  %v4005_v31 = vpop.f32.mrb[7].mxu0  ;;  %v3898_v18 = vpop.f32.mrb[249].mxu1  ;;  %v5544_v32 = vadd.f32 %v9658_v50, %v5024_v42 }
 0x40f   : > { %v5448_v23 = vadd.f32 %v5447_v53, %v9826_v40  ;;  %v4376_v28 = vmax.f32 %v3887_v15, 0.0  ;;  %v3889_v11 = vadd.f32 %v3888_v33, %v9731_v4  ;;  %v3900_v26 = vpop.f32.mrb[250].mxu1  ;;  %v4002_v34 = vadd.f32 %v4001_v54, %v9742_v47 }
 0x410   : > { %v5027_v9 = vmul.f32 %v9763_v13, %v4347_v22  ;;  %v4378_v39 = vmax.f32 %v4000_v21, 0.0  ;;  %v5480_v61 = vadd.f32 %v5479_v56, %v9831_v37  ;;  %v3902_v30 = vpop.f32.mrb[251].mxu1  ;;  %v5545_v60 = vadd.f32 %v5544_v32, %v5025_v12 }
 0x411   : > { %5449 = vadd.xlane.f32.xlu0 %v5448_v23  ;;  %v5056_v49 = vmul.f32 %v9714_v52, %v4376_v28  ;;  %v4377_v43 = vmax.f32 %v3889_v11, 0.0  ;;  %v3891_v50 = vadd.f32 %v3890_v46, %v9708_v35  ;;  %v4379_v10 = vmax.f32 %v4002_v34, 0.0 }
 0x412   : > { %v5058_v40 = vmul.f32 %v9726_v8, %v4378_v39  ;;  %v5481_v33 = vadd.f32 %v5480_v61, %v9838_v3  ;;  %v4004_v41 = vadd.f32 %v4003_v5, %v9722_v36  ;;  %v3893_v56 = vadd.f32 %v3892_v16, %v9731_v4 }
 0x413   : > { %v5577_v51 = vadd.f32 %v9672_v45, %v5056_v49  ;;  %v5057_v1 = vmul.f32 %v9735_v38, %v4377_v43  ;;  %v4408_v37 = vmax.f32 %v3891_v50, 0.0  ;;  %v5059_v48 = vmul.f32 %v9763_v13, %v4379_v10 }
 0x414   : > { %5482 = vadd.xlane.f32.xlu1 %v5481_v33  ;;  %v4410_v25 = vmax.f32 %v4004_v41, 0.0  ;;  %v4006_v46 = vadd.f32 %v4005_v31, %v9742_v47  ;;  %v5513_v14 = vadd.f32 %v5512_v17, %v4994_v55  ;;  %v4409_v3 = vmax.f32 %v3893_v56, 0.0 }
 0x415   : > { %v5578_v58 = vadd.f32 %v5577_v51, %v5057_v1  ;;  %v5088_v63 = vmul.f32 %v9714_v52, %v4408_v37  ;;  %v3897_v6 = vadd.f32 %v3896_v24, %v9708_v35  ;;  %v3906_v44 = vpop.f32.mrb[252].mxu1  ;;  %v3899_v16 = vadd.f32 %v3898_v18, %v9731_v4 }
 0x416   : > { %v5090_v45 = vmul.f32 %v9726_v8, %v4410_v25  ;;  %v4411_v20 = vmax.f32 %v4006_v46, 0.0  ;;  %v5514_v59 = vadd.f32 %v5513_v14, %v4995_v29  ;;  %v3908_v62 = vpop.f32.mrb[253].mxu1  ;;  %v5089_v42 = vmul.f32 %v9735_v38, %v4409_v3 }
 0x417   : > { %v5610_v54 = vadd.f32 %v9685_v57, %v5088_v63  ;;  %v4440_v53 = vmax.f32 %v3897_v6, 0.0  ;;  %v5546_v55 = vadd.f32 %v5545_v60, %v5026_v2  ;;  %v3910_v15 = vpop.f32.mrb[254].mxu1  ;;  %v4441_v17 = vmax.f32 %v3899_v16, 0.0 }
 0x418   : > { %v5091_v5 = vmul.f32 %v9763_v13, %v4411_v20  ;;  %5515 = vadd.xlane.f32.xlu0 %v5514_v59  ;;  %v3901_v24 = vadd.f32 %v3900_v26, %v9708_v35  ;;  %v3903_v12 = vadd.f32 %v3902_v30, %v9731_v4  ;;  %v3912_v22 = vpop.f32.mrb[255].mxu1  ;;  %v5579_v18 = vadd.f32 %v5578_v58, %v5058_v40 }
 0x419   : > { %v5611_v29 = vadd.f32 %v5610_v54, %v5089_v42  ;;  %v5120_v21 = vmul.f32 %v9714_v52, %v4440_v53  ;;  %v5547_v31 = vadd.f32 %v5546_v55, %v5027_v9  ;;  %v5121_v57 = vmul.f32 %v9735_v38, %v4441_v17 }
 0x41a   : > { %v4472_v32 = vmax.f32 %v3901_v24, 0.0  ;;  %v4473_v23 = vmax.f32 %v3903_v12, 0.0  ;;  %v3907_v2 = vadd.f32 %v3906_v44, %v9708_v35  ;;  %v5580_v11 = vadd.f32 %v5579_v18, %v5059_v48 }
 0x41b   : > { %v5643_v28 = vadd.f32 %v9696_v27, %v5120_v21  ;;  %5548 = vadd.xlane.f32.xlu1 %v5547_v31  ;;  %v3909_v26 = vadd.f32 %v3908_v62, %v9731_v4  ;;  %v5612_v39 = vadd.f32 %v5611_v29, %v5090_v45  ;;  %v3911_v9 = vadd.f32 %v3910_v15, %v9708_v35 }
 0x41c   : > { %v5152_v34 = vmul.f32 %v9714_v52, %v4472_v32  ;;  %v5153_v61 = vmul.f32 %v9735_v38, %v4473_v23  ;;  %v4504_v30 = vmax.f32 %v3907_v2, 0.0  ;;  %5581 = vadd.xlane.f32.xlu0 %v5580_v11  ;;  %v3913_v50 = vadd.f32 %v3912_v22, %v9731_v4 }
 0x41d   : > { %v5644_v60 = vadd.f32 %v5643_v28, %v5121_v57  ;;  %v4505_v49 = vmax.f32 %v3909_v26, 0.0  ;;  %v5613_v43 = vadd.f32 %v5612_v39, %v5091_v5  ;;  %v4009_v40 = vpop.f32.mrb[0].mxu1  ;;  %v4536_v33 = vmax.f32 %v3911_v9, 0.0  ;;  %v9916_v39 = vld [vmem:[#allocation2] ss:$0 sm:$0xff] }
 0x41e   : > { %v5676_v27 = vadd.f32 %v9710_v7, %v5152_v34  ;;  %v5184_v10 = vmul.f32 %v9714_v52, %v4504_v30  ;;  %v4010_v41 = vadd.f32 %v4009_v40, %v9722_v36  ;;  %v4011_v51 = vpop.f32.mrb[1].mxu1  ;;  %v4537_v37 = vmax.f32 %v3913_v50, 0.0 }
 0x41f   : > { %v5185_v1 = vmul.f32 %v9735_v38, %v4505_v49  ;;  %5614 = vadd.xlane.f32.xlu1 %v5613_v43  ;;  %v4012_v35 = vadd.f32 %v4011_v51, %v9742_v47  ;;  %v4013_v56 = vpop.f32.mrb[2].mxu1  ;;  %v5216_v4 = vmul.f32 %v9714_v52, %v4536_v33 }
 0x420   : > { %v5677_v48 = vadd.f32 %v5676_v27, %v5153_v61  ;;  %v5709_v25 = vadd.f32 %v9737_v19, %v5184_v10  ;;  %v4442_v46 = vmax.f32 %v4010_v41, 0.0  ;;  %v4015_v7 = vpop.f32.mrb[3].mxu1  ;;  %v5217_v14 = vmul.f32 %v9735_v38, %v4537_v37 }
 0x421   : > { %v4443_v58 = vmax.f32 %v4012_v35, 0.0  ;;  %v4014_v63 = vadd.f32 %v4013_v56, %v9722_v36  ;;  %v4016_v3 = vadd.f32 %v4015_v7, %v9742_v47  ;;  %v5742_v44 = vadd.f32 %v9751_v0, %v5216_v4 }
 0x422   : > { %v5710_v6 = vadd.f32 %v5709_v25, %v5185_v1  ;;  %v5122_v45 = vmul.f32 %v9726_v8, %v4442_v46 }
 0x423   : > { %v5123_v20 = vmul.f32 %v9763_v13, %v4443_v58  ;;  %v4474_v59 = vmax.f32 %v4014_v63, 0.0  ;;  %v4475_v19 = vmax.f32 %v4016_v3, 0.0  ;;  %v5743_v16 = vadd.f32 %v5742_v44, %v5217_v14 }
 0x424   : > { %v5645_v52 = vadd.f32 %v5644_v60, %v5122_v45 }
 0x425   : > { %v5154_v62 = vmul.f32 %v9726_v8, %v4474_v59  ;;  %v5155_v38 = vmul.f32 %v9763_v13, %v4475_v19  ;;  %v4019_v54 = vpop.f32.mrb[4].mxu1 }
 0x426   : > { %v4020_v42 = vadd.f32 %v4019_v54, %v9722_v36  ;;  %v4021_v53 = vpop.f32.mrb[5].mxu1  ;;  %v5646_v55 = vadd.f32 %v5645_v52, %v5123_v20 }
 0x427   : > { %v4022_v15 = vadd.f32 %v4021_v53, %v9742_v47  ;;  %v4023_v0 = vpop.f32.mrb[6].mxu1  ;;  %v5678_v5 = vadd.f32 %v5677_v48, %v5154_v62 }
 0x428   : > { %v4506_v17 = vmax.f32 %v4020_v42, 0.0  ;;  %v4024_v24 = vadd.f32 %v4023_v0, %v9722_v36  ;;  %v4025_v12 = vpop.f32.mrb[7].mxu1  ;;  %5647 = vadd.xlane.f32.xlu0 %v5646_v55 }
 0x429   : > { %v4507_v22 = vmax.f32 %v4022_v15, 0.0  ;;  %v4026_v29 = vadd.f32 %v4025_v12, %v9742_v47  ;;  %v5679_v21 = vadd.f32 %v5678_v5, %v5155_v38 }
 0x42a   : > { %v5186_v31 = vmul.f32 %v9726_v8, %v4506_v17  ;;  %v4538_v18 = vmax.f32 %v4024_v24, 0.0 }
 0x42b   : > { %v5187_v57 = vmul.f32 %v9763_v13, %v4507_v22  ;;  %v4539_v32 = vmax.f32 %v4026_v29, 0.0  ;;  %5680 = vadd.xlane.f32.xlu1 %v5679_v21 }
 0x42c   : > { %v5218_v23 = vmul.f32 %v9726_v8, %v4538_v18  ;;  %v5711_v2 = vadd.f32 %v5710_v6, %v5186_v31 }
 0x42d   : > { %v5219_v28 = vmul.f32 %v9763_v13, %v4539_v32 }
 0x42e   : > { %v5712_v11 = vadd.f32 %v5711_v2, %v5187_v57  ;;  %v5744_v36 = vadd.f32 %v5743_v16, %v5218_v23 }
 0x430   : > { %5713 = vadd.xlane.f32.xlu0 %v5712_v11  ;;  %v5745_v26 = vadd.f32 %v5744_v36, %v5219_v28 }
 0x432   : > { %5746 = vadd.xlane.f32.xlu1 %v5745_v26 }
 0x487   : > { %v5252_v47 = vpop.xlane.xlu0 %5251 }
 0x488   : > { %v5755_v34 = vadd.f32 %v9916_v39, %v5252_v47 }
 0x48a   : > { %v6229_v61 = vmul.f32 -1.442695, %v5755_v34 }
 0x48c   : > { %6341 = vpow2.f32 %v6229_v61  ;;  %v5285_v30 = vpop.xlane.xlu0 %5284 }
 0x48d   : > { %v5756_v9 = vadd.f32 %v9916_v39, %v5285_v30 }
 0x48f   : > { %v6230_v60 = vmul.f32 -1.442695, %v5756_v9  ;;  %v5318_v8 = vpop.xlane.xlu1 %5317 }
 0x490   : > { %v5757_v49 = vadd.f32 %v9916_v39, %v5318_v8 }
 0x491   : > { %6343 = vpow2.f32 %v6230_v60 }
 0x492   : > { %v6231_v13 = vmul.f32 -1.442695, %v5757_v49 }
 0x494   : > { %6345 = vpow2.f32 %v6231_v13 }
 0x495   : > { %v5351_v50 = vpop.xlane.xlu1 %5350 }
 0x496   : > { %v6342_v43 = vpop.eup %6341  ;;  %v5384_v40 = vpop.xlane.xlu0 %5383  ;;  %v5758_v10 = vadd.f32 %v9916_v39, %v5351_v50 }
 0x497   : > { %v5819_v27 = vadd.f32 1.0, %v6342_v43  ;;  %v5759_v33 = vadd.f32 %v9916_v39, %v5384_v40 }
 0x498   : > { %v6232_v41 = vmul.f32 -1.442695, %v5758_v10 }
 0x499   : > { %6347 = vrcp.f32 %v5819_v27  ;;  %v6233_v51 = vmul.f32 -1.442695, %v5759_v33  ;;  %v5417_v1 = vpop.xlane.xlu1 %5416 }
 0x49a   : > { %6349 = vpow2.f32 %v6232_v41  ;;  %v5760_v35 = vadd.f32 %v9916_v39, %v5417_v1 }
 0x49b   : > { %v6344_v37 = vpop.eup %6343  ;;  %6351 = vpow2.f32 %v6233_v51 }
 0x49c   : > { %v5820_v56 = vadd.f32 1.0, %v6344_v37  ;;  %v6234_v48 = vmul.f32 -1.442695, %v5760_v35 }
 0x49e   : > { %v6346_v25 = vpop.eup %6345  ;;  %6353 = vrcp.f32 %v5820_v56  ;;  %v5450_v4 = vpop.xlane.xlu0 %5449 }
 0x49f   : > { %v5821_v46 = vadd.f32 1.0, %v6346_v25  ;;  %6355 = vpow2.f32 %v6234_v48  ;;  %v5761_v7 = vadd.f32 %v9916_v39, %v5450_v4 }
 0x4a1   : > { %6357 = vrcp.f32 %v5821_v46  ;;  %v6235_v14 = vmul.f32 -1.442695, %v5761_v7  ;;  %v5483_v58 = vpop.xlane.xlu1 %5482 }
 0x4a2   : > { %v5762_v63 = vadd.f32 %v9916_v39, %v5483_v58 }
 0x4a3   : > { %v6348_v3 = vpop.eup %6347  ;;  %6359 = vpow2.f32 %v6235_v14 }
 0x4a4   : > { %5868 = vst.msk [vmem:[%s9930_s23] sm:$0xff] %vm5867_vm0, %v6348_v3  ;;  %v6236_v6 = vmul.f32 -1.442695, %v5762_v63  ;;  %v6350_v44 = vpop.eup %6349 }
 0x4a5   : > { %v5516_v45 = vpop.xlane.xlu0 %5515  ;;  %v6352_v20 = vpop.eup %6351  ;;  %v5822_v59 = vadd.f32 1.0, %v6350_v44 }
 0x4a6   : > { %6361 = vpow2.f32 %v6236_v6  ;;  %v5763_v19 = vadd.f32 %v9916_v39, %v5516_v45  ;;  %v5823_v16 = vadd.f32 1.0, %v6352_v20 }
 0x4a7   : > { %6363 = vrcp.f32 %v5822_v59 }
 0x4a8   : > { %v6354_v52 = vpop.eup %6353  ;;  %v6237_v62 = vmul.f32 -1.442695, %v5763_v19  ;;  %v5549_v38 = vpop.xlane.xlu1 %5548  ;;  %6365 = vrcp.f32 %v5823_v16 }
 0x4a9   : > { %v6356_v54 = vpop.eup %6355  ;;  %5869 = vst.msk [vmem:[%s9930_s23 + $0x8] sm:$0xff] %vm5867_vm0, %v6354_v52  ;;  %v5764_v42 = vadd.f32 %v9916_v39, %v5549_v38  ;;  %v5582_v55 = vpop.xlane.xlu0 %5581 }
 0x4aa   : > { %v5824_v53 = vadd.f32 1.0, %v6356_v54  ;;  %6367 = vpow2.f32 %v6237_v62  ;;  %v5765_v5 = vadd.f32 %v9916_v39, %v5582_v55 }
 0x4ab   : > { %v6358_v15 = vpop.eup %6357  ;;  %v6238_v0 = vmul.f32 -1.442695, %v5764_v42 }
 0x4ac   : > { %5870 = vst.msk [vmem:[%s9930_s23 + $0x10] sm:$0xff] %vm5867_vm0, %v6358_v15  ;;  %6369 = vrcp.f32 %v5824_v53  ;;  %v5615_v17 = vpop.xlane.xlu1 %5614  ;;  %v6239_v12 = vmul.f32 -1.442695, %v5765_v5 }
 0x4ad   : > { %v6360_v24 = vpop.eup %6359  ;;  %6371 = vpow2.f32 %v6238_v0  ;;  %v5766_v22 = vadd.f32 %v9916_v39, %v5615_v17 }
 0x4ae   : > { %v5825_v29 = vadd.f32 1.0, %v6360_v24  ;;  %6373 = vpow2.f32 %v6239_v12 }
 0x4af   : > { %v6240_v21 = vmul.f32 -1.442695, %v5766_v22 }
 0x4b0   : > { %v6362_v31 = vpop.eup %6361  ;;  %6375 = vrcp.f32 %v5825_v29 }
 0x4b1   : > { %v5826_v18 = vadd.f32 1.0, %v6362_v31  ;;  %6377 = vpow2.f32 %v6240_v21  ;;  %v6364_v57 = vpop.eup %6363 }
 0x4b2   : > { %v6366_v32 = vpop.eup %6365  ;;  %5871 = vst.msk [vmem:[%s9930_s23 + $0x18] sm:$0xff] %vm5867_vm0, %v6364_v57 }
 0x4b3   : > { %6379 = vrcp.f32 %v5826_v18  ;;  %5872 = vst.msk [vmem:[%s9930_s23 + $0x20] sm:$0xff] %vm5867_vm0, %v6366_v32 }
 0x4b4   : > { %v6368_v23 = vpop.eup %6367 }
 0x4b5   : > { %v5827_v2 = vadd.f32 1.0, %v6368_v23  ;;  %v5648_v28 = vpop.xlane.xlu0 %5647 }
 0x4b6   : > { %v6370_v11 = vpop.eup %6369  ;;  %v5767_v36 = vadd.f32 %v9916_v39, %v5648_v28 }
 0x4b7   : > { %v6372_v26 = vpop.eup %6371  ;;  %5873 = vst.msk [vmem:[%s9930_s23 + $0x28] sm:$0xff] %vm5867_vm0, %v6370_v11  ;;  %6381 = vrcp.f32 %v5827_v2 }
 0x4b8   : > { %v5828_v47 = vadd.f32 1.0, %v6372_v26  ;;  %v6241_v34 = vmul.f32 -1.442695, %v5767_v36  ;;  %v5681_v61 = vpop.xlane.xlu1 %5680  ;;  %v6374_v30 = vpop.eup %6373 }
 0x4b9   : > { %v5768_v9 = vadd.f32 %v9916_v39, %v5681_v61  ;;  %v5829_v8 = vadd.f32 1.0, %v6374_v30 }
 0x4ba   : > { %v6376_v60 = vpop.eup %6375  ;;  %6383 = vrcp.f32 %v5828_v47 }
 0x4bb   : > { %v6378_v49 = vpop.eup %6377  ;;  %5874 = vst.msk [vmem:[%s9930_s23 + $0x30] sm:$0xff] %vm5867_vm0, %v6376_v60  ;;  %6385 = vpow2.f32 %v6241_v34  ;;  %v6242_v13 = vmul.f32 -1.442695, %v5768_v9 }
 0x4bc   : > { %6387 = vrcp.f32 %v5829_v8  ;;  %v5830_v43 = vadd.f32 1.0, %v6378_v49 }
 0x4bd   : > { %v6380_v50 = vpop.eup %6379  ;;  %6389 = vpow2.f32 %v6242_v13  ;;  %v5714_v40 = vpop.xlane.xlu0 %5713 }
 0x4be   : > { %5875 = vst.msk [vmem:[%s9930_s23 + $0x38] sm:$0xff] %vm5867_vm0, %v6380_v50  ;;  %6391 = vrcp.f32 %v5830_v43  ;;  %v5769_v27 = vadd.f32 %v9916_v39, %v5714_v40 }
 0x4bf   : > { %v5747_v10 = vpop.xlane.xlu1 %5746 }
 0x4c0   : > { %v6243_v33 = vmul.f32 -1.442695, %v5769_v27  ;;  %v5770_v41 = vadd.f32 %v9916_v39, %v5747_v10 }
 0x4c1   : > { %v6382_v51 = vpop.eup %6381 }
 0x4c2   : > { %5876 = vst.msk [vmem:[%s9930_s23 + $0x40] sm:$0xff] %vm5867_vm0, %v6382_v51  ;;  %6393 = vpow2.f32 %v6243_v33  ;;  %v6244_v1 = vmul.f32 -1.442695, %v5770_v41 }
 0x4c4   : > { %v6384_v37 = vpop.eup %6383  ;;  %6395 = vpow2.f32 %v6244_v1 }
 0x4c5   : > { %v6386_v35 = vpop.eup %6385  ;;  %5877 = vst.msk [vmem:[%s9930_s23 + $0x48] sm:$0xff] %vm5867_vm0, %v6384_v37 }
 0x4c6   : > { %v6388_v56 = vpop.eup %6387  ;;  %v5831_v48 = vadd.f32 1.0, %v6386_v35 }
 0x4c7   : > { %v6390_v25 = vpop.eup %6389  ;;  %5878 = vst.msk [vmem:[%s9930_s23 + $0x50] sm:$0xff] %vm5867_vm0, %v6388_v56 }
 0x4c8   : > { %v6392_v4 = vpop.eup %6391  ;;  %6397 = vrcp.f32 %v5831_v48  ;;  %v5832_v39 = vadd.f32 1.0, %v6390_v25 }
 0x4c9   : > { %5879 = vst.msk [vmem:[%s9930_s23 + $0x58] sm:$0xff] %vm5867_vm0, %v6392_v4 }
 0x4ca   : > { %6399 = vrcp.f32 %v5832_v39 }
 0x4cc   : > { %v6394_v46 = vpop.eup %6393 }
 0x4cd   : > { %v5833_v7 = vadd.f32 1.0, %v6394_v46 }
 0x4ce   : > { %v6396_v14 = vpop.eup %6395 }
 0x4cf   : > { %6401 = vrcp.f32 %v5833_v7  ;;  %v5834_v58 = vadd.f32 1.0, %v6396_v14 }
 0x4d1   : > { %6403 = vrcp.f32 %v5834_v58 }
 0x4d2   : > { %v6398_v63 = vpop.eup %6397 }
 0x4d3   : > { %5880 = vst.msk [vmem:[%s9930_s23 + $0x60] sm:$0xff] %vm5867_vm0, %v6398_v63 }
 0x4d4   : > { %v6400_v3 = vpop.eup %6399 }
 0x4d5   : > { %5881 = vst.msk [vmem:[%s9930_s23 + $0x68] sm:$0xff] %vm5867_vm0, %v6400_v3 }
 0x4d9   : > { %v6402_v6 = vpop.eup %6401 }
 0x4da   : > { %5882 = vst.msk [vmem:[%s9930_s23 + $0x70] sm:$0xff] %vm5867_vm0, %v6402_v6 }
 0x4db   : > { %v6404_v44 = vpop.eup %6403 }
 0x4dc   : > { %5883 = vst.msk [vmem:[%s9930_s23 + $0x78] sm:$0xff] %vm5867_vm0, %v6404_v44 }
 0x4dd PF: > { %s20_s26 = sadd.s32 1, %s6445_s26  }
 0x4de   : > { %p17_p3 = scmp.ge.s32.totalorder %s20_s26, 4  }
 0x4e0   :  { %19 = sbr.rel (!%p17_p3) target bundleno = 4 (0x4), region = 83 }
 0x4e7   :  { %5906 = vsyncpa [#allocation4], 1 }
 0x4e8   :  { %5908 = vsyncpa [#allocation4 + $0x1], 1 }

</bundles_post_ra>
